<compile_context>
chip_gen: v6e
topology: v6e:2x2x1
jax: 0.10.0
libtpu: 0.0.40
codegen_flags: <defaults>
</compile_context>

<pallas_src>
import numpy as np
import jax
import jax.numpy as jnp
from jax.experimental import pallas as pl
from jax.experimental.pallas import tpu as pltpu

LN_EPS = 1e-5
_TILE_ROWS = 1024           # row tile for the [M, D]-shaped HBM-bound kernels (rec #6)
_MAMBA_TB = 32              # batch (node) tile for the Mamba kernel (rec #3)
_VMEM_LIMIT = 32 * 1024 * 1024   # sized with headroom against v7x's 64 MiB VMEM


# ----------------------------- small host-side helpers ----------------------------

def _cparams(n_par):
    return pltpu.CompilerParams(
        dimension_semantics=("parallel",) * n_par,
        vmem_limit_bytes=_VMEM_LIMIT)


def _round_up(x, m):
    return (x + m - 1) // m * m


def _ceil_div(a, b):
    return -(-a // b)


def _pad_axis(a, axis, new_size):
    if a.shape[axis] == new_size:
        return a
    pads = [(0, 0)] * a.ndim
    pads[axis] = (0, new_size - a.shape[axis])
    return jnp.pad(a, pads)


def _prep_rows(M, max_tile=_TILE_ROWS):
    """Pick (padded_rows, tile, grid).  Prefers >=2 grid steps so the 'parallel'
    axis can shard across v7x's 2 TensorCores (rec v7x)."""
    Mp = _round_up(max(M, 8), 8)
    grid = max(_ceil_div(Mp, max_tile), 2 if Mp >= 16 else 1)
    tile = _round_up(_ceil_div(Mp, grid), 8)
    Mp = tile * grid
    return Mp, tile, grid


def _row_spec(tile, cols):
    return pl.BlockSpec((tile, cols), lambda i: (i, 0))


def _const_spec(shape):
    nd = len(shape)
    return pl.BlockSpec(shape, lambda i, _nd=nd: (0,) * _nd)


# ----------------------------- in-kernel math helpers -----------------------------

def _sigmoid(x):
    # numerically stable sigmoid via tanh (EUP slot); exact: 0.5*(tanh(x/2)+1)
    return 0.5 * (jnp.tanh(0.5 * x) + 1.0)


def _softplus(x):
    return jnp.maximum(x, 0.0) + jnp.log(1.0 + jnp.exp(-jnp.abs(x)))


def _gelu(x):
    # TODO(synk): tanh-approximation GELU; PyTorch nn.GELU() default is exact erf
    # (difference ~1e-3, acceptable for inference).
    c = 0.7978845608028654
    return 0.5 * x * (1.0 + jnp.tanh(c * (x + 0.044715 * x * x * x)))


def _ln(x, g, b):
    mu = jnp.mean(x, axis=-1, keepdims=True)
    var = jnp.mean((x - mu) ** 2, axis=-1, keepdims=True)
    return (x - mu) * jax.lax.rsqrt(var + LN_EPS) * g + b


# --------------------------------- Pallas kernels ---------------------------------

def _fused_proj_kernel(x_ref, w_ref, b_ref, o_ref):
    o_ref[...] = jnp.dot(x_ref[...], w_ref[...],
                         preferred_element_type=jnp.float32) + b_ref[...]


def fused_proj(x, w, b):
    M, Din = x.shape
    No = w.shape[1]
    Mp, tile, grid = _prep_rows(M)
    out = pl.pallas_call(
        _fused_proj_kernel,
        out_shape=jax.ShapeDtypeStruct((Mp, No), jnp.float32),
        grid=(grid,),
        in_specs=[_row_spec(tile, Din), _const_spec(w.shape), _const_spec(b.shape)],
        out_specs=_row_spec(tile, No),
        compiler_params=_cparams(1),
    )(_pad_axis(x, 0, Mp), w, b)
    return out[:M]


def _gcn_edge_kernel(dxi_ref, exj_ref, bxj_ref, ea_ref, cw_ref, cb_ref,
                     bg_ref, bb_ref, o_ref):
    ea = ea_ref[...]
    e = (dxi_ref[...] + exj_ref[...]
         + jnp.dot(ea, cw_ref[...], preferred_element_type=jnp.float32) + cb_ref[...])
    sig = _sigmoid(e)
    # edge update fused: eval-mode BN (folded affine) + ReLU + residual
    e_out = ea + jnp.maximum(e * bg_ref[...] + bb_ref[...], 0.0)
    # single lane-dense [tile, 4D=128] slab (e_out | msg | sigma | raw-e): one
    # unmasked 128-lane store instead of masked 32/64-lane partial stores.
    o_ref[...] = jnp.concatenate([e_out, sig * bxj_ref[...], sig, e], axis=-1)


def gcn_edge(dxi, exj, bxj, edge_attr, cw, cb, bn_g, bn_b):
    E, D = edge_attr.shape
    Ep, tile, grid = _prep_rows(E)
    rows = [_pad_axis(a, 0, Ep) for a in (dxi, exj, bxj, edge_attr)]
    consts = [cw, cb, bn_g, bn_b]
    slab = pl.pallas_call(
        _gcn_edge_kernel,
        out_shape=jax.ShapeDtypeStruct((Ep, 4 * D), jnp.float32),
        grid=(grid,),
        in_specs=[_row_spec(tile, D)] * 4 + [_const_spec(c.shape) for c in consts],
        out_specs=_row_spec(tile, 4 * D),
        compiler_params=_cparams(1),
    )(*rows, *consts)
    # host-side split: new edge attr [:D], concat(msg, sigma) [D:3D]
    return slab[:E, :D], slab[:E, D:3 * D]


def _agg_kernel(dm_ref, dx_ref, o_ref):
    # gb graphs per grid step: batched [gb, K*max_n, max_n] @ [gb, max_n, D]
    o_ref[...] = jnp.einsum('gkm,gmd->gkd', dm_ref[...].astype(jnp.float32),
                            dx_ref[...], preferred_element_type=jnp.float32)


def sum_node_features(dist_masks, dense_x):
    Bg, K, mn, _ = dist_masks.shape
    D = dense_x.shape[-1]
    # batch several graphs per grid step to amortize the ~0.35us/step overhead of the
    # tiny per-graph matmul; keep >=2 grid steps when possible for v7x's 2 TCs.
    gb = max(1, min(8, _ceil_div(Bg, 2)))
    Bgp = _round_up(Bg, gb)
    # 0/1 mask is exact in bf16 -> halves mask DMA bytes; node features stay f32.
    dm = _pad_axis(dist_masks.reshape(Bg, K * mn, mn).astype(jnp.bfloat16), 0, Bgp)
    dx = _pad_axis(dense_x, 0, Bgp)
    out = pl.pallas_call(
        _agg_kernel,
        out_shape=jax.ShapeDtypeStruct((Bgp, K * mn, D), jnp.float32),
        grid=(Bgp // gb,),
        in_specs=[pl.BlockSpec((gb, K * mn, mn), lambda b: (b, 0, 0)),
                  pl.BlockSpec((gb, mn, D), lambda b: (b, 0, 0))],
        out_specs=pl.BlockSpec((gb, K * mn, D), lambda b: (b, 0, 0)),
        compiler_params=_cparams(1),
    )(dm, dx)
    return out[:Bg]


def _mamba_kernel(x_ref, lng_ref, lnb_ref, wix_ref, wiz_ref, cw_ref, cb_ref,
                  wdt_ref, bdt_ref, wb_ref, wc_ref, aflat_ref, dp_ref,
                  rep_ref, summat_ref, wo_ref, o_ref):
    L = x_ref.shape[0]
    TB = x_ref.shape[1]
    Kc = cw_ref.shape[0]
    S = wb_ref.shape[1]
    SDin = aflat_ref.shape[1]

    lng = lng_ref[...]; lnb = lnb_ref[...]
    wix = wix_ref[...]
    cw = cw_ref[...]; cb = cb_ref[...]
    wdt_eff = wdt_ref[...]; bdt = bdt_ref[...]
    wb = wb_ref[...]
    aflat = aflat_ref[...]; dp = dp_ref[...]
    rep = rep_ref[...]

    # flip (hop axis) + pre-Mamba LayerNorm + in_proj x-branch, per sequence step
    xbs = []
    x_last_ln = None
    for t in range(L):
        xt = _ln(x_ref[L - 1 - t], lng, lnb)
        if t == L - 1:
            x_last_ln = xt
        xbs.append(jnp.dot(xt, wix, preferred_element_type=jnp.float32))

    # causal depthwise conv1d over the sequence axis + SiLU (taps hoisted)
    cw_rows = [cw[k:k + 1, :] for k in range(Kc)]
    us = []
    for t in range(L):
        acc = xbs[t] * cw_rows[Kc - 1] + cb
        for k in range(Kc - 1):
            s = t - (Kc - 1) + k
            if s >= 0:
                acc = acc + xbs[s] * cw_rows[k]
        us.append(acc * _sigmoid(acc))                       # SiLU

    # selective scan: h is [TB, S*Din] lane-dense.  dt / dt*u are expanded over S by
    # a cheap lane concatenation (tile pattern); B is computed compactly as [TB, S]
    # and expanded by a tiny 0/1 repeat matrix -- no 512-wide fused-weight matmuls.
    h = jnp.zeros((TB, SDin), jnp.float32)
    for t in range(L):
        u = us[t]
        dt = _softplus(jnp.dot(u, wdt_eff, preferred_element_type=jnp.float32) + bdt)
        dt_e = jnp.concatenate([dt] * S, axis=-1)            # [TB, S*Din], tile over S
        dtu_e = jnp.concatenate([dt * u] * S, axis=-1)       # [TB, S*Din]
        b_cmp = jnp.dot(u, wb, preferred_element_type=jnp.float32)       # [TB, S]
        b_e = jnp.dot(b_cmp, rep, preferred_element_type=jnp.float32)    # repeat-expand
        h = jnp.exp(dt_e * aflat) * h + dtu_e * b_e

    # readout only at the final sequence position (the only one the module consumes)
    u_last = us[L - 1]
    c_cmp = jnp.dot(u_last, wc_ref[...], preferred_element_type=jnp.float32)  # [TB, S]
    c_e = jnp.dot(c_cmp, rep, preferred_element_type=jnp.float32)
    y = u_last * dp + jnp.dot(h * c_e, summat_ref[...],
                              preferred_element_type=jnp.float32)
    z = jnp.dot(x_last_ln, wiz_ref[...], preferred_element_type=jnp.float32)
    y = y * (z * _sigmoid(z))                                # SiLU(z) gate
    o_ref[...] = jnp.dot(y, wo_ref[...], preferred_element_type=jnp.float32)


def mamba_last(agg_knd, ln_g, ln_b, p):
    """agg_knd: [K, N, D] hop-major (unflipped). Returns the Mamba output at the final
    (flipped) sequence position: [N, D]."""
    K, N, Dm = agg_knd.shape
    Din = p['w_in_x'].shape[1]
    S = p['w_x_B'].shape[1]
    SDin = S * Din

    # tiny host/XLA-side weight prep: fold x_proj->dt_proj (no nonlinearity between
    # them), flat A, 0/1 repeat-expansion matrix, tiled-identity reduction matrix.
    wdt_eff = jnp.dot(p['w_x_dt'], p['w_dt'])                     # [Din, Din]
    a_flat = p['A_neg'].reshape(1, SDin)                          # [1, S*Din]
    rep_mat = jnp.repeat(jnp.eye(S, dtype=jnp.float32), Din, axis=1)   # [S, S*Din] 0/1
    sum_mat = jnp.tile(jnp.eye(Din, dtype=jnp.float32), (S, 1))        # [S*Din, Din]

    Np, tb, grid = _prep_rows(N, _MAMBA_TB)
    x = _pad_axis(agg_knd, 1, Np)

    consts = [ln_g, ln_b, p['w_in_x'], p['w_in_z'], p['conv_w'], p['conv_b'],
              wdt_eff, p['b_dt'], p['w_x_B'], p['w_x_C'], a_flat, p['Dp'],
              rep_mat, sum_mat, p['w_out']]
    out = pl.pallas_call(
        _mamba_kernel,
        out_shape=jax.ShapeDtypeStruct((Np, Dm), jnp.float32),
        grid=(grid,),
        in_specs=[pl.BlockSpec((K, tb, Dm), lambda i: (0, i, 0))]
                 + [_const_spec(c.shape) for c in consts],
        out_specs=_row_spec(tb, Dm),
        compiler_params=_cparams(1),
    )(x, *consts)
    return out[:N]


def _tail_kernel(x_ref, ax_ref, num_ref, den_ref, a0_ref, yl_ref,
                 bg_ref, bb_ref, nlg_ref, nlb_ref,
                 m1g_ref, m1b_ref, m1w1_ref, m1b1_ref, m1w2_ref, m1b2_ref,
                 m2w1_ref, m2b1_ref, m2w2_ref, m2b2_ref, og_ref, ob_ref, o_ref):
    x = x_ref[...]
    # GatedGCN node update (eval BN folded) + residual + norm_local, fused here so
    # 'local' never round-trips HBM:
    #   x_local = x + relu(bn(Ax + num/den)); local = LN(x_skip1 + x_local) = LN(2x+h)
    h = ax_ref[...] + num_ref[...] / (den_ref[...] + 1e-6)
    h = jnp.maximum(h * bg_ref[...] + bb_ref[...], 0.0)
    local = _ln(x + x + h, nlg_ref[...], nlb_ref[...])
    # MLP1 applied to hop-0 aggregation only (the only row of x_skip2 that is consumed)
    a0 = a0_ref[...]
    m = _ln(a0, m1g_ref[...], m1b_ref[...])
    m = jnp.dot(m, m1w1_ref[...], preferred_element_type=jnp.float32) + m1b1_ref[...]
    m = _gelu(m)
    m = jnp.dot(m, m1w2_ref[...], preferred_element_type=jnp.float32) + m1b2_ref[...]
    skip = m + a0
    # MLP2 (full-glu) on the Mamba output
    y = _gelu(yl_ref[...])
    a = jnp.dot(y, m2w1_ref[...], preferred_element_type=jnp.float32) + m2b1_ref[...]
    g = jnp.dot(y, m2w2_ref[...], preferred_element_type=jnp.float32) + m2b2_ref[...]
    glob = a * _sigmoid(g) + skip
    # norm_out(local + global)
    o_ref[...] = _ln(local + glob, og_ref[...], ob_ref[...])


def tail(x, ax, num, den, agg0, y_last, gcn_p, nl_g, nl_b,
         mlp1_p, mlp2_p, out_g, out_b):
    N, D = x.shape
    Np, tile, grid = _prep_rows(N)
    rows = [_pad_axis(a, 0, Np) for a in (x, ax, num, den, agg0, y_last)]
    consts = [gcn_p['bn_x_g'], gcn_p['bn_x_b'], nl_g, nl_b,
              mlp1_p['ln_g'], mlp1_p['ln_b'], mlp1_p['w1'], mlp1_p['b1'],
              mlp1_p['w2'], mlp1_p['b2'],
              mlp2_p['w1'], mlp2_p['b1'], mlp2_p['w2'], mlp2_p['b2'],
              out_g, out_b]
    out = pl.pallas_call(
        _tail_kernel,
        out_shape=jax.ShapeDtypeStruct((Np, D), jnp.float32),
        grid=(grid,),
        in_specs=[_row_spec(tile, D)] * 6 + [_const_spec(c.shape) for c in consts],
        out_specs=_row_spec(tile, D),
        compiler_params=_cparams(1),
    )(*rows, *consts)
    return out[:N]


# ------------------------------------ forward -------------------------------------

def gmb_layer_forward(params, x, edge_index, edge_attr, graph_labels, dist_masks,
                      num_graphs, max_n):
    N, D = x.shape
    K = dist_masks.shape[1]
    g = params['gcn']

    # ---------- local branch: GatedGCNLayer (residual=True, dropout=0, eval BN) -----
    # fused A/B/D/E projections -> single lane-dense [D, 4D] matmul
    w_fused = jnp.concatenate([g['A_w'], g['B_w'], g['D_w'], g['E_w']], axis=1)
    b_fused = jnp.concatenate([g['A_b'], g['B_b'], g['D_b'], g['E_b']], axis=1)
    proj = fused_proj(x, w_fused, b_fused)            # [N, 4D]; columns A|B|D|E
    Ax = proj[:, :D]
    Bx = proj[:, D:2 * D]
    Dx = proj[:, 2 * D:3 * D]
    Ex = proj[:, 3 * D:]

    src, dst = edge_index[0], edge_index[1]
    # TODO(synk): PyG propagate gather/scatter has no clean Pallas equivalent -> jnp.take / segment_sum glue.
    Dx_i = jnp.take(Dx, dst, axis=0)
    Ex_j = jnp.take(Ex, src, axis=0)
    Bx_j = jnp.take(Bx, src, axis=0)

    new_edge_attr, msg_sig = gcn_edge(Dx_i, Ex_j, Bx_j, edge_attr,
                                      g['C_w'], g['C_b'], g['bn_e_g'], g['bn_e_b'])
    # TODO(synk): equivstable_pe r_ij gate skipped -- GMBLayer passes a bool, not a PE tensor.
    seg = jax.ops.segment_sum(msg_sig, dst, num_segments=N)  # one scatter: num & den
    num, den = seg[:, :D], seg[:, D:]

    # ---------- global branch: sumNodeFeatures -> (MLP1 skip) / Mamba -> MLP2 -------
    ones = jnp.ones((N,), jnp.int32)
    counts = jax.ops.segment_sum(ones, graph_labels, num_segments=num_graphs)
    starts = jnp.concatenate([jnp.zeros((1,), counts.dtype), jnp.cumsum(counts)[:-1]])
    pos = jnp.arange(N, dtype=jnp.int32) - jnp.take(starts, graph_labels)
    flat_idx = graph_labels * max_n + pos
    # TODO(synk): to_dense_batch emulation assumes node rows are sorted & contiguous per graph.
    dense_x = jnp.zeros((num_graphs * max_n, D), jnp.float32).at[flat_idx].set(x)
    dense_x = dense_x.reshape(num_graphs, max_n, D)

    agg_dense = sum_node_features(dist_masks, dense_x)        # [Bg, K*max_n, D]
    agg_flat = agg_dense.reshape(num_graphs * K * max_n, D)
    hop_off = jnp.arange(K, dtype=jnp.int32)[:, None] * max_n
    idx_kn = graph_labels[None, :] * (K * max_n) + hop_off + pos[None, :]
    agg = jnp.take(agg_flat, idx_kn.reshape(-1), axis=0).reshape(K, N, D)

    # torch path: transpose -> flip(seq) -> LayerNorm -> Mamba -> take the last step.
    y_last = mamba_last(agg, params['ln_g'], params['ln_b'], params['mamba'])

    # node update + norm_local + MLP1(hop-0) + MLP2 + residual + norm_out in one kernel
    new_x = tail(x, Ax, num, den, agg[0], y_last, g,
                 params['norm_local_g'], params['norm_local_b'],
                 params['mlp1'], params['mlp2'],
                 params['norm_out_g'], params['norm_out_b'])
    return new_x, new_edge_attr


# ------------------------------- parameter init ------------------------------------

def init_params(key, D, S, d_conv, dt_rank):
    keys = iter(jax.random.split(key, 48))
    base = 1.0 / np.sqrt(D)

    def w(shape, scale=None):
        s = base if scale is None else scale
        return jax.random.normal(next(keys), shape, jnp.float32) * s

    ones_row = jnp.ones((1, D), jnp.float32)
    zeros_row = jnp.zeros((1, D), jnp.float32)
    bn_scale = jnp.full((1, D), 1.0 / np.sqrt(1.0 + 1e-5), jnp.float32)  # eval BN, rm=0 rv=1

    gcn = dict(A_w=w((D, D)), A_b=w((1, D), 0.01),
               B_w=w((D, D)), B_b=w((1, D), 0.01),
               C_w=w((D, D)), C_b=w((1, D), 0.01),
               D_w=w((D, D)), D_b=w((1, D), 0.01),
               E_w=w((D, D)), E_b=w((1, D), 0.01),
               bn_x_g=bn_scale, bn_x_b=zeros_row,
               bn_e_g=bn_scale, bn_e_b=zeros_row)
    mlp1_p = dict(ln_g=ones_row, ln_b=zeros_row,
                  w1=w((D, D)), b1=w((1, D), 0.01),
                  w2=w((D, D)), b2=w((1, D), 0.01))
    mlp2_p = dict(w1=w((D, D)), b1=w((1, D), 0.01),
                  w2=w((D, D)), b2=w((1, D), 0.01))
    Din = D  # expand = 1
    A_neg = -jnp.broadcast_to(jnp.arange(1, S + 1, dtype=jnp.float32)[:, None], (S, Din))
    mamba_p = dict(w_in_x=w((D, Din)), w_in_z=w((D, Din)),
                   conv_w=w((d_conv, Din), 1.0 / np.sqrt(d_conv)),
                   conv_b=w((1, Din), 0.01),
                   w_x_dt=w((Din, dt_rank)), w_x_B=w((Din, S)), w_x_C=w((Din, S)),
                   w_dt=w((dt_rank, Din), 1.0 / np.sqrt(dt_rank)),
                   b_dt=w((1, Din), 0.01),
                   A_neg=jnp.asarray(A_neg), Dp=jnp.ones((1, Din), jnp.float32),
                   w_out=w((Din, D)))
    return dict(gcn=gcn, mlp1=mlp1_p, mlp2=mlp2_p, mamba=mamba_p,
                norm_local_g=ones_row, norm_local_b=zeros_row,
                ln_g=ones_row, ln_b=zeros_row,
                norm_out_g=ones_row, norm_out_b=zeros_row)


# ------------------------------------- main ----------------------------------------

if __name__ == "__main__":
    D = 32          # dim_hidden
    S = 16          # d_state
    d_conv = 4
    K = 4           # number of hop-distance masks (Mamba sequence length)
    sizes = [6, 8]  # nodes per graph
    num_graphs = len(sizes)
    max_n = max(sizes)
    N = sum(sizes)
    dt_rank = max(1, (D + 15) // 16)   # Mamba "auto" dt_rank = ceil(D/16)

    key = jax.random.PRNGKey(0)
    k_data, k_param = jax.random.split(key)
    kd = jax.random.split(k_data, 4)

    x = jax.random.normal(kd[0], (N, D), jnp.float32)

    # bidirectional ring edges inside each graph
    src_list, dst_list, off = [], [], 0
    for n in sizes:
        for i in range(n):
            j = (i + 1) % n
            src_list += [off + i, off + j]
            dst_list += [off + j, off + i]
        off += n
    edge_index = jnp.array([src_list, dst_list], dtype=jnp.int32)
    E = edge_index.shape[1]
    edge_attr = jax.random.normal(kd[1], (E, D), jnp.float32)
    graph_labels = jnp.array(sum(([gi] * n for gi, n in enumerate(sizes)), []),
                             dtype=jnp.int32)
    dist_masks = jax.random.bernoulli(
        kd[2], 0.3, (num_graphs, K, max_n, max_n)).astype(jnp.float32)

    params = init_params(k_param, D, S, d_conv, dt_rank)

    fwd = jax.jit(gmb_layer_forward, static_argnames=("num_graphs", "max_n"))
    new_x, new_e = fwd(params, x, edge_index, edge_attr, graph_labels, dist_masks,
                       num_graphs=num_graphs, max_n=max_n)
    jax.block_until_ready((new_x, new_e))

    assert new_x.shape == (N, D) and new_e.shape == (E, D)
    assert bool(jnp.all(jnp.isfinite(new_x))) and bool(jnp.all(jnp.isfinite(new_e)))
    print("KERNEL_OK")
</pallas_src>

<mosaic_0001>
module attributes {stable_mosaic.version = 11 : i64} {
  func.func @_fused_proj_kernel(%arg0: i32, %arg1: memref<8x32xf32, #tpu.memory_space<vmem>>, %arg2: memref<32x128xf32, #tpu.memory_space<vmem>>, %arg3: memref<1x128xf32, #tpu.memory_space<vmem>>, %arg4: memref<8x128xf32, #tpu.memory_space<vmem>>) attributes {dimension_semantics = [#tpu.dimension_semantics<parallel>], iteration_bounds = array<i64: 2>, scalar_prefetch = 0 : i64, scratch_operands = 0 : i64, tpu.core_type = #tpu.core_type<tc>, window_params = [{transform_indices = @transform_0, window_bounds = array<i64: 8, 32>}, {pipeline_mode = #tpu.pipeline_mode<synchronous>, transform_indices = @transform_1, window_bounds = array<i64: 32, 128>}, {pipeline_mode = #tpu.pipeline_mode<synchronous>, transform_indices = @transform_2, window_bounds = array<i64: 1, 128>}, {transform_indices = @transform_3, window_bounds = array<i64: 8, 128>}]} {
    %c0 = arith.constant 0 : index
    %c0_0 = arith.constant 0 : index
    %0 = vector.load %arg1[%c0, %c0_0] : memref<8x32xf32, #tpu.memory_space<vmem>>, vector<8x32xf32>
    %c0_1 = arith.constant 0 : index
    %c0_2 = arith.constant 0 : index
    %1 = vector.load %arg2[%c0_1, %c0_2] : memref<32x128xf32, #tpu.memory_space<vmem>>, vector<32x128xf32>
    %cst = arith.constant dense<0.000000e+00> : vector<8x128xf32>
    %2 = tpu.matmul %0, %1, %cst {dimension_numbers = #tpu.dot_dimension_numbers<[1], [0], [0], [1], [0, 0, 1, 1], [], []>} : vector<8x32xf32>, vector<32x128xf32>, vector<8x128xf32> -> vector<8x128xf32>
    %c0_3 = arith.constant 0 : index
    %c0_4 = arith.constant 0 : index
    %3 = vector.load %arg3[%c0_3, %c0_4] : memref<1x128xf32, #tpu.memory_space<vmem>>, vector<1x128xf32>
    %4 = vector.broadcast %3 : vector<1x128xf32> to vector<8x128xf32>
    %5 = arith.addf %2, %4 : vector<8x128xf32>
    %c0_5 = arith.constant 0 : index
    %c0_6 = arith.constant 0 : index
    %6 = vector.load %arg4[%c0_5, %c0_6] : memref<8x128xf32, #tpu.memory_space<vmem>>, vector<8x128xf32>
    tpu.vector_store %arg4[%c0_5, %c0_6], %5 {strides = array<i32>} : memref<8x128xf32, #tpu.memory_space<vmem>>, vector<8x128xf32>,
    return
  }
  func.func @transform_0(%arg0: i32) -> (i32, i32) {
    %c0_i32 = arith.constant 0 : i32
    %c0_i32_0 = arith.constant 0 : i32
    return %arg0, %c0_i32 : i32, i32
  }
  func.func @transform_1(%arg0: i32) -> (i32, i32) {
    %c0_i32 = arith.constant 0 : i32
    %c0_i32_0 = arith.constant 0 : i32
    %c0_i32_1 = arith.constant 0 : i32
    return %c0_i32, %c0_i32_0 : i32, i32
  }
  func.func @transform_2(%arg0: i32) -> (i32, i32) {
    %c0_i32 = arith.constant 0 : i32
    %c0_i32_0 = arith.constant 0 : i32
    %c0_i32_1 = arith.constant 0 : i32
    return %c0_i32, %c0_i32_0 : i32, i32
  }
  func.func @transform_3(%arg0: i32) -> (i32, i32) {
    %c0_i32 = arith.constant 0 : i32
    %c0_i32_0 = arith.constant 0 : i32
    return %arg0, %c0_i32 : i32, i32
  }
}

module attributes {stable_mosaic.version = 11 : i64} {
  func.func @_agg_kernel(%arg0: i32, %arg1: memref<1x32x8xbf16, #tpu.memory_space<vmem>>, %arg2: memref<1x8x32xf32, #tpu.memory_space<vmem>>, %arg3: memref<1x32x32xf32, #tpu.memory_space<vmem>>) attributes {dimension_semantics = [#tpu.dimension_semantics<parallel>], iteration_bounds = array<i64: 2>, scalar_prefetch = 0 : i64, scratch_operands = 0 : i64, tpu.core_type = #tpu.core_type<tc>, window_params = [{transform_indices = @transform_0, window_bounds = array<i64: 1, 32, 8>}, {transform_indices = @transform_1, window_bounds = array<i64: 1, 8, 32>}, {transform_indices = @transform_2, window_bounds = array<i64: 1, 32, 32>}]} {
    %c0 = arith.constant 0 : index
    %c0_0 = arith.constant 0 : index
    %c0_1 = arith.constant 0 : index
    %0 = vector.load %arg1[%c0, %c0_0, %c0_1] : memref<1x32x8xbf16, #tpu.memory_space<vmem>>, vector<1x32x8xbf16>
    %1 = arith.extf %0 : vector<1x32x8xbf16> to vector<1x32x8xf32>
    %c0_2 = arith.constant 0 : index
    %c0_3 = arith.constant 0 : index
    %c0_4 = arith.constant 0 : index
    %2 = vector.load %arg2[%c0_2, %c0_3, %c0_4] : memref<1x8x32xf32, #tpu.memory_space<vmem>>, vector<1x8x32xf32>
    "tpu.trace_start"() <{level = 10 : i32, message = "gkm,gmd->gkd"}> : () -> ()
    %cst = arith.constant dense<0.000000e+00> : vector<1x32x32xf32>
    %3 = tpu.matmul %1, %2, %cst {dimension_numbers = #tpu.dot_dimension_numbers<[2], [1], [1], [2], [0, 0, 0, 1, 1, 2], [0], [0]>} : vector<1x32x8xf32>, vector<1x8x32xf32>, vector<1x32x32xf32> -> vector<1x32x32xf32>
    "tpu.trace_stop"() : () -> ()
    %c0_5 = arith.constant 0 : index
    %c0_6 = arith.constant 0 : index
    %c0_7 = arith.constant 0 : index
    %4 = vector.load %arg3[%c0_5, %c0_6, %c0_7] : memref<1x32x32xf32, #tpu.memory_space<vmem>>, vector<1x32x32xf32>
    tpu.vector_store %arg3[%c0_5, %c0_6, %c0_7], %3 {strides = array<i32>} : memref<1x32x32xf32, #tpu.memory_space<vmem>>, vector<1x32x32xf32>,
    return
  }
  func.func @transform_0(%arg0: i32) -> (i32, i32, i32) {
    %c0_i32 = arith.constant 0 : i32
    %c0_i32_0 = arith.constant 0 : i32
    %c0_i32_1 = arith.constant 0 : i32
    return %arg0, %c0_i32, %c0_i32_0 : i32, i32, i32
  }
  func.func @transform_1(%arg0: i32) -> (i32, i32, i32) {
    %c0_i32 = arith.constant 0 : i32
    %c0_i32_0 = arith.constant 0 : i32
    %c0_i32_1 = arith.constant 0 : i32
    return %arg0, %c0_i32, %c0_i32_0 : i32, i32, i32
  }
  func.func @transform_2(%arg0: i32) -> (i32, i32, i32) {
    %c0_i32 = arith.constant 0 : i32
    %c0_i32_0 = arith.constant 0 : i32
    %c0_i32_1 = arith.constant 0 : i32
    return %arg0, %c0_i32, %c0_i32_0 : i32, i32, i32
  }
}

module attributes {stable_mosaic.version = 11 : i64} {
  func.func @_gcn_edge_kernel(%arg0: i32, %arg1: memref<16x32xf32, #tpu.memory_space<vmem>>, %arg2: memref<16x32xf32, #tpu.memory_space<vmem>>, %arg3: memref<16x32xf32, #tpu.memory_space<vmem>>, %arg4: memref<16x32xf32, #tpu.memory_space<vmem>>, %arg5: memref<32x32xf32, #tpu.memory_space<vmem>>, %arg6: memref<1x32xf32, #tpu.memory_space<vmem>>, %arg7: memref<1x32xf32, #tpu.memory_space<vmem>>, %arg8: memref<1x32xf32, #tpu.memory_space<vmem>>, %arg9: memref<16x128xf32, #tpu.memory_space<vmem>>) attributes {dimension_semantics = [#tpu.dimension_semantics<parallel>], iteration_bounds = array<i64: 2>, scalar_prefetch = 0 : i64, scratch_operands = 0 : i64, tpu.core_type = #tpu.core_type<tc>, window_params = [{transform_indices = @transform_0, window_bounds = array<i64: 16, 32>}, {transform_indices = @transform_1, window_bounds = array<i64: 16, 32>}, {transform_indices = @transform_2, window_bounds = array<i64: 16, 32>}, {transform_indices = @transform_3, window_bounds = array<i64: 16, 32>}, {pipeline_mode = #tpu.pipeline_mode<synchronous>, transform_indices = @transform_4, window_bounds = array<i64: 32, 32>}, {pipeline_mode = #tpu.pipeline_mode<synchronous>, transform_indices = @transform_5, window_bounds = array<i64: 1, 32>}, {pipeline_mode = #tpu.pipeline_mode<synchronous>, transform_indices = @transform_6, window_bounds = array<i64: 1, 32>}, {pipeline_mode = #tpu.pipeline_mode<synchronous>, transform_indices = @transform_7, window_bounds = array<i64: 1, 32>}, {transform_indices = @transform_8, window_bounds = array<i64: 16, 128>}]} {
    %c0 = arith.constant 0 : index
    %c0_0 = arith.constant 0 : index
    %0 = vector.load %arg4[%c0, %c0_0] : memref<16x32xf32, #tpu.memory_space<vmem>>, vector<16x32xf32>
    %c0_1 = arith.constant 0 : index
    %c0_2 = arith.constant 0 : index
    %1 = vector.load %arg1[%c0_1, %c0_2] : memref<16x32xf32, #tpu.memory_space<vmem>>, vector<16x32xf32>
    %c0_3 = arith.constant 0 : index
    %c0_4 = arith.constant 0 : index
    %2 = vector.load %arg2[%c0_3, %c0_4] : memref<16x32xf32, #tpu.memory_space<vmem>>, vector<16x32xf32>
    %3 = arith.addf %1, %2 : vector<16x32xf32>
    %c0_5 = arith.constant 0 : index
    %c0_6 = arith.constant 0 : index
    %4 = vector.load %arg5[%c0_5, %c0_6] : memref<32x32xf32, #tpu.memory_space<vmem>>, vector<32x32xf32>
    %cst = arith.constant dense<0.000000e+00> : vector<16x32xf32>
    %5 = tpu.matmul %0, %4, %cst {dimension_numbers = #tpu.dot_dimension_numbers<[1], [0], [0], [1], [0, 0, 1, 1], [], []>} : vector<16x32xf32>, vector<32x32xf32>, vector<16x32xf32> -> vector<16x32xf32>
    %6 = arith.addf %3, %5 : vector<16x32xf32>
    %c0_7 = arith.constant 0 : index
    %c0_8 = arith.constant 0 : index
    %7 = vector.load %arg6[%c0_7, %c0_8] : memref<1x32xf32, #tpu.memory_space<vmem>>, vector<1x32xf32>
    %8 = vector.broadcast %7 : vector<1x32xf32> to vector<16x32xf32>
    %9 = arith.addf %6, %8 : vector<16x32xf32>
    %cst_9 = arith.constant 5.000000e-01 : f32
    %10 = vector.broadcast %cst_9 : f32 to vector<16x32xf32>
    %11 = arith.mulf %10, %9 : vector<16x32xf32>
    %12 = math.tanh %11 : vector<16x32xf32>
    %cst_10 = arith.constant 1.000000e+00 : f32
    %13 = vector.broadcast %cst_10 : f32 to vector<16x32xf32>
    %14 = arith.addf %12, %13 : vector<16x32xf32>
    %cst_11 = arith.constant 5.000000e-01 : f32
    %15 = vector.broadcast %cst_11 : f32 to vector<16x32xf32>
    %16 = arith.mulf %15, %14 : vector<16x32xf32>
    %c0_12 = arith.constant 0 : index
    %c0_13 = arith.constant 0 : index
    %17 = vector.load %arg7[%c0_12, %c0_13] : memref<1x32xf32, #tpu.memory_space<vmem>>, vector<1x32xf32>
    %18 = vector.broadcast %17 : vector<1x32xf32> to vector<16x32xf32>
    %19 = arith.mulf %9, %18 : vector<16x32xf32>
    %c0_14 = arith.constant 0 : index
    %c0_15 = arith.constant 0 : index
    %20 = vector.load %arg8[%c0_14, %c0_15] : memref<1x32xf32, #tpu.memory_space<vmem>>, vector<1x32xf32>
    %21 = vector.broadcast %20 : vector<1x32xf32> to vector<16x32xf32>
    %22 = arith.addf %19, %21 : vector<16x32xf32>
    %cst_16 = arith.constant 0.000000e+00 : f32
    %23 = vector.broadcast %cst_16 : f32 to vector<16x32xf32>
    %24 = arith.maximumf %22, %23 : vector<16x32xf32>
    %25 = arith.addf %0, %24 : vector<16x32xf32>
    %c0_17 = arith.constant 0 : index
    %c0_18 = arith.constant 0 : index
    %26 = vector.load %arg3[%c0_17, %c0_18] : memref<16x32xf32, #tpu.memory_space<vmem>>, vector<16x32xf32>
    %27 = arith.mulf %16, %26 : vector<16x32xf32>
    %28 = tpu.concatenate %25, %27, %16, %9 in 1 : vector<16x32xf32>, vector<16x32xf32>, vector<16x32xf32>, vector<16x32xf32> -> vector<16x128xf32>
    %c0_19 = arith.constant 0 : index
    %c0_20 = arith.constant 0 : index
    %29 = vector.load %arg9[%c0_19, %c0_20] : memref<16x128xf32, #tpu.memory_space<vmem>>, vector<16x128xf32>
    tpu.vector_store %arg9[%c0_19, %c0_20], %28 {strides = array<i32>} : memref<16x128xf32, #tpu.memory_space<vmem>>, vector<16x128xf32>,
    return
  }
  func.func @transform_0(%arg0: i32) -> (i32, i32) {
    %c0_i32 = arith.constant 0 : i32
    %c0_i32_0 = arith.constant 0 : i32
    return %arg0, %c0_i32 : i32, i32
  }
  func.func @transform_1(%arg0: i32) -> (i32, i32) {
    %c0_i32 = arith.constant 0 : i32
    %c0_i32_0 = arith.constant 0 : i32
    return %arg0, %c0_i32 : i32, i32
  }
  func.func @transform_2(%arg0: i32) -> (i32, i32) {
    %c0_i32 = arith.constant 0 : i32
    %c0_i32_0 = arith.constant 0 : i32
    return %arg0, %c0_i32 : i32, i32
  }
  func.func @transform_3(%arg0: i32) -> (i32, i32) {
    %c0_i32 = arith.constant 0 : i32
    %c0_i32_0 = arith.constant 0 : i32
    return %arg0, %c0_i32 : i32, i32
  }
  func.func @transform_4(%arg0: i32) -> (i32, i32) {
    %c0_i32 = arith.constant 0 : i32
    %c0_i32_0 = arith.constant 0 : i32
    %c0_i32_1 = arith.constant 0 : i32
    return %c0_i32, %c0_i32_0 : i32, i32
  }
  func.func @transform_5(%arg0: i32) -> (i32, i32) {
    %c0_i32 = arith.constant 0 : i32
    %c0_i32_0 = arith.constant 0 : i32
    %c0_i32_1 = arith.constant 0 : i32
    return %c0_i32, %c0_i32_0 : i32, i32
  }
  func.func @transform_6(%arg0: i32) -> (i32, i32) {
    %c0_i32 = arith.constant 0 : i32
    %c0_i32_0 = arith.constant 0 : i32
    %c0_i32_1 = arith.constant 0 : i32
    return %c0_i32, %c0_i32_0 : i32, i32
  }
  func.func @transform_7(%arg0: i32) -> (i32, i32) {
    %c0_i32 = arith.constant 0 : i32
    %c0_i32_0 = arith.constant 0 : i32
    %c0_i32_1 = arith.constant 0 : i32
    return %c0_i32, %c0_i32_0 : i32, i32
  }
  func.func @transform_8(%arg0: i32) -> (i32, i32) {
    %c0_i32 = arith.constant 0 : i32
    %c0_i32_0 = arith.constant 0 : i32
    return %arg0, %c0_i32 : i32, i32
  }
}

module attributes {stable_mosaic.version = 11 : i64} {
  func.func @_mamba_kernel(%arg0: i32, %arg1: memref<4x8x32xf32, #tpu.memory_space<vmem>>, %arg2: memref<1x32xf32, #tpu.memory_space<vmem>>, %arg3: memref<1x32xf32, #tpu.memory_space<vmem>>, %arg4: memref<32x32xf32, #tpu.memory_space<vmem>>, %arg5: memref<32x32xf32, #tpu.memory_space<vmem>>, %arg6: memref<4x32xf32, #tpu.memory_space<vmem>>, %arg7: memref<1x32xf32, #tpu.memory_space<vmem>>, %arg8: memref<32x32xf32, #tpu.memory_space<vmem>>, %arg9: memref<1x32xf32, #tpu.memory_space<vmem>>, %arg10: memref<32x16xf32, #tpu.memory_space<vmem>>, %arg11: memref<32x16xf32, #tpu.memory_space<vmem>>, %arg12: memref<1x512xf32, #tpu.memory_space<vmem>>, %arg13: memref<1x32xf32, #tpu.memory_space<vmem>>, %arg14: memref<16x512xf32, #tpu.memory_space<vmem>>, %arg15: memref<512x32xf32, #tpu.memory_space<vmem>>, %arg16: memref<32x32xf32, #tpu.memory_space<vmem>>, %arg17: memref<8x32xf32, #tpu.memory_space<vmem>>) attributes {dimension_semantics = [#tpu.dimension_semantics<parallel>], iteration_bounds = array<i64: 2>, scalar_prefetch = 0 : i64, scratch_operands = 0 : i64, tpu.core_type = #tpu.core_type<tc>, window_params = [{transform_indices = @transform_0, window_bounds = array<i64: 4, 8, 32>}, {pipeline_mode = #tpu.pipeline_mode<synchronous>, transform_indices = @transform_1, window_bounds = array<i64: 1, 32>}, {pipeline_mode = #tpu.pipeline_mode<synchronous>, transform_indices = @transform_2, window_bounds = array<i64: 1, 32>}, {pipeline_mode = #tpu.pipeline_mode<synchronous>, transform_indices = @transform_3, window_bounds = array<i64: 32, 32>}, {pipeline_mode = #tpu.pipeline_mode<synchronous>, transform_indices = @transform_4, window_bounds = array<i64: 32, 32>}, {pipeline_mode = #tpu.pipeline_mode<synchronous>, transform_indices = @transform_5, window_bounds = array<i64: 4, 32>}, {pipeline_mode = #tpu.pipeline_mode<synchronous>, transform_indices = @transform_6, window_bounds = array<i64: 1, 32>}, {pipeline_mode = #tpu.pipeline_mode<synchronous>, transform_indices = @transform_7, window_bounds = array<i64: 32, 32>}, {pipeline_mode = #tpu.pipeline_mode<synchronous>, transform_indices = @transform_8, window_bounds = array<i64: 1, 32>}, {pipeline_mode = #tpu.pipeline_mode<synchronous>, transform_indices = @transform_9, window_bounds = array<i64: 32, 16>}, {pipeline_mode = #tpu.pipeline_mode<synchronous>, transform_indices = @transform_10, window_bounds = array<i64: 32, 16>}, {pipeline_mode = #tpu.pipeline_mode<synchronous>, transform_indices = @transform_11, window_bounds = array<i64: 1, 512>}, {pipeline_mode = #tpu.pipeline_mode<synchronous>, transform_indices = @transform_12, window_bounds = array<i64: 1, 32>}, {pipeline_mode = #tpu.pipeline_mode<synchronous>, transform_indices = @transform_13, window_bounds = array<i64: 16, 512>}, {pipeline_mode = #tpu.pipeline_mode<synchronous>, transform_indices = @transform_14, window_bounds = array<i64: 512, 32>}, {pipeline_mode = #tpu.pipeline_mode<synchronous>, transform_indices = @transform_15, window_bounds = array<i64: 32, 32>}, {transform_indices = @transform_16, window_bounds = array<i64: 8, 32>}]} {
    %c0 = arith.constant 0 : index
    %c0_0 = arith.constant 0 : index
    %0 = vector.load %arg2[%c0, %c0_0] : memref<1x32xf32, #tpu.memory_space<vmem>>, vector<1x32xf32>
    %c0_1 = arith.constant 0 : index
    %c0_2 = arith.constant 0 : index
    %1 = vector.load %arg3[%c0_1, %c0_2] : memref<1x32xf32, #tpu.memory_space<vmem>>, vector<1x32xf32>
    %c0_3 = arith.constant 0 : index
    %c0_4 = arith.constant 0 : index
    %2 = vector.load %arg4[%c0_3, %c0_4] : memref<32x32xf32, #tpu.memory_space<vmem>>, vector<32x32xf32>
    %c0_5 = arith.constant 0 : index
    %c0_6 = arith.constant 0 : index
    %3 = vector.load %arg6[%c0_5, %c0_6] : memref<4x32xf32, #tpu.memory_space<vmem>>, vector<4x32xf32>
    %c0_7 = arith.constant 0 : index
    %c0_8 = arith.constant 0 : index
    %4 = vector.load %arg7[%c0_7, %c0_8] : memref<1x32xf32, #tpu.memory_space<vmem>>, vector<1x32xf32>
    %c0_9 = arith.constant 0 : index
    %c0_10 = arith.constant 0 : index
    %5 = vector.load %arg8[%c0_9, %c0_10] : memref<32x32xf32, #tpu.memory_space<vmem>>, vector<32x32xf32>
    %c0_11 = arith.constant 0 : index
    %c0_12 = arith.constant 0 : index
    %6 = vector.load %arg9[%c0_11, %c0_12] : memref<1x32xf32, #tpu.memory_space<vmem>>, vector<1x32xf32>
    %c0_13 = arith.constant 0 : index
    %c0_14 = arith.constant 0 : index
    %7 = vector.load %arg10[%c0_13, %c0_14] : memref<32x16xf32, #tpu.memory_space<vmem>>, vector<32x16xf32>
    %c0_15 = arith.constant 0 : index
    %c0_16 = arith.constant 0 : index
    %8 = vector.load %arg12[%c0_15, %c0_16] : memref<1x512xf32, #tpu.memory_space<vmem>>, vector<1x512xf32>
    %c0_17 = arith.constant 0 : index
    %c0_18 = arith.constant 0 : index
    %9 = vector.load %arg13[%c0_17, %c0_18] : memref<1x32xf32, #tpu.memory_space<vmem>>, vector<1x32xf32>
    %c0_19 = arith.constant 0 : index
    %c0_20 = arith.constant 0 : index
    %10 = vector.load %arg14[%c0_19, %c0_20] : memref<16x512xf32, #tpu.memory_space<vmem>>, vector<16x512xf32>
    %c3 = arith.constant 3 : index
    %c0_21 = arith.constant 0 : index
    %c0_22 = arith.constant 0 : index
    %11 = vector.load %arg1[%c3, %c0_21, %c0_22] : memref<4x8x32xf32, #tpu.memory_space<vmem>>, vector<1x8x32xf32>
    %12 = vector.shape_cast %11 : vector<1x8x32xf32> to vector<8x32xf32>
    %cst = arith.constant dense<0.000000e+00> : vector<8xf32>
    %13 = vector.multi_reduction <add>, %12, %cst [1] : vector<8x32xf32> to vector<8xf32>
    %14 = vector.shape_cast %13 : vector<8xf32> to vector<8x1xf32>
    %cst_23 = arith.constant 3.200000e+01 : f32
    %15 = vector.broadcast %cst_23 : f32 to vector<8x1xf32>
    %16 = arith.divf %14, %15 : vector<8x1xf32>
    %17 = vector.broadcast %16 : vector<8x1xf32> to vector<8x32xf32>
    %18 = arith.subf %12, %17 : vector<8x32xf32>
    %19 = arith.mulf %18, %18 : vector<8x32xf32>
    %cst_24 = arith.constant dense<0.000000e+00> : vector<8xf32>
    %20 = vector.multi_reduction <add>, %19, %cst_24 [1] : vector<8x32xf32> to vector<8xf32>
    %21 = vector.shape_cast %20 : vector<8xf32> to vector<8x1xf32>
    %cst_25 = arith.constant 3.200000e+01 : f32
    %22 = vector.broadcast %cst_25 : f32 to vector<8x1xf32>
    %23 = arith.divf %21, %22 : vector<8x1xf32>
    %24 = vector.broadcast %16 : vector<8x1xf32> to vector<8x32xf32>
    %25 = arith.subf %12, %24 : vector<8x32xf32>
    %cst_26 = arith.constant 9.99999974E-6 : f32
    %26 = vector.broadcast %cst_26 : f32 to vector<8x1xf32>
    %27 = arith.addf %23, %26 : vector<8x1xf32>
    %28 = math.rsqrt %27 : vector<8x1xf32>
    %29 = vector.broadcast %28 : vector<8x1xf32> to vector<8x32xf32>
    %30 = arith.mulf %25, %29 : vector<8x32xf32>
    %31 = vector.broadcast %0 : vector<1x32xf32> to vector<8x32xf32>
    %32 = arith.mulf %30, %31 : vector<8x32xf32>
    %33 = vector.broadcast %1 : vector<1x32xf32> to vector<8x32xf32>
    %34 = arith.addf %32, %33 : vector<8x32xf32>
    %cst_27 = arith.constant dense<0.000000e+00> : vector<8x32xf32>
    %35 = tpu.matmul %34, %2, %cst_27 {dimension_numbers = #tpu.dot_dimension_numbers<[1], [0], [0], [1], [0, 0, 1, 1], [], []>} : vector<8x32xf32>, vector<32x32xf32>, vector<8x32xf32> -> vector<8x32xf32>
    %c2 = arith.constant 2 : index
    %c0_28 = arith.constant 0 : index
    %c0_29 = arith.constant 0 : index
    %36 = vector.load %arg1[%c2, %c0_28, %c0_29] : memref<4x8x32xf32, #tpu.memory_space<vmem>>, vector<1x8x32xf32>
    %37 = vector.shape_cast %36 : vector<1x8x32xf32> to vector<8x32xf32>
    %cst_30 = arith.constant dense<0.000000e+00> : vector<8xf32>
    %38 = vector.multi_reduction <add>, %37, %cst_30 [1] : vector<8x32xf32> to vector<8xf32>
    %39 = vector.shape_cast %38 : vector<8xf32> to vector<8x1xf32>
    %cst_31 = arith.constant 3.200000e+01 : f32
    %40 = vector.broadcast %cst_31 : f32 to vector<8x1xf32>
    %41 = arith.divf %39, %40 : vector<8x1xf32>
    %42 = vector.broadcast %41 : vector<8x1xf32> to vector<8x32xf32>
    %43 = arith.subf %37, %42 : vector<8x32xf32>
    %44 = arith.mulf %43, %43 : vector<8x32xf32>
    %cst_32 = arith.constant dense<0.000000e+00> : vector<8xf32>
    %45 = vector.multi_reduction <add>, %44, %cst_32 [1] : vector<8x32xf32> to vector<8xf32>
    %46 = vector.shape_cast %45 : vector<8xf32> to vector<8x1xf32>
    %cst_33 = arith.constant 3.200000e+01 : f32
    %47 = vector.broadcast %cst_33 : f32 to vector<8x1xf32>
    %48 = arith.divf %46, %47 : vector<8x1xf32>
    %49 = vector.broadcast %41 : vector<8x1xf32> to vector<8x32xf32>
    %50 = arith.subf %37, %49 : vector<8x32xf32>
    %cst_34 = arith.constant 9.99999974E-6 : f32
    %51 = vector.broadcast %cst_34 : f32 to vector<8x1xf32>
    %52 = arith.addf %48, %51 : vector<8x1xf32>
    %53 = math.rsqrt %52 : vector<8x1xf32>
    %54 = vector.broadcast %53 : vector<8x1xf32> to vector<8x32xf32>
    %55 = arith.mulf %50, %54 : vector<8x32xf32>
    %56 = vector.broadcast %0 : vector<1x32xf32> to vector<8x32xf32>
    %57 = arith.mulf %55, %56 : vector<8x32xf32>
    %58 = vector.broadcast %1 : vector<1x32xf32> to vector<8x32xf32>
    %59 = arith.addf %57, %58 : vector<8x32xf32>
    %cst_35 = arith.constant dense<0.000000e+00> : vector<8x32xf32>
    %60 = tpu.matmul %59, %2, %cst_35 {dimension_numbers = #tpu.dot_dimension_numbers<[1], [0], [0], [1], [0, 0, 1, 1], [], []>} : vector<8x32xf32>, vector<32x32xf32>, vector<8x32xf32> -> vector<8x32xf32>
    %c1 = arith.constant 1 : index
    %c0_36 = arith.constant 0 : index
    %c0_37 = arith.constant 0 : index
    %61 = vector.load %arg1[%c1, %c0_36, %c0_37] : memref<4x8x32xf32, #tpu.memory_space<vmem>>, vector<1x8x32xf32>
    %62 = vector.shape_cast %61 : vector<1x8x32xf32> to vector<8x32xf32>
    %cst_38 = arith.constant dense<0.000000e+00> : vector<8xf32>
    %63 = vector.multi_reduction <add>, %62, %cst_38 [1] : vector<8x32xf32> to vector<8xf32>
    %64 = vector.shape_cast %63 : vector<8xf32> to vector<8x1xf32>
    %cst_39 = arith.constant 3.200000e+01 : f32
    %65 = vector.broadcast %cst_39 : f32 to vector<8x1xf32>
    %66 = arith.divf %64, %65 : vector<8x1xf32>
    %67 = vector.broadcast %66 : vector<8x1xf32> to vector<8x32xf32>
    %68 = arith.subf %62, %67 : vector<8x32xf32>
    %69 = arith.mulf %68, %68 : vector<8x32xf32>
    %cst_40 = arith.constant dense<0.000000e+00> : vector<8xf32>
    %70 = vector.multi_reduction <add>, %69, %cst_40 [1] : vector<8x32xf32> to vector<8xf32>
    %71 = vector.shape_cast %70 : vector<8xf32> to vector<8x1xf32>
    %cst_41 = arith.constant 3.200000e+01 : f32
    %72 = vector.broadcast %cst_41 : f32 to vector<8x1xf32>
    %73 = arith.divf %71, %72 : vector<8x1xf32>
    %74 = vector.broadcast %66 : vector<8x1xf32> to vector<8x32xf32>
    %75 = arith.subf %62, %74 : vector<8x32xf32>
    %cst_42 = arith.constant 9.99999974E-6 : f32
    %76 = vector.broadcast %cst_42 : f32 to vector<8x1xf32>
    %77 = arith.addf %73, %76 : vector<8x1xf32>
    %78 = math.rsqrt %77 : vector<8x1xf32>
    %79 = vector.broadcast %78 : vector<8x1xf32> to vector<8x32xf32>
    %80 = arith.mulf %75, %79 : vector<8x32xf32>
    %81 = vector.broadcast %0 : vector<1x32xf32> to vector<8x32xf32>
    %82 = arith.mulf %80, %81 : vector<8x32xf32>
    %83 = vector.broadcast %1 : vector<1x32xf32> to vector<8x32xf32>
    %84 = arith.addf %82, %83 : vector<8x32xf32>
    %cst_43 = arith.constant dense<0.000000e+00> : vector<8x32xf32>
    %85 = tpu.matmul %84, %2, %cst_43 {dimension_numbers = #tpu.dot_dimension_numbers<[1], [0], [0], [1], [0, 0, 1, 1], [], []>} : vector<8x32xf32>, vector<32x32xf32>, vector<8x32xf32> -> vector<8x32xf32>
    %c0_44 = arith.constant 0 : index
    %c0_45 = arith.constant 0 : index
    %c0_46 = arith.constant 0 : index
    %86 = vector.load %arg1[%c0_44, %c0_45, %c0_46] : memref<4x8x32xf32, #tpu.memory_space<vmem>>, vector<1x8x32xf32>
    %87 = vector.shape_cast %86 : vector<1x8x32xf32> to vector<8x32xf32>
    %cst_47 = arith.constant dense<0.000000e+00> : vector<8xf32>
    %88 = vector.multi_reduction <add>, %87, %cst_47 [1] : vector<8x32xf32> to vector<8xf32>
    %89 = vector.shape_cast %88 : vector<8xf32> to vector<8x1xf32>
    %cst_48 = arith.constant 3.200000e+01 : f32
    %90 = vector.broadcast %cst_48 : f32 to vector<8x1xf32>
    %91 = arith.divf %89, %90 : vector<8x1xf32>
    %92 = vector.broadcast %91 : vector<8x1xf32> to vector<8x32xf32>
    %93 = arith.subf %87, %92 : vector<8x32xf32>
    %94 = arith.mulf %93, %93 : vector<8x32xf32>
    %cst_49 = arith.constant dense<0.000000e+00> : vector<8xf32>
    %95 = vector.multi_reduction <add>, %94, %cst_49 [1] : vector<8x32xf32> to vector<8xf32>
    %96 = vector.shape_cast %95 : vector<8xf32> to vector<8x1xf32>
    %cst_50 = arith.constant 3.200000e+01 : f32
    %97 = vector.broadcast %cst_50 : f32 to vector<8x1xf32>
    %98 = arith.divf %96, %97 : vector<8x1xf32>
    %99 = vector.broadcast %91 : vector<8x1xf32> to vector<8x32xf32>
    %100 = arith.subf %87, %99 : vector<8x32xf32>
    %cst_51 = arith.constant 9.99999974E-6 : f32
    %101 = vector.broadcast %cst_51 : f32 to vector<8x1xf32>
    %102 = arith.addf %98, %101 : vector<8x1xf32>
    %103 = math.rsqrt %102 : vector<8x1xf32>
    %104 = vector.broadcast %103 : vector<8x1xf32> to vector<8x32xf32>
    %105 = arith.mulf %100, %104 : vector<8x32xf32>
    %106 = vector.broadcast %0 : vector<1x32xf32> to vector<8x32xf32>
    %107 = arith.mulf %105, %106 : vector<8x32xf32>
    %108 = vector.broadcast %1 : vector<1x32xf32> to vector<8x32xf32>
    %109 = arith.addf %107, %108 : vector<8x32xf32>
    %cst_52 = arith.constant dense<0.000000e+00> : vector<8x32xf32>
    %110 = tpu.matmul %109, %2, %cst_52 {dimension_numbers = #tpu.dot_dimension_numbers<[1], [0], [0], [1], [0, 0, 1, 1], [], []>} : vector<8x32xf32>, vector<32x32xf32>, vector<8x32xf32> -> vector<8x32xf32>
    %111 = vector.extract_strided_slice %3 {offsets = [0, 0], sizes = [1, 32], strides = [1, 1]} : vector<4x32xf32> to vector<1x32xf32>
    %112 = vector.extract_strided_slice %3 {offsets = [1, 0], sizes = [1, 32], strides = [1, 1]} : vector<4x32xf32> to vector<1x32xf32>
    %113 = vector.extract_strided_slice %3 {offsets = [2, 0], sizes = [1, 32], strides = [1, 1]} : vector<4x32xf32> to vector<1x32xf32>
    %114 = vector.extract_strided_slice %3 {offsets = [3, 0], sizes = [1, 32], strides = [1, 1]} : vector<4x32xf32> to vector<1x32xf32>
    %115 = vector.broadcast %114 : vector<1x32xf32> to vector<8x32xf32>
    %116 = arith.mulf %35, %115 : vector<8x32xf32>
    %117 = vector.broadcast %4 : vector<1x32xf32> to vector<8x32xf32>
    %118 = arith.addf %116, %117 : vector<8x32xf32>
    %cst_53 = arith.constant 5.000000e-01 : f32
    %119 = vector.broadcast %cst_53 : f32 to vector<8x32xf32>
    %120 = arith.mulf %119, %118 : vector<8x32xf32>
    %121 = math.tanh %120 : vector<8x32xf32>
    %cst_54 = arith.constant 1.000000e+00 : f32
    %122 = vector.broadcast %cst_54 : f32 to vector<8x32xf32>
    %123 = arith.addf %121, %122 : vector<8x32xf32>
    %cst_55 = arith.constant 5.000000e-01 : f32
    %124 = vector.broadcast %cst_55 : f32 to vector<8x32xf32>
    %125 = arith.mulf %124, %123 : vector<8x32xf32>
    %126 = arith.mulf %118, %125 : vector<8x32xf32>
    %127 = vector.broadcast %114 : vector<1x32xf32> to vector<8x32xf32>
    %128 = arith.mulf %60, %127 : vector<8x32xf32>
    %129 = vector.broadcast %4 : vector<1x32xf32> to vector<8x32xf32>
    %130 = arith.addf %128, %129 : vector<8x32xf32>
    %131 = vector.broadcast %113 : vector<1x32xf32> to vector<8x32xf32>
    %132 = arith.mulf %35, %131 : vector<8x32xf32>
    %133 = arith.addf %130, %132 : vector<8x32xf32>
    %cst_56 = arith.constant 5.000000e-01 : f32
    %134 = vector.broadcast %cst_56 : f32 to vector<8x32xf32>
    %135 = arith.mulf %134, %133 : vector<8x32xf32>
    %136 = math.tanh %135 : vector<8x32xf32>
    %cst_57 = arith.constant 1.000000e+00 : f32
    %137 = vector.broadcast %cst_57 : f32 to vector<8x32xf32>
    %138 = arith.addf %136, %137 : vector<8x32xf32>
    %cst_58 = arith.constant 5.000000e-01 : f32
    %139 = vector.broadcast %cst_58 : f32 to vector<8x32xf32>
    %140 = arith.mulf %139, %138 : vector<8x32xf32>
    %141 = arith.mulf %133, %140 : vector<8x32xf32>
    %142 = vector.broadcast %114 : vector<1x32xf32> to vector<8x32xf32>
    %143 = arith.mulf %85, %142 : vector<8x32xf32>
    %144 = vector.broadcast %4 : vector<1x32xf32> to vector<8x32xf32>
    %145 = arith.addf %143, %144 : vector<8x32xf32>
    %146 = vector.broadcast %112 : vector<1x32xf32> to vector<8x32xf32>
    %147 = arith.mulf %35, %146 : vector<8x32xf32>
    %148 = arith.addf %145, %147 : vector<8x32xf32>
    %149 = vector.broadcast %113 : vector<1x32xf32> to vector<8x32xf32>
    %150 = arith.mulf %60, %149 : vector<8x32xf32>
    %151 = arith.addf %148, %150 : vector<8x32xf32>
    %cst_59 = arith.constant 5.000000e-01 : f32
    %152 = vector.broadcast %cst_59 : f32 to vector<8x32xf32>
    %153 = arith.mulf %152, %151 : vector<8x32xf32>
    %154 = math.tanh %153 : vector<8x32xf32>
    %cst_60 = arith.constant 1.000000e+00 : f32
    %155 = vector.broadcast %cst_60 : f32 to vector<8x32xf32>
    %156 = arith.addf %154, %155 : vector<8x32xf32>
    %cst_61 = arith.constant 5.000000e-01 : f32
    %157 = vector.broadcast %cst_61 : f32 to vector<8x32xf32>
    %158 = arith.mulf %157, %156 : vector<8x32xf32>
    %159 = arith.mulf %151, %158 : vector<8x32xf32>
    %160 = vector.broadcast %114 : vector<1x32xf32> to vector<8x32xf32>
    %161 = arith.mulf %110, %160 : vector<8x32xf32>
    %162 = vector.broadcast %4 : vector<1x32xf32> to vector<8x32xf32>
    %163 = arith.addf %161, %162 : vector<8x32xf32>
    %164 = vector.broadcast %111 : vector<1x32xf32> to vector<8x32xf32>
    %165 = arith.mulf %35, %164 : vector<8x32xf32>
    %166 = arith.addf %163, %165 : vector<8x32xf32>
    %167 = vector.broadcast %112 : vector<1x32xf32> to vector<8x32xf32>
    %168 = arith.mulf %60, %167 : vector<8x32xf32>
    %169 = arith.addf %166, %168 : vector<8x32xf32>
    %170 = vector.broadcast %113 : vector<1x32xf32> to vector<8x32xf32>
    %171 = arith.mulf %85, %170 : vector<8x32xf32>
    %172 = arith.addf %169, %171 : vector<8x32xf32>
    %cst_62 = arith.constant 5.000000e-01 : f32
    %173 = vector.broadcast %cst_62 : f32 to vector<8x32xf32>
    %174 = arith.mulf %173, %172 : vector<8x32xf32>
    %175 = math.tanh %174 : vector<8x32xf32>
    %cst_63 = arith.constant 1.000000e+00 : f32
    %176 = vector.broadcast %cst_63 : f32 to vector<8x32xf32>
    %177 = arith.addf %175, %176 : vector<8x32xf32>
    %cst_64 = arith.constant 5.000000e-01 : f32
    %178 = vector.broadcast %cst_64 : f32 to vector<8x32xf32>
    %179 = arith.mulf %178, %177 : vector<8x32xf32>
    %180 = arith.mulf %172, %179 : vector<8x32xf32>
    %cst_65 = arith.constant 0.000000e+00 : f32
    %181 = vector.broadcast %cst_65 : f32 to vector<8x512xf32>
    %cst_66 = arith.constant dense<0.000000e+00> : vector<8x32xf32>
    %182 = tpu.matmul %126, %5, %cst_66 {dimension_numbers = #tpu.dot_dimension_numbers<[1], [0], [0], [1], [0, 0, 1, 1], [], []>} : vector<8x32xf32>, vector<32x32xf32>, vector<8x32xf32> -> vector<8x32xf32>
    %183 = vector.broadcast %6 : vector<1x32xf32> to vector<8x32xf32>
    %184 = arith.addf %182, %183 : vector<8x32xf32>
    %cst_67 = arith.constant 0.000000e+00 : f32
    %185 = vector.broadcast %cst_67 : f32 to vector<8x32xf32>
    %186 = arith.maximumf %184, %185 : vector<8x32xf32>
    %187 = math.absf %184 : vector<8x32xf32>
    %cst_68 = arith.constant 0.000000e+00 : f32
    %188 = vector.broadcast %cst_68 : f32 to vector<8x32xf32>
    %189 = arith.subf %188, %187 : vector<8x32xf32>
    %190 = math.exp %189 : vector<8x32xf32>
    %cst_69 = arith.constant 1.000000e+00 : f32
    %191 = vector.broadcast %cst_69 : f32 to vector<8x32xf32>
    %192 = arith.addf %191, %190 : vector<8x32xf32>
    %193 = math.log %192 : vector<8x32xf32>
    %194 = arith.addf %186, %193 : vector<8x32xf32>
    %195 = tpu.concatenate %194, %194, %194, %194, %194, %194, %194, %194, %194, %194, %194, %194, %194, %194, %194, %194 in 1 : vector<8x32xf32>, vector<8x32xf32>, vector<8x32xf32>, vector<8x32xf32>, vector<8x32xf32>, vector<8x32xf32>, vector<8x32xf32>, vector<8x32xf32>, vector<8x32xf32>, vector<8x32xf32>, vector<8x32xf32>, vector<8x32xf32>, vector<8x32xf32>, vector<8x32xf32>, vector<8x32xf32>, vector<8x32xf32> -> vector<8x512xf32>
    %196 = arith.mulf %194, %126 : vector<8x32xf32>
    %197 = tpu.concatenate %196, %196, %196, %196, %196, %196, %196, %196, %196, %196, %196, %196, %196, %196, %196, %196 in 1 : vector<8x32xf32>, vector<8x32xf32>, vector<8x32xf32>, vector<8x32xf32>, vector<8x32xf32>, vector<8x32xf32>, vector<8x32xf32>, vector<8x32xf32>, vector<8x32xf32>, vector<8x32xf32>, vector<8x32xf32>, vector<8x32xf32>, vector<8x32xf32>, vector<8x32xf32>, vector<8x32xf32>, vector<8x32xf32> -> vector<8x512xf32>
    %cst_70 = arith.constant dense<0.000000e+00> : vector<8x16xf32>
    %198 = tpu.matmul %126, %7, %cst_70 {dimension_numbers = #tpu.dot_dimension_numbers<[1], [0], [0], [1], [0, 0, 1, 1], [], []>} : vector<8x32xf32>, vector<32x16xf32>, vector<8x16xf32> -> vector<8x16xf32>
    %cst_71 = arith.constant dense<0.000000e+00> : vector<8x512xf32>
    %199 = tpu.matmul %198, %10, %cst_71 {dimension_numbers = #tpu.dot_dimension_numbers<[1], [0], [0], [1], [0, 0, 1, 1], [], []>} : vector<8x16xf32>, vector<16x512xf32>, vector<8x512xf32> -> vector<8x512xf32>
    %200 = vector.broadcast %8 : vector<1x512xf32> to vector<8x512xf32>
    %201 = arith.mulf %195, %200 : vector<8x512xf32>
    %202 = math.exp %201 : vector<8x512xf32>
    %203 = arith.mulf %202, %181 : vector<8x512xf32>
    %204 = arith.mulf %197, %199 : vector<8x512xf32>
    %205 = arith.addf %203, %204 : vector<8x512xf32>
    %cst_72 = arith.constant dense<0.000000e+00> : vector<8x32xf32>
    %206 = tpu.matmul %141, %5, %cst_72 {dimension_numbers = #tpu.dot_dimension_numbers<[1], [0], [0], [1], [0, 0, 1, 1], [], []>} : vector<8x32xf32>, vector<32x32xf32>, vector<8x32xf32> -> vector<8x32xf32>
    %207 = vector.broadcast %6 : vector<1x32xf32> to vector<8x32xf32>
    %208 = arith.addf %206, %207 : vector<8x32xf32>
    %cst_73 = arith.constant 0.000000e+00 : f32
    %209 = vector.broadcast %cst_73 : f32 to vector<8x32xf32>
    %210 = arith.maximumf %208, %209 : vector<8x32xf32>
    %211 = math.absf %208 : vector<8x32xf32>
    %cst_74 = arith.constant 0.000000e+00 : f32
    %212 = vector.broadcast %cst_74 : f32 to vector<8x32xf32>
    %213 = arith.subf %212, %211 : vector<8x32xf32>
    %214 = math.exp %213 : vector<8x32xf32>
    %cst_75 = arith.constant 1.000000e+00 : f32
    %215 = vector.broadcast %cst_75 : f32 to vector<8x32xf32>
    %216 = arith.addf %215, %214 : vector<8x32xf32>
    %217 = math.log %216 : vector<8x32xf32>
    %218 = arith.addf %210, %217 : vector<8x32xf32>
    %219 = tpu.concatenate %218, %218, %218, %218, %218, %218, %218, %218, %218, %218, %218, %218, %218, %218, %218, %218 in 1 : vector<8x32xf32>, vector<8x32xf32>, vector<8x32xf32>, vector<8x32xf32>, vector<8x32xf32>, vector<8x32xf32>, vector<8x32xf32>, vector<8x32xf32>, vector<8x32xf32>, vector<8x32xf32>, vector<8x32xf32>, vector<8x32xf32>, vector<8x32xf32>, vector<8x32xf32>, vector<8x32xf32>, vector<8x32xf32> -> vector<8x512xf32>
    %220 = arith.mulf %218, %141 : vector<8x32xf32>
    %221 = tpu.concatenate %220, %220, %220, %220, %220, %220, %220, %220, %220, %220, %220, %220, %220, %220, %220, %220 in 1 : vector<8x32xf32>, vector<8x32xf32>, vector<8x32xf32>, vector<8x32xf32>, vector<8x32xf32>, vector<8x32xf32>, vector<8x32xf32>, vector<8x32xf32>, vector<8x32xf32>, vector<8x32xf32>, vector<8x32xf32>, vector<8x32xf32>, vector<8x32xf32>, vector<8x32xf32>, vector<8x32xf32>, vector<8x32xf32> -> vector<8x512xf32>
    %cst_76 = arith.constant dense<0.000000e+00> : vector<8x16xf32>
    %222 = tpu.matmul %141, %7, %cst_76 {dimension_numbers = #tpu.dot_dimension_numbers<[1], [0], [0], [1], [0, 0, 1, 1], [], []>} : vector<8x32xf32>, vector<32x16xf32>, vector<8x16xf32> -> vector<8x16xf32>
    %cst_77 = arith.constant dense<0.000000e+00> : vector<8x512xf32>
    %223 = tpu.matmul %222, %10, %cst_77 {dimension_numbers = #tpu.dot_dimension_numbers<[1], [0], [0], [1], [0, 0, 1, 1], [], []>} : vector<8x16xf32>, vector<16x512xf32>, vector<8x512xf32> -> vector<8x512xf32>
    %224 = vector.broadcast %8 : vector<1x512xf32> to vector<8x512xf32>
    %225 = arith.mulf %219, %224 : vector<8x512xf32>
    %226 = math.exp %225 : vector<8x512xf32>
    %227 = arith.mulf %226, %205 : vector<8x512xf32>
    %228 = arith.mulf %221, %223 : vector<8x512xf32>
    %229 = arith.addf %227, %228 : vector<8x512xf32>
    %cst_78 = arith.constant dense<0.000000e+00> : vector<8x32xf32>
    %230 = tpu.matmul %159, %5, %cst_78 {dimension_numbers = #tpu.dot_dimension_numbers<[1], [0], [0], [1], [0, 0, 1, 1], [], []>} : vector<8x32xf32>, vector<32x32xf32>, vector<8x32xf32> -> vector<8x32xf32>
    %231 = vector.broadcast %6 : vector<1x32xf32> to vector<8x32xf32>
    %232 = arith.addf %230, %231 : vector<8x32xf32>
    %cst_79 = arith.constant 0.000000e+00 : f32
    %233 = vector.broadcast %cst_79 : f32 to vector<8x32xf32>
    %234 = arith.maximumf %232, %233 : vector<8x32xf32>
    %235 = math.absf %232 : vector<8x32xf32>
    %cst_80 = arith.constant 0.000000e+00 : f32
    %236 = vector.broadcast %cst_80 : f32 to vector<8x32xf32>
    %237 = arith.subf %236, %235 : vector<8x32xf32>
    %238 = math.exp %237 : vector<8x32xf32>
    %cst_81 = arith.constant 1.000000e+00 : f32
    %239 = vector.broadcast %cst_81 : f32 to vector<8x32xf32>
    %240 = arith.addf %239, %238 : vector<8x32xf32>
    %241 = math.log %240 : vector<8x32xf32>
    %242 = arith.addf %234, %241 : vector<8x32xf32>
    %243 = tpu.concatenate %242, %242, %242, %242, %242, %242, %242, %242, %242, %242, %242, %242, %242, %242, %242, %242 in 1 : vector<8x32xf32>, vector<8x32xf32>, vector<8x32xf32>, vector<8x32xf32>, vector<8x32xf32>, vector<8x32xf32>, vector<8x32xf32>, vector<8x32xf32>, vector<8x32xf32>, vector<8x32xf32>, vector<8x32xf32>, vector<8x32xf32>, vector<8x32xf32>, vector<8x32xf32>, vector<8x32xf32>, vector<8x32xf32> -> vector<8x512xf32>
    %244 = arith.mulf %242, %159 : vector<8x32xf32>
    %245 = tpu.concatenate %244, %244, %244, %244, %244, %244, %244, %244, %244, %244, %244, %244, %244, %244, %244, %244 in 1 : vector<8x32xf32>, vector<8x32xf32>, vector<8x32xf32>, vector<8x32xf32>, vector<8x32xf32>, vector<8x32xf32>, vector<8x32xf32>, vector<8x32xf32>, vector<8x32xf32>, vector<8x32xf32>, vector<8x32xf32>, vector<8x32xf32>, vector<8x32xf32>, vector<8x32xf32>, vector<8x32xf32>, vector<8x32xf32> -> vector<8x512xf32>
    %cst_82 = arith.constant dense<0.000000e+00> : vector<8x16xf32>
    %246 = tpu.matmul %159, %7, %cst_82 {dimension_numbers = #tpu.dot_dimension_numbers<[1], [0], [0], [1], [0, 0, 1, 1], [], []>} : vector<8x32xf32>, vector<32x16xf32>, vector<8x16xf32> -> vector<8x16xf32>
    %cst_83 = arith.constant dense<0.000000e+00> : vector<8x512xf32>
    %247 = tpu.matmul %246, %10, %cst_83 {dimension_numbers = #tpu.dot_dimension_numbers<[1], [0], [0], [1], [0, 0, 1, 1], [], []>} : vector<8x16xf32>, vector<16x512xf32>, vector<8x512xf32> -> vector<8x512xf32>
    %248 = vector.broadcast %8 : vector<1x512xf32> to vector<8x512xf32>
    %249 = arith.mulf %243, %248 : vector<8x512xf32>
    %250 = math.exp %249 : vector<8x512xf32>
    %251 = arith.mulf %250, %229 : vector<8x512xf32>
    %252 = arith.mulf %245, %247 : vector<8x512xf32>
    %253 = arith.addf %251, %252 : vector<8x512xf32>
    %cst_84 = arith.constant dense<0.000000e+00> : vector<8x32xf32>
    %254 = tpu.matmul %180, %5, %cst_84 {dimension_numbers = #tpu.dot_dimension_numbers<[1], [0], [0], [1], [0, 0, 1, 1], [], []>} : vector<8x32xf32>, vector<32x32xf32>, vector<8x32xf32> -> vector<8x32xf32>
    %255 = vector.broadcast %6 : vector<1x32xf32> to vector<8x32xf32>
    %256 = arith.addf %254, %255 : vector<8x32xf32>
    %cst_85 = arith.constant 0.000000e+00 : f32
    %257 = vector.broadcast %cst_85 : f32 to vector<8x32xf32>
    %258 = arith.maximumf %256, %257 : vector<8x32xf32>
    %259 = math.absf %256 : vector<8x32xf32>
    %cst_86 = arith.constant 0.000000e+00 : f32
    %260 = vector.broadcast %cst_86 : f32 to vector<8x32xf32>
    %261 = arith.subf %260, %259 : vector<8x32xf32>
    %262 = math.exp %261 : vector<8x32xf32>
    %cst_87 = arith.constant 1.000000e+00 : f32
    %263 = vector.broadcast %cst_87 : f32 to vector<8x32xf32>
    %264 = arith.addf %263, %262 : vector<8x32xf32>
    %265 = math.log %264 : vector<8x32xf32>
    %266 = arith.addf %258, %265 : vector<8x32xf32>
    %267 = tpu.concatenate %266, %266, %266, %266, %266, %266, %266, %266, %266, %266, %266, %266, %266, %266, %266, %266 in 1 : vector<8x32xf32>, vector<8x32xf32>, vector<8x32xf32>, vector<8x32xf32>, vector<8x32xf32>, vector<8x32xf32>, vector<8x32xf32>, vector<8x32xf32>, vector<8x32xf32>, vector<8x32xf32>, vector<8x32xf32>, vector<8x32xf32>, vector<8x32xf32>, vector<8x32xf32>, vector<8x32xf32>, vector<8x32xf32> -> vector<8x512xf32>
    %268 = arith.mulf %266, %180 : vector<8x32xf32>
    %269 = tpu.concatenate %268, %268, %268, %268, %268, %268, %268, %268, %268, %268, %268, %268, %268, %268, %268, %268 in 1 : vector<8x32xf32>, vector<8x32xf32>, vector<8x32xf32>, vector<8x32xf32>, vector<8x32xf32>, vector<8x32xf32>, vector<8x32xf32>, vector<8x32xf32>, vector<8x32xf32>, vector<8x32xf32>, vector<8x32xf32>, vector<8x32xf32>, vector<8x32xf32>, vector<8x32xf32>, vector<8x32xf32>, vector<8x32xf32> -> vector<8x512xf32>
    %cst_88 = arith.constant dense<0.000000e+00> : vector<8x16xf32>
    %270 = tpu.matmul %180, %7, %cst_88 {dimension_numbers = #tpu.dot_dimension_numbers<[1], [0], [0], [1], [0, 0, 1, 1], [], []>} : vector<8x32xf32>, vector<32x16xf32>, vector<8x16xf32> -> vector<8x16xf32>
    %cst_89 = arith.constant dense<0.000000e+00> : vector<8x512xf32>
    %271 = tpu.matmul %270, %10, %cst_89 {dimension_numbers = #tpu.dot_dimension_numbers<[1], [0], [0], [1], [0, 0, 1, 1], [], []>} : vector<8x16xf32>, vector<16x512xf32>, vector<8x512xf32> -> vector<8x512xf32>
    %272 = vector.broadcast %8 : vector<1x512xf32> to vector<8x512xf32>
    %273 = arith.mulf %267, %272 : vector<8x512xf32>
    %274 = math.exp %273 : vector<8x512xf32>
    %275 = arith.mulf %274, %253 : vector<8x512xf32>
    %276 = arith.mulf %269, %271 : vector<8x512xf32>
    %277 = arith.addf %275, %276 : vector<8x512xf32>
    %c0_90 = arith.constant 0 : index
    %c0_91 = arith.constant 0 : index
    %278 = vector.load %arg11[%c0_90, %c0_91] : memref<32x16xf32, #tpu.memory_space<vmem>>, vector<32x16xf32>
    %cst_92 = arith.constant dense<0.000000e+00> : vector<8x16xf32>
    %279 = tpu.matmul %180, %278, %cst_92 {dimension_numbers = #tpu.dot_dimension_numbers<[1], [0], [0], [1], [0, 0, 1, 1], [], []>} : vector<8x32xf32>, vector<32x16xf32>, vector<8x16xf32> -> vector<8x16xf32>
    %cst_93 = arith.constant dense<0.000000e+00> : vector<8x512xf32>
    %280 = tpu.matmul %279, %10, %cst_93 {dimension_numbers = #tpu.dot_dimension_numbers<[1], [0], [0], [1], [0, 0, 1, 1], [], []>} : vector<8x16xf32>, vector<16x512xf32>, vector<8x512xf32> -> vector<8x512xf32>
    %281 = vector.broadcast %9 : vector<1x32xf32> to vector<8x32xf32>
    %282 = arith.mulf %180, %281 : vector<8x32xf32>
    %283 = arith.mulf %277, %280 : vector<8x512xf32>
    %c0_94 = arith.constant 0 : index
    %c0_95 = arith.constant 0 : index
    %284 = vector.load %arg15[%c0_94, %c0_95] : memref<512x32xf32, #tpu.memory_space<vmem>>, vector<512x32xf32>
    %cst_96 = arith.constant dense<0.000000e+00> : vector<8x32xf32>
    %285 = tpu.matmul %283, %284, %cst_96 {dimension_numbers = #tpu.dot_dimension_numbers<[1], [0], [0], [1], [0, 0, 1, 1], [], []>} : vector<8x512xf32>, vector<512x32xf32>, vector<8x32xf32> -> vector<8x32xf32>
    %286 = arith.addf %282, %285 : vector<8x32xf32>
    %c0_97 = arith.constant 0 : index
    %c0_98 = arith.constant 0 : index
    %287 = vector.load %arg5[%c0_97, %c0_98] : memref<32x32xf32, #tpu.memory_space<vmem>>, vector<32x32xf32>
    %cst_99 = arith.constant dense<0.000000e+00> : vector<8x32xf32>
    %288 = tpu.matmul %109, %287, %cst_99 {dimension_numbers = #tpu.dot_dimension_numbers<[1], [0], [0], [1], [0, 0, 1, 1], [], []>} : vector<8x32xf32>, vector<32x32xf32>, vector<8x32xf32> -> vector<8x32xf32>
    %cst_100 = arith.constant 5.000000e-01 : f32
    %289 = vector.broadcast %cst_100 : f32 to vector<8x32xf32>
    %290 = arith.mulf %289, %288 : vector<8x32xf32>
    %291 = math.tanh %290 : vector<8x32xf32>
    %cst_101 = arith.constant 1.000000e+00 : f32
    %292 = vector.broadcast %cst_101 : f32 to vector<8x32xf32>
    %293 = arith.addf %291, %292 : vector<8x32xf32>
    %cst_102 = arith.constant 5.000000e-01 : f32
    %294 = vector.broadcast %cst_102 : f32 to vector<8x32xf32>
    %295 = arith.mulf %294, %293 : vector<8x32xf32>
    %296 = arith.mulf %288, %295 : vector<8x32xf32>
    %297 = arith.mulf %286, %296 : vector<8x32xf32>
    %c0_103 = arith.constant 0 : index
    %c0_104 = arith.constant 0 : index
    %298 = vector.load %arg16[%c0_103, %c0_104] : memref<32x32xf32, #tpu.memory_space<vmem>>, vector<32x32xf32>
    %cst_105 = arith.constant dense<0.000000e+00> : vector<8x32xf32>
    %299 = tpu.matmul %297, %298, %cst_105 {dimension_numbers = #tpu.dot_dimension_numbers<[1], [0], [0], [1], [0, 0, 1, 1], [], []>} : vector<8x32xf32>, vector<32x32xf32>, vector<8x32xf32> -> vector<8x32xf32>
    %c0_106 = arith.constant 0 : index
    %c0_107 = arith.constant 0 : index
    %300 = vector.load %arg17[%c0_106, %c0_107] : memref<8x32xf32, #tpu.memory_space<vmem>>, vector<8x32xf32>
    tpu.vector_store %arg17[%c0_106, %c0_107], %299 {strides = array<i32>} : memref<8x32xf32, #tpu.memory_space<vmem>>, vector<8x32xf32>,
    return
  }
  func.func @transform_0(%arg0: i32) -> (i32, i32, i32) {
    %c0_i32 = arith.constant 0 : i32
    %c0_i32_0 = arith.constant 0 : i32
    %c0_i32_1 = arith.constant 0 : i32
    return %c0_i32, %arg0, %c0_i32_0 : i32, i32, i32
  }
  func.func @transform_1(%arg0: i32) -> (i32, i32) {
    %c0_i32 = arith.constant 0 : i32
    %c0_i32_0 = arith.constant 0 : i32
    %c0_i32_1 = arith.constant 0 : i32
    return %c0_i32, %c0_i32_0 : i32, i32
  }
  func.func @transform_2(%arg0: i32) -> (i32, i32) {
    %c0_i32 = arith.constant 0 : i32
    %c0_i32_0 = arith.constant 0 : i32
    %c0_i32_1 = arith.constant 0 : i32
    return %c0_i32, %c0_i32_0 : i32, i32
  }
  func.func @transform_3(%arg0: i32) -> (i32, i32) {
    %c0_i32 = arith.constant 0 : i32
    %c0_i32_0 = arith.constant 0 : i32
    %c0_i32_1 = arith.constant 0 : i32
    return %c0_i32, %c0_i32_0 : i32, i32
  }
  func.func @transform_4(%arg0: i32) -> (i32, i32) {
    %c0_i32 = arith.constant 0 : i32
    %c0_i32_0 = arith.constant 0 : i32
    %c0_i32_1 = arith.constant 0 : i32
    return %c0_i32, %c0_i32_0 : i32, i32
  }
  func.func @transform_5(%arg0: i32) -> (i32, i32) {
    %c0_i32 = arith.constant 0 : i32
    %c0_i32_0 = arith.constant 0 : i32
    %c0_i32_1 = arith.constant 0 : i32
    return %c0_i32, %c0_i32_0 : i32, i32
  }
  func.func @transform_6(%arg0: i32) -> (i32, i32) {
    %c0_i32 = arith.constant 0 : i32
    %c0_i32_0 = arith.constant 0 : i32
    %c0_i32_1 = arith.constant 0 : i32
    return %c0_i32, %c0_i32_0 : i32, i32
  }
  func.func @transform_7(%arg0: i32) -> (i32, i32) {
    %c0_i32 = arith.constant 0 : i32
    %c0_i32_0 = arith.constant 0 : i32
    %c0_i32_1 = arith.constant 0 : i32
    return %c0_i32, %c0_i32_0 : i32, i32
  }
  func.func @transform_8(%arg0: i32) -> (i32, i32) {
    %c0_i32 = arith.constant 0 : i32
    %c0_i32_0 = arith.constant 0 : i32
    %c0_i32_1 = arith.constant 0 : i32
    return %c0_i32, %c0_i32_0 : i32, i32
  }
  func.func @transform_9(%arg0: i32) -> (i32, i32) {
    %c0_i32 = arith.constant 0 : i32
    %c0_i32_0 = arith.constant 0 : i32
    %c0_i32_1 = arith.constant 0 : i32
    return %c0_i32, %c0_i32_0 : i32, i32
  }
  func.func @transform_10(%arg0: i32) -> (i32, i32) {
    %c0_i32 = arith.constant 0 : i32
    %c0_i32_0 = arith.constant 0 : i32
    %c0_i32_1 = arith.constant 0 : i32
    return %c0_i32, %c0_i32_0 : i32, i32
  }
  func.func @transform_11(%arg0: i32) -> (i32, i32) {
    %c0_i32 = arith.constant 0 : i32
    %c0_i32_0 = arith.constant 0 : i32
    %c0_i32_1 = arith.constant 0 : i32
    return %c0_i32, %c0_i32_0 : i32, i32
  }
  func.func @transform_12(%arg0: i32) -> (i32, i32) {
    %c0_i32 = arith.constant 0 : i32
    %c0_i32_0 = arith.constant 0 : i32
    %c0_i32_1 = arith.constant 0 : i32
    return %c0_i32, %c0_i32_0 : i32, i32
  }
  func.func @transform_13(%arg0: i32) -> (i32, i32) {
    %c0_i32 = arith.constant 0 : i32
    %c0_i32_0 = arith.constant 0 : i32
    %c0_i32_1 = arith.constant 0 : i32
    return %c0_i32, %c0_i32_0 : i32, i32
  }
  func.func @transform_14(%arg0: i32) -> (i32, i32) {
    %c0_i32 = arith.constant 0 : i32
    %c0_i32_0 = arith.constant 0 : i32
    %c0_i32_1 = arith.constant 0 : i32
    return %c0_i32, %c0_i32_0 : i32, i32
  }
  func.func @transform_15(%arg0: i32) -> (i32, i32) {
    %c0_i32 = arith.constant 0 : i32
    %c0_i32_0 = arith.constant 0 : i32
    %c0_i32_1 = arith.constant 0 : i32
    return %c0_i32, %c0_i32_0 : i32, i32
  }
  func.func @transform_16(%arg0: i32) -> (i32, i32) {
    %c0_i32 = arith.constant 0 : i32
    %c0_i32_0 = arith.constant 0 : i32
    return %arg0, %c0_i32 : i32, i32
  }
}

module attributes {stable_mosaic.version = 11 : i64} {
  func.func @_tail_kernel(%arg0: i32, %arg1: memref<8x32xf32, #tpu.memory_space<vmem>>, %arg2: memref<8x32xf32, #tpu.memory_space<vmem>>, %arg3: memref<8x32xf32, #tpu.memory_space<vmem>>, %arg4: memref<8x32xf32, #tpu.memory_space<vmem>>, %arg5: memref<8x32xf32, #tpu.memory_space<vmem>>, %arg6: memref<8x32xf32, #tpu.memory_space<vmem>>, %arg7: memref<1x32xf32, #tpu.memory_space<vmem>>, %arg8: memref<1x32xf32, #tpu.memory_space<vmem>>, %arg9: memref<1x32xf32, #tpu.memory_space<vmem>>, %arg10: memref<1x32xf32, #tpu.memory_space<vmem>>, %arg11: memref<1x32xf32, #tpu.memory_space<vmem>>, %arg12: memref<1x32xf32, #tpu.memory_space<vmem>>, %arg13: memref<32x32xf32, #tpu.memory_space<vmem>>, %arg14: memref<1x32xf32, #tpu.memory_space<vmem>>, %arg15: memref<32x32xf32, #tpu.memory_space<vmem>>, %arg16: memref<1x32xf32, #tpu.memory_space<vmem>>, %arg17: memref<32x32xf32, #tpu.memory_space<vmem>>, %arg18: memref<1x32xf32, #tpu.memory_space<vmem>>, %arg19: memref<32x32xf32, #tpu.memory_space<vmem>>, %arg20: memref<1x32xf32, #tpu.memory_space<vmem>>, %arg21: memref<1x32xf32, #tpu.memory_space<vmem>>, %arg22: memref<1x32xf32, #tpu.memory_space<vmem>>, %arg23: memref<8x32xf32, #tpu.memory_space<vmem>>) attributes {dimension_semantics = [#tpu.dimension_semantics<parallel>], iteration_bounds = array<i64: 2>, scalar_prefetch = 0 : i64, scratch_operands = 0 : i64, tpu.core_type = #tpu.core_type<tc>, window_params = [{transform_indices = @transform_0, window_bounds = array<i64: 8, 32>}, {transform_indices = @transform_1, window_bounds = array<i64: 8, 32>}, {transform_indices = @transform_2, window_bounds = array<i64: 8, 32>}, {transform_indices = @transform_3, window_bounds = array<i64: 8, 32>}, {transform_indices = @transform_4, window_bounds = array<i64: 8, 32>}, {transform_indices = @transform_5, window_bounds = array<i64: 8, 32>}, {pipeline_mode = #tpu.pipeline_mode<synchronous>, transform_indices = @transform_6, window_bounds = array<i64: 1, 32>}, {pipeline_mode = #tpu.pipeline_mode<synchronous>, transform_indices = @transform_7, window_bounds = array<i64: 1, 32>}, {pipeline_mode = #tpu.pipeline_mode<synchronous>, transform_indices = @transform_8, window_bounds = array<i64: 1, 32>}, {pipeline_mode = #tpu.pipeline_mode<synchronous>, transform_indices = @transform_9, window_bounds = array<i64: 1, 32>}, {pipeline_mode = #tpu.pipeline_mode<synchronous>, transform_indices = @transform_10, window_bounds = array<i64: 1, 32>}, {pipeline_mode = #tpu.pipeline_mode<synchronous>, transform_indices = @transform_11, window_bounds = array<i64: 1, 32>}, {pipeline_mode = #tpu.pipeline_mode<synchronous>, transform_indices = @transform_12, window_bounds = array<i64: 32, 32>}, {pipeline_mode = #tpu.pipeline_mode<synchronous>, transform_indices = @transform_13, window_bounds = array<i64: 1, 32>}, {pipeline_mode = #tpu.pipeline_mode<synchronous>, transform_indices = @transform_14, window_bounds = array<i64: 32, 32>}, {pipeline_mode = #tpu.pipeline_mode<synchronous>, transform_indices = @transform_15, window_bounds = array<i64: 1, 32>}, {pipeline_mode = #tpu.pipeline_mode<synchronous>, transform_indices = @transform_16, window_bounds = array<i64: 32, 32>}, {pipeline_mode = #tpu.pipeline_mode<synchronous>, transform_indices = @transform_17, window_bounds = array<i64: 1, 32>}, {pipeline_mode = #tpu.pipeline_mode<synchronous>, transform_indices = @transform_18, window_bounds = array<i64: 32, 32>}, {pipeline_mode = #tpu.pipeline_mode<synchronous>, transform_indices = @transform_19, window_bounds = array<i64: 1, 32>}, {pipeline_mode = #tpu.pipeline_mode<synchronous>, transform_indices = @transform_20, window_bounds = array<i64: 1, 32>}, {pipeline_mode = #tpu.pipeline_mode<synchronous>, transform_indices = @transform_21, window_bounds = array<i64: 1, 32>}, {transform_indices = @transform_22, window_bounds = array<i64: 8, 32>}]} {
    %c0 = arith.constant 0 : index
    %c0_0 = arith.constant 0 : index
    %0 = vector.load %arg1[%c0, %c0_0] : memref<8x32xf32, #tpu.memory_space<vmem>>, vector<8x32xf32>
    %c0_1 = arith.constant 0 : index
    %c0_2 = arith.constant 0 : index
    %1 = vector.load %arg2[%c0_1, %c0_2] : memref<8x32xf32, #tpu.memory_space<vmem>>, vector<8x32xf32>
    %c0_3 = arith.constant 0 : index
    %c0_4 = arith.constant 0 : index
    %2 = vector.load %arg3[%c0_3, %c0_4] : memref<8x32xf32, #tpu.memory_space<vmem>>, vector<8x32xf32>
    %c0_5 = arith.constant 0 : index
    %c0_6 = arith.constant 0 : index
    %3 = vector.load %arg4[%c0_5, %c0_6] : memref<8x32xf32, #tpu.memory_space<vmem>>, vector<8x32xf32>
    %cst = arith.constant 9.99999997E-7 : f32
    %4 = vector.broadcast %cst : f32 to vector<8x32xf32>
    %5 = arith.addf %3, %4 : vector<8x32xf32>
    %6 = arith.divf %2, %5 : vector<8x32xf32>
    %7 = arith.addf %1, %6 : vector<8x32xf32>
    %c0_7 = arith.constant 0 : index
    %c0_8 = arith.constant 0 : index
    %8 = vector.load %arg7[%c0_7, %c0_8] : memref<1x32xf32, #tpu.memory_space<vmem>>, vector<1x32xf32>
    %9 = vector.broadcast %8 : vector<1x32xf32> to vector<8x32xf32>
    %10 = arith.mulf %7, %9 : vector<8x32xf32>
    %c0_9 = arith.constant 0 : index
    %c0_10 = arith.constant 0 : index
    %11 = vector.load %arg8[%c0_9, %c0_10] : memref<1x32xf32, #tpu.memory_space<vmem>>, vector<1x32xf32>
    %12 = vector.broadcast %11 : vector<1x32xf32> to vector<8x32xf32>
    %13 = arith.addf %10, %12 : vector<8x32xf32>
    %cst_11 = arith.constant 0.000000e+00 : f32
    %14 = vector.broadcast %cst_11 : f32 to vector<8x32xf32>
    %15 = arith.maximumf %13, %14 : vector<8x32xf32>
    %16 = arith.addf %0, %0 : vector<8x32xf32>
    %17 = arith.addf %16, %15 : vector<8x32xf32>
    %c0_12 = arith.constant 0 : index
    %c0_13 = arith.constant 0 : index
    %18 = vector.load %arg9[%c0_12, %c0_13] : memref<1x32xf32, #tpu.memory_space<vmem>>, vector<1x32xf32>
    %c0_14 = arith.constant 0 : index
    %c0_15 = arith.constant 0 : index
    %19 = vector.load %arg10[%c0_14, %c0_15] : memref<1x32xf32, #tpu.memory_space<vmem>>, vector<1x32xf32>
    %cst_16 = arith.constant dense<0.000000e+00> : vector<8xf32>
    %20 = vector.multi_reduction <add>, %17, %cst_16 [1] : vector<8x32xf32> to vector<8xf32>
    %21 = vector.shape_cast %20 : vector<8xf32> to vector<8x1xf32>
    %cst_17 = arith.constant 3.200000e+01 : f32
    %22 = vector.broadcast %cst_17 : f32 to vector<8x1xf32>
    %23 = arith.divf %21, %22 : vector<8x1xf32>
    %24 = vector.broadcast %23 : vector<8x1xf32> to vector<8x32xf32>
    %25 = arith.subf %17, %24 : vector<8x32xf32>
    %26 = arith.mulf %25, %25 : vector<8x32xf32>
    %cst_18 = arith.constant dense<0.000000e+00> : vector<8xf32>
    %27 = vector.multi_reduction <add>, %26, %cst_18 [1] : vector<8x32xf32> to vector<8xf32>
    %28 = vector.shape_cast %27 : vector<8xf32> to vector<8x1xf32>
    %cst_19 = arith.constant 3.200000e+01 : f32
    %29 = vector.broadcast %cst_19 : f32 to vector<8x1xf32>
    %30 = arith.divf %28, %29 : vector<8x1xf32>
    %31 = vector.broadcast %23 : vector<8x1xf32> to vector<8x32xf32>
    %32 = arith.subf %17, %31 : vector<8x32xf32>
    %cst_20 = arith.constant 9.99999974E-6 : f32
    %33 = vector.broadcast %cst_20 : f32 to vector<8x1xf32>
    %34 = arith.addf %30, %33 : vector<8x1xf32>
    %35 = math.rsqrt %34 : vector<8x1xf32>
    %36 = vector.broadcast %35 : vector<8x1xf32> to vector<8x32xf32>
    %37 = arith.mulf %32, %36 : vector<8x32xf32>
    %38 = vector.broadcast %18 : vector<1x32xf32> to vector<8x32xf32>
    %39 = arith.mulf %37, %38 : vector<8x32xf32>
    %40 = vector.broadcast %19 : vector<1x32xf32> to vector<8x32xf32>
    %41 = arith.addf %39, %40 : vector<8x32xf32>
    %c0_21 = arith.constant 0 : index
    %c0_22 = arith.constant 0 : index
    %42 = vector.load %arg5[%c0_21, %c0_22] : memref<8x32xf32, #tpu.memory_space<vmem>>, vector<8x32xf32>
    %c0_23 = arith.constant 0 : index
    %c0_24 = arith.constant 0 : index
    %43 = vector.load %arg11[%c0_23, %c0_24] : memref<1x32xf32, #tpu.memory_space<vmem>>, vector<1x32xf32>
    %c0_25 = arith.constant 0 : index
    %c0_26 = arith.constant 0 : index
    %44 = vector.load %arg12[%c0_25, %c0_26] : memref<1x32xf32, #tpu.memory_space<vmem>>, vector<1x32xf32>
    %cst_27 = arith.constant dense<0.000000e+00> : vector<8xf32>
    %45 = vector.multi_reduction <add>, %42, %cst_27 [1] : vector<8x32xf32> to vector<8xf32>
    %46 = vector.shape_cast %45 : vector<8xf32> to vector<8x1xf32>
    %cst_28 = arith.constant 3.200000e+01 : f32
    %47 = vector.broadcast %cst_28 : f32 to vector<8x1xf32>
    %48 = arith.divf %46, %47 : vector<8x1xf32>
    %49 = vector.broadcast %48 : vector<8x1xf32> to vector<8x32xf32>
    %50 = arith.subf %42, %49 : vector<8x32xf32>
    %51 = arith.mulf %50, %50 : vector<8x32xf32>
    %cst_29 = arith.constant dense<0.000000e+00> : vector<8xf32>
    %52 = vector.multi_reduction <add>, %51, %cst_29 [1] : vector<8x32xf32> to vector<8xf32>
    %53 = vector.shape_cast %52 : vector<8xf32> to vector<8x1xf32>
    %cst_30 = arith.constant 3.200000e+01 : f32
    %54 = vector.broadcast %cst_30 : f32 to vector<8x1xf32>
    %55 = arith.divf %53, %54 : vector<8x1xf32>
    %56 = vector.broadcast %48 : vector<8x1xf32> to vector<8x32xf32>
    %57 = arith.subf %42, %56 : vector<8x32xf32>
    %cst_31 = arith.constant 9.99999974E-6 : f32
    %58 = vector.broadcast %cst_31 : f32 to vector<8x1xf32>
    %59 = arith.addf %55, %58 : vector<8x1xf32>
    %60 = math.rsqrt %59 : vector<8x1xf32>
    %61 = vector.broadcast %60 : vector<8x1xf32> to vector<8x32xf32>
    %62 = arith.mulf %57, %61 : vector<8x32xf32>
    %63 = vector.broadcast %43 : vector<1x32xf32> to vector<8x32xf32>
    %64 = arith.mulf %62, %63 : vector<8x32xf32>
    %65 = vector.broadcast %44 : vector<1x32xf32> to vector<8x32xf32>
    %66 = arith.addf %64, %65 : vector<8x32xf32>
    %c0_32 = arith.constant 0 : index
    %c0_33 = arith.constant 0 : index
    %67 = vector.load %arg13[%c0_32, %c0_33] : memref<32x32xf32, #tpu.memory_space<vmem>>, vector<32x32xf32>
    %cst_34 = arith.constant dense<0.000000e+00> : vector<8x32xf32>
    %68 = tpu.matmul %66, %67, %cst_34 {dimension_numbers = #tpu.dot_dimension_numbers<[1], [0], [0], [1], [0, 0, 1, 1], [], []>} : vector<8x32xf32>, vector<32x32xf32>, vector<8x32xf32> -> vector<8x32xf32>
    %c0_35 = arith.constant 0 : index
    %c0_36 = arith.constant 0 : index
    %69 = vector.load %arg14[%c0_35, %c0_36] : memref<1x32xf32, #tpu.memory_space<vmem>>, vector<1x32xf32>
    %70 = vector.broadcast %69 : vector<1x32xf32> to vector<8x32xf32>
    %71 = arith.addf %68, %70 : vector<8x32xf32>
    %cst_37 = arith.constant 5.000000e-01 : f32
    %72 = vector.broadcast %cst_37 : f32 to vector<8x32xf32>
    %73 = arith.mulf %72, %71 : vector<8x32xf32>
    %cst_38 = arith.constant 4.471500e-02 : f32
    %74 = vector.broadcast %cst_38 : f32 to vector<8x32xf32>
    %75 = arith.mulf %74, %71 : vector<8x32xf32>
    %76 = arith.mulf %75, %71 : vector<8x32xf32>
    %77 = arith.mulf %76, %71 : vector<8x32xf32>
    %78 = arith.addf %71, %77 : vector<8x32xf32>
    %cst_39 = arith.constant 0.797884583 : f32
    %79 = vector.broadcast %cst_39 : f32 to vector<8x32xf32>
    %80 = arith.mulf %79, %78 : vector<8x32xf32>
    %81 = math.tanh %80 : vector<8x32xf32>
    %cst_40 = arith.constant 1.000000e+00 : f32
    %82 = vector.broadcast %cst_40 : f32 to vector<8x32xf32>
    %83 = arith.addf %82, %81 : vector<8x32xf32>
    %84 = arith.mulf %73, %83 : vector<8x32xf32>
    %c0_41 = arith.constant 0 : index
    %c0_42 = arith.constant 0 : index
    %85 = vector.load %arg15[%c0_41, %c0_42] : memref<32x32xf32, #tpu.memory_space<vmem>>, vector<32x32xf32>
    %cst_43 = arith.constant dense<0.000000e+00> : vector<8x32xf32>
    %86 = tpu.matmul %84, %85, %cst_43 {dimension_numbers = #tpu.dot_dimension_numbers<[1], [0], [0], [1], [0, 0, 1, 1], [], []>} : vector<8x32xf32>, vector<32x32xf32>, vector<8x32xf32> -> vector<8x32xf32>
    %c0_44 = arith.constant 0 : index
    %c0_45 = arith.constant 0 : index
    %87 = vector.load %arg16[%c0_44, %c0_45] : memref<1x32xf32, #tpu.memory_space<vmem>>, vector<1x32xf32>
    %88 = vector.broadcast %87 : vector<1x32xf32> to vector<8x32xf32>
    %89 = arith.addf %86, %88 : vector<8x32xf32>
    %90 = arith.addf %89, %42 : vector<8x32xf32>
    %c0_46 = arith.constant 0 : index
    %c0_47 = arith.constant 0 : index
    %91 = vector.load %arg6[%c0_46, %c0_47] : memref<8x32xf32, #tpu.memory_space<vmem>>, vector<8x32xf32>
    %cst_48 = arith.constant 5.000000e-01 : f32
    %92 = vector.broadcast %cst_48 : f32 to vector<8x32xf32>
    %93 = arith.mulf %92, %91 : vector<8x32xf32>
    %cst_49 = arith.constant 4.471500e-02 : f32
    %94 = vector.broadcast %cst_49 : f32 to vector<8x32xf32>
    %95 = arith.mulf %94, %91 : vector<8x32xf32>
    %96 = arith.mulf %95, %91 : vector<8x32xf32>
    %97 = arith.mulf %96, %91 : vector<8x32xf32>
    %98 = arith.addf %91, %97 : vector<8x32xf32>
    %cst_50 = arith.constant 0.797884583 : f32
    %99 = vector.broadcast %cst_50 : f32 to vector<8x32xf32>
    %100 = arith.mulf %99, %98 : vector<8x32xf32>
    %101 = math.tanh %100 : vector<8x32xf32>
    %cst_51 = arith.constant 1.000000e+00 : f32
    %102 = vector.broadcast %cst_51 : f32 to vector<8x32xf32>
    %103 = arith.addf %102, %101 : vector<8x32xf32>
    %104 = arith.mulf %93, %103 : vector<8x32xf32>
    %c0_52 = arith.constant 0 : index
    %c0_53 = arith.constant 0 : index
    %105 = vector.load %arg17[%c0_52, %c0_53] : memref<32x32xf32, #tpu.memory_space<vmem>>, vector<32x32xf32>
    %cst_54 = arith.constant dense<0.000000e+00> : vector<8x32xf32>
    %106 = tpu.matmul %104, %105, %cst_54 {dimension_numbers = #tpu.dot_dimension_numbers<[1], [0], [0], [1], [0, 0, 1, 1], [], []>} : vector<8x32xf32>, vector<32x32xf32>, vector<8x32xf32> -> vector<8x32xf32>
    %c0_55 = arith.constant 0 : index
    %c0_56 = arith.constant 0 : index
    %107 = vector.load %arg18[%c0_55, %c0_56] : memref<1x32xf32, #tpu.memory_space<vmem>>, vector<1x32xf32>
    %108 = vector.broadcast %107 : vector<1x32xf32> to vector<8x32xf32>
    %109 = arith.addf %106, %108 : vector<8x32xf32>
    %c0_57 = arith.constant 0 : index
    %c0_58 = arith.constant 0 : index
    %110 = vector.load %arg19[%c0_57, %c0_58] : memref<32x32xf32, #tpu.memory_space<vmem>>, vector<32x32xf32>
    %cst_59 = arith.constant dense<0.000000e+00> : vector<8x32xf32>
    %111 = tpu.matmul %104, %110, %cst_59 {dimension_numbers = #tpu.dot_dimension_numbers<[1], [0], [0], [1], [0, 0, 1, 1], [], []>} : vector<8x32xf32>, vector<32x32xf32>, vector<8x32xf32> -> vector<8x32xf32>
    %c0_60 = arith.constant 0 : index
    %c0_61 = arith.constant 0 : index
    %112 = vector.load %arg20[%c0_60, %c0_61] : memref<1x32xf32, #tpu.memory_space<vmem>>, vector<1x32xf32>
    %113 = vector.broadcast %112 : vector<1x32xf32> to vector<8x32xf32>
    %114 = arith.addf %111, %113 : vector<8x32xf32>
    %cst_62 = arith.constant 5.000000e-01 : f32
    %115 = vector.broadcast %cst_62 : f32 to vector<8x32xf32>
    %116 = arith.mulf %115, %114 : vector<8x32xf32>
    %117 = math.tanh %116 : vector<8x32xf32>
    %cst_63 = arith.constant 1.000000e+00 : f32
    %118 = vector.broadcast %cst_63 : f32 to vector<8x32xf32>
    %119 = arith.addf %117, %118 : vector<8x32xf32>
    %cst_64 = arith.constant 5.000000e-01 : f32
    %120 = vector.broadcast %cst_64 : f32 to vector<8x32xf32>
    %121 = arith.mulf %120, %119 : vector<8x32xf32>
    %122 = arith.mulf %109, %121 : vector<8x32xf32>
    %123 = arith.addf %122, %90 : vector<8x32xf32>
    %124 = arith.addf %41, %123 : vector<8x32xf32>
    %c0_65 = arith.constant 0 : index
    %c0_66 = arith.constant 0 : index
    %125 = vector.load %arg21[%c0_65, %c0_66] : memref<1x32xf32, #tpu.memory_space<vmem>>, vector<1x32xf32>
    %c0_67 = arith.constant 0 : index
    %c0_68 = arith.constant 0 : index
    %126 = vector.load %arg22[%c0_67, %c0_68] : memref<1x32xf32, #tpu.memory_space<vmem>>, vector<1x32xf32>
    %cst_69 = arith.constant dense<0.000000e+00> : vector<8xf32>
    %127 = vector.multi_reduction <add>, %124, %cst_69 [1] : vector<8x32xf32> to vector<8xf32>
    %128 = vector.shape_cast %127 : vector<8xf32> to vector<8x1xf32>
    %cst_70 = arith.constant 3.200000e+01 : f32
    %129 = vector.broadcast %cst_70 : f32 to vector<8x1xf32>
    %130 = arith.divf %128, %129 : vector<8x1xf32>
    %131 = vector.broadcast %130 : vector<8x1xf32> to vector<8x32xf32>
    %132 = arith.subf %124, %131 : vector<8x32xf32>
    %133 = arith.mulf %132, %132 : vector<8x32xf32>
    %cst_71 = arith.constant dense<0.000000e+00> : vector<8xf32>
    %134 = vector.multi_reduction <add>, %133, %cst_71 [1] : vector<8x32xf32> to vector<8xf32>
    %135 = vector.shape_cast %134 : vector<8xf32> to vector<8x1xf32>
    %cst_72 = arith.constant 3.200000e+01 : f32
    %136 = vector.broadcast %cst_72 : f32 to vector<8x1xf32>
    %137 = arith.divf %135, %136 : vector<8x1xf32>
    %138 = vector.broadcast %130 : vector<8x1xf32> to vector<8x32xf32>
    %139 = arith.subf %124, %138 : vector<8x32xf32>
    %cst_73 = arith.constant 9.99999974E-6 : f32
    %140 = vector.broadcast %cst_73 : f32 to vector<8x1xf32>
    %141 = arith.addf %137, %140 : vector<8x1xf32>
    %142 = math.rsqrt %141 : vector<8x1xf32>
    %143 = vector.broadcast %142 : vector<8x1xf32> to vector<8x32xf32>
    %144 = arith.mulf %139, %143 : vector<8x32xf32>
    %145 = vector.broadcast %125 : vector<1x32xf32> to vector<8x32xf32>
    %146 = arith.mulf %144, %145 : vector<8x32xf32>
    %147 = vector.broadcast %126 : vector<1x32xf32> to vector<8x32xf32>
    %148 = arith.addf %146, %147 : vector<8x32xf32>
    %c0_74 = arith.constant 0 : index
    %c0_75 = arith.constant 0 : index
    %149 = vector.load %arg23[%c0_74, %c0_75] : memref<8x32xf32, #tpu.memory_space<vmem>>, vector<8x32xf32>
    tpu.vector_store %arg23[%c0_74, %c0_75], %148 {strides = array<i32>} : memref<8x32xf32, #tpu.memory_space<vmem>>, vector<8x32xf32>,
    return
  }
  func.func @transform_0(%arg0: i32) -> (i32, i32) {
    %c0_i32 = arith.constant 0 : i32
    %c0_i32_0 = arith.constant 0 : i32
    return %arg0, %c0_i32 : i32, i32
  }
  func.func @transform_1(%arg0: i32) -> (i32, i32) {
    %c0_i32 = arith.constant 0 : i32
    %c0_i32_0 = arith.constant 0 : i32
    return %arg0, %c0_i32 : i32, i32
  }
  func.func @transform_2(%arg0: i32) -> (i32, i32) {
    %c0_i32 = arith.constant 0 : i32
    %c0_i32_0 = arith.constant 0 : i32
    return %arg0, %c0_i32 : i32, i32
  }
  func.func @transform_3(%arg0: i32) -> (i32, i32) {
    %c0_i32 = arith.constant 0 : i32
    %c0_i32_0 = arith.constant 0 : i32
    return %arg0, %c0_i32 : i32, i32
  }
  func.func @transform_4(%arg0: i32) -> (i32, i32) {
    %c0_i32 = arith.constant 0 : i32
    %c0_i32_0 = arith.constant 0 : i32
    return %arg0, %c0_i32 : i32, i32
  }
  func.func @transform_5(%arg0: i32) -> (i32, i32) {
    %c0_i32 = arith.constant 0 : i32
    %c0_i32_0 = arith.constant 0 : i32
    return %arg0, %c0_i32 : i32, i32
  }
  func.func @transform_6(%arg0: i32) -> (i32, i32) {
    %c0_i32 = arith.constant 0 : i32
    %c0_i32_0 = arith.constant 0 : i32
    %c0_i32_1 = arith.constant 0 : i32
    return %c0_i32, %c0_i32_0 : i32, i32
  }
  func.func @transform_7(%arg0: i32) -> (i32, i32) {
    %c0_i32 = arith.constant 0 : i32
    %c0_i32_0 = arith.constant 0 : i32
    %c0_i32_1 = arith.constant 0 : i32
    return %c0_i32, %c0_i32_0 : i32, i32
  }
  func.func @transform_8(%arg0: i32) -> (i32, i32) {
    %c0_i32 = arith.constant 0 : i32
    %c0_i32_0 = arith.constant 0 : i32
    %c0_i32_1 = arith.constant 0 : i32
    return %c0_i32, %c0_i32_0 : i32, i32
  }
  func.func @transform_9(%arg0: i32) -> (i32, i32) {
    %c0_i32 = arith.constant 0 : i32
    %c0_i32_0 = arith.constant 0 : i32
    %c0_i32_1 = arith.constant 0 : i32
    return %c0_i32, %c0_i32_0 : i32, i32
  }
  func.func @transform_10(%arg0: i32) -> (i32, i32) {
    %c0_i32 = arith.constant 0 : i32
    %c0_i32_0 = arith.constant 0 : i32
    %c0_i32_1 = arith.constant 0 : i32
    return %c0_i32, %c0_i32_0 : i32, i32
  }
  func.func @transform_11(%arg0: i32) -> (i32, i32) {
    %c0_i32 = arith.constant 0 : i32
    %c0_i32_0 = arith.constant 0 : i32
    %c0_i32_1 = arith.constant 0 : i32
    return %c0_i32, %c0_i32_0 : i32, i32
  }
  func.func @transform_12(%arg0: i32) -> (i32, i32) {
    %c0_i32 = arith.constant 0 : i32
    %c0_i32_0 = arith.constant 0 : i32
    %c0_i32_1 = arith.constant 0 : i32
    return %c0_i32, %c0_i32_0 : i32, i32
  }
  func.func @transform_13(%arg0: i32) -> (i32, i32) {
    %c0_i32 = arith.constant 0 : i32
    %c0_i32_0 = arith.constant 0 : i32
    %c0_i32_1 = arith.constant 0 : i32
    return %c0_i32, %c0_i32_0 : i32, i32
  }
  func.func @transform_14(%arg0: i32) -> (i32, i32) {
    %c0_i32 = arith.constant 0 : i32
    %c0_i32_0 = arith.constant 0 : i32
    %c0_i32_1 = arith.constant 0 : i32
    return %c0_i32, %c0_i32_0 : i32, i32
  }
  func.func @transform_15(%arg0: i32) -> (i32, i32) {
    %c0_i32 = arith.constant 0 : i32
    %c0_i32_0 = arith.constant 0 : i32
    %c0_i32_1 = arith.constant 0 : i32
    return %c0_i32, %c0_i32_0 : i32, i32
  }
  func.func @transform_16(%arg0: i32) -> (i32, i32) {
    %c0_i32 = arith.constant 0 : i32
    %c0_i32_0 = arith.constant 0 : i32
    %c0_i32_1 = arith.constant 0 : i32
    return %c0_i32, %c0_i32_0 : i32, i32
  }
  func.func @transform_17(%arg0: i32) -> (i32, i32) {
    %c0_i32 = arith.constant 0 : i32
    %c0_i32_0 = arith.constant 0 : i32
    %c0_i32_1 = arith.constant 0 : i32
    return %c0_i32, %c0_i32_0 : i32, i32
  }
  func.func @transform_18(%arg0: i32) -> (i32, i32) {
    %c0_i32 = arith.constant 0 : i32
    %c0_i32_0 = arith.constant 0 : i32
    %c0_i32_1 = arith.constant 0 : i32
    return %c0_i32, %c0_i32_0 : i32, i32
  }
  func.func @transform_19(%arg0: i32) -> (i32, i32) {
    %c0_i32 = arith.constant 0 : i32
    %c0_i32_0 = arith.constant 0 : i32
    %c0_i32_1 = arith.constant 0 : i32
    return %c0_i32, %c0_i32_0 : i32, i32
  }
  func.func @transform_20(%arg0: i32) -> (i32, i32) {
    %c0_i32 = arith.constant 0 : i32
    %c0_i32_0 = arith.constant 0 : i32
    %c0_i32_1 = arith.constant 0 : i32
    return %c0_i32, %c0_i32_0 : i32, i32
  }
  func.func @transform_21(%arg0: i32) -> (i32, i32) {
    %c0_i32 = arith.constant 0 : i32
    %c0_i32_0 = arith.constant 0 : i32
    %c0_i32_1 = arith.constant 0 : i32
    return %c0_i32, %c0_i32_0 : i32, i32
  }
  func.func @transform_22(%arg0: i32) -> (i32, i32) {
    %c0_i32 = arith.constant 0 : i32
    %c0_i32_0 = arith.constant 0 : i32
    return %arg0, %c0_i32 : i32, i32
  }
}

</mosaic_0001>

<bundles_post_ra>
// kernel: gmb_layer_forward.7
= control target key start
LH: loop header
LB: loop body
LE: loop exit
PB: predicated region body
PF: predicated region fallthrough
CT: control target
= control target key end

     0   :  { %s413_s9 = smov 0   ;;  %s433_s0 = inlined_call_operand.vmem [shape: bf16[2,32,8], index: 0, kind: input, shape index: {}]   ;;  %s434_s1 = inlined_call_operand.vmem [shape: f32[2,8,32], index: 1, kind: input, shape index: {}]   ;;  %s435_s2 = inlined_call_operand.vmem [shape: f32[2,32,32], index: 2, kind: output, shape index: {}]  }
   0x1 LB: > { %s340_s10 = sadd.s32 4294967295, %s396_s9   ;;  %p344_p0 = scmp.ge.s32.totalorder %s396_s9, 1  ;;  %s396_s9 = sphi %s413_s9, %s12_s9  }
   0x2   : > { %p121_p1 = scmp.lt.s32.totalorder %s396_s9, 3 }
   0x4   : > { %p122_p2 = pnand %p344_p0, %p121_p1 }
   0x5   : > { %p147_p3 = scmp.lt.s32.totalorder (!%p122_p2), %s340_s10, 1 }
   0x6   : > { %125 = sbr.rel (%p122_p2) target bundleno = 215 (0xd7), region = 28 }
   0xb   : > { %s437_s10 = smov (!%p147_p3, %s340_s10), 1  ;;  %vm170_vm0 = vcmask 64512   ;;  %vm268_vm1 = vcmask 261120  }
   0xc   : > { %s347_s11 = sshll.u32 %s437_s10, 3  ;;  %s356_s12 = sshll.u32 %s437_s10, 4 }
   0xd   : > { %s155_s15 = scalar_lea.vmem %s434_s1, %s347_s11  ;;  %s151_s18 = scalar_lea.vmem %s433_s0, %s356_s12 }
   0xe   : > { %v169_v0 = vld [vmem:[%s155_s15] sm:$0xff]  ;;  %v366_v2 = vld [vmem:[%s151_s18 + $0x8] sm:$0xff]   ;;  %s357_s19 = sshll.u32 %s437_s10, 5 }
   0xf   : > { %v359_v1 = vld [vmem:[%s151_s18] sm:$0xff]   ;;  %372 = vmatprep.subr.mxu0 %v169_v0  ;;  %380 = vmatprep.subr.mxu1 %v169_v0  ;;  %v364_v5 = vunpack.c.l.bf16 %v366_v2  ;;  %v365_v6 = vunpack.c.h.bf16 %v366_v2  ;;  %s160_s22 = scalar_lea.vmem %s435_s2, %s357_s19 }
  0x10   : > { %v360_v3 = vunpack.c.l.bf16 %v359_v1  ;;  %v361_v4 = vunpack.c.h.bf16 %v359_v1  ;;  %373 = vmatpush3.msra.mxu0 %v169_v0  ;;  %381 = vmatpush3.msra.mxu1 %v169_v0 }
  0x11   : > { %377 = vmatprep.mubr.msk.f32.mxu1 %vm170_vm0, %v364_v5 }
  0x12   : > { %374 = vmatprep.mubr.msk.f32.mxu0 %vm170_vm0, %v360_v3  ;;  %378 = vmatmul.mubr.msk.f32.vlgmr.msra.gmra.mxu1 %vm170_vm0, %v365_v6 }
  0x13   : > { %375 = vmatmul.mubr.msk.f32.vlgmr.msra.gmra.mxu0 %vm170_vm0, %v361_v4 }
  0xd2   : > { %v379_v8 = vpop.f32.mrf.mxu1 }
  0xd3   : > { %v376_v7 = vpop.f32.mrf.mxu0  ;;  %272 = vst.msk [vmem:[%s160_s22 + $0x18] sm:$0xff] %vm268_vm1, %v379_v8 }
  0xd4   : > { %270 = vst.msk [vmem:[%s160_s22 + $0x8] sm:$0xff] %vm268_vm1, %v376_v7  ;;  %v259_v10 = vpop.f32.mrf.mxu1 }
  0xd5   : > { %v249_v9 = vpop.f32.mrf.mxu0  ;;  %271 = vst.msk [vmem:[%s160_s22 + $0x10] sm:$0xff] %vm268_vm1, %v259_v10 }
  0xd6   : > { %269 = vst.msk [vmem:[%s160_s22] sm:$0xff] %vm268_vm1, %v249_v9 }
  0xd7 PF: > { %s12_s9 = sadd.s32 1, %s396_s9  }
  0xd8   : > { %p9_p4 = scmp.ge.s32.totalorder %s12_s9, 4  }
  0xda   :  { %11 = sbr.rel (!%p9_p4) target bundleno = 1 (0x1), region = 61 }

// kernel: gmb_layer_forward.5
= control target key start
LH: loop header
LB: loop body
LE: loop exit
PB: predicated region body
PF: predicated region fallthrough
CT: control target
= control target key end

     0   :  { %s373_s12 = smov 0   ;;  %s405_s0 = inlined_call_operand.vmem [shape: f32[16,32], index: 0, kind: input, shape index: {}]   ;;  %s406_s1 = inlined_call_operand.vmem [shape: f32[32,128], index: 1, kind: input, shape index: {}]   ;;  %s407_s2 = inlined_call_operand.vmem [shape: f32[1,128], index: 2, kind: input, shape index: {}]   ;;  %s408_s3 = inlined_call_operand.vmem [shape: f32[16,128], index: 3, kind: output, shape index: {}]  }
   0x1 LB: > { %s306_s13 = sadd.s32 4294967295, %s349_s12   ;;  %p310_p0 = scmp.ge.s32.totalorder %s349_s12, 1  ;;  %s349_s12 = sphi %s373_s12, %s13_s12  }
   0x2   : > { %p136_p1 = scmp.lt.s32.totalorder %s349_s12, 3 }
   0x4   : > { %p137_p2 = pnand %p310_p0, %p136_p1 }
   0x5   : > { %p158_p3 = scmp.lt.s32.totalorder (!%p137_p2), %s306_s13, 1 }
   0x6   : > { %140 = sbr.rel (%p137_p2) target bundleno = 216 (0xd8), region = 32 }
   0xb   : > { %v170_v0 = vld [vmem:[%s406_s1 + $0x18] sm:$0xff]  ;;  %v351_v1 = vmov 0.0   ;;  %v169_v2 = vld [vmem:[%s406_s1 + $0x10] sm:$0xff]  ;;  %vm352_vm0 = vmmov 0   ;;  %s410_s13 = smov (!%p158_p3, %s306_s13), 1  ;;  %v168_v3 = vld [vmem:[%s406_s1 + $0x8] sm:$0xff] }
   0xc   : > { %322 = vmatprep.subr.mxu0 %v351_v1  ;;  %330 = vmatprep.mubr.msk.f32.mxu0 %vm352_vm0, %v351_v1  ;;  %s311_s20 = sshll.u32 %s410_s13, 3  ;;  %v167_v4 = vld [vmem:[%s406_s1] sm:$0xff]  ;;  %vm178_vm1 = vcmask 261120  }
   0xd   : > { %323 = vmatpush3.msra.mxu0 %v170_v0  ;;  %s161_s25 = scalar_lea.vmem %s405_s0, %s311_s20  ;;  %v313_v6 = vld [vmem:[%s407_s2] ss:$0 sm:$0xff]  ;;  %s165_s30 = scalar_lea.vmem %s408_s3, %s311_s20 }
   0xe   : > { %324 = vmatprep.subr.mxu0 %v351_v1  ;;  %v166_v5 = vld [vmem:[%s161_s25] sm:$0xff] }
   0xf   : > { %325 = vmatpush3.msra.mxu0 %v169_v2 }
  0x10   : > { %326 = vmatprep.subr.mxu0 %v351_v1 }
  0x11   : > { %327 = vmatpush3.msra.mxu0 %v168_v3 }
  0x12   : > { %328 = vmatprep.subr.mxu0 %v351_v1 }
  0x13   : > { %329 = vmatpush3.msra.mxu0 %v167_v4 }
  0x14   : > { %331 = vmatmul.mubr.msk.f32.vlgmr.msra.gmra.mxu0 %vm178_vm1, %v166_v5 }
  0xd4   : > { %v248_v7 = vpop.f32.mrf.mxu0 }
  0xd5   : > { %v249_v8 = vadd.f32 %v313_v6, %v248_v7 }
  0xd6   : > { %v332_v9 = vpop.f32.mrf.mxu0 }
  0xd7   : > { %252 = vst [vmem:[%s165_s30] sm:$0xff] %v249_v8 }
  0xd8 PF: > { %s13_s12 = sadd.s32 1, %s349_s12  }
  0xd9   : > { %p10_p4 = scmp.ge.s32.totalorder %s13_s12, 4  }
  0xdb   :  { %12 = sbr.rel (!%p10_p4) target bundleno = 1 (0x1), region = 62 }

// kernel: gmb_layer_forward.6
= control target key start
LH: loop header
LB: loop body
LE: loop exit
PB: predicated region body
PF: predicated region fallthrough
CT: control target
= control target key end

     0   :  { %s750_s27 = smov 0   ;;  %s808_s0 = inlined_call_operand.vmem [shape: f32[32,32], index: 0, kind: input, shape index: {}]   ;;  %s809_s1 = inlined_call_operand.vmem [shape: f32[32,32], index: 1, kind: input, shape index: {}]   ;;  %s810_s2 = inlined_call_operand.vmem [shape: f32[32,32], index: 2, kind: input, shape index: {}]   ;;  %s811_s3 = inlined_call_operand.vmem [shape: f32[32,32], index: 3, kind: input, shape index: {}]   ;;  %s812_s4 = inlined_call_operand.vmem [shape: f32[32,32], index: 4, kind: input, shape index: {}]   ;;  %s813_s5 = inlined_call_operand.vmem [shape: f32[1,32], index: 5, kind: input, shape index: {}]   ;;  %s814_s6 = inlined_call_operand.vmem [shape: f32[1,32], index: 6, kind: input, shape index: {}]   ;;  %s815_s7 = inlined_call_operand.vmem [shape: f32[1,32], index: 7, kind: input, shape index: {}]   ;;  %s816_s8 = inlined_call_operand.vmem [shape: f32[32,128], index: 8, kind: output, shape index: {}]  }
   0x1 LB: > { %s640_s28 = sadd.s32 4294967295, %s700_s27   ;;  %p644_p0 = scmp.ge.s32.totalorder %s700_s27, 1  ;;  %s700_s27 = sphi %s750_s27, %s18_s27  }
   0x2   : > { %p296_p1 = scmp.lt.s32.totalorder %s700_s27, 3 }
   0x4   : > { %p297_p2 = pnand %p644_p0, %p296_p1 }
   0x5   : > { %s645_s11 = sshll.u32 (!%p297_p2), %s640_s28, 1  ;;  %s702_s10 = smov (!%p297_p2), 64  }
   0x6   : > { %300 = sbr.rel (%p297_p2) target bundleno = 364 (0x16c), region = 52  ;;  %p346_p3 = scmp.lt.s32.totalorder (!%p297_p2), %s645_s11, 3 }
   0x7   : > { %s704_s12 = smov (!%p297_p2), 96  }
   0xb   : > { %v386_v0 = vld [vmem:[%s812_s4 + $0x18] sm:$0xff]  ;;  %v385_v1 = vld [vmem:[%s812_s4 + $0x10] sm:$0xff]  ;;  %v384_v2 = vld [vmem:[%s812_s4 + $0x8] sm:$0xff]  ;;  %s818_s11 = smov (!%p346_p3, %s645_s11), 3  ;;  %vm387_vm0 = vcmask 261120   ;;  %vm540_vm1 = vcmask 523264  }
   0xc   : > { %668 = vmatprep.subr.mxu0 %v386_v0  ;;  %v383_v3 = vld [vmem:[%s812_s4] sm:$0xff]  ;;  %s770_s16 = sshll.u32 %s818_s11, 3  ;;  %s703_s11 = smov 32   ;;  %vm543_vm2 = vcmask 785408  }
   0xd   : > { %669 = vmatpush3.msra.mxu0 %v386_v0  ;;  %s367_s19 = scalar_lea.vmem %s811_s3, %s770_s16  ;;  %s349_s22 = scalar_lea.vmem %s808_s0, %s770_s16  ;;  %v657_v13 = vld [vmem:[%s813_s5] ss:$0 sm:$0xff] }
   0xe   : > { %670 = vmatprep.subr.mxu0 %v385_v1  ;;  %v375_v4 = vld [vmem:[%s367_s19] sm:$0xff]  ;;  %v376_v5 = vld [vmem:[%s367_s19 + $0x8] sm:$0xff]  ;;  %s355_s25 = scalar_lea.vmem %s809_s1, %s770_s16  ;;  %s361_s9 = scalar_lea.vmem %s810_s2, %s770_s16 }
   0xf   : > { %671 = vmatpush3.msra.mxu0 %v385_v1  ;;  %676 = vmatprep.mubr.msk.f32.mxu0 %vm387_vm0, %v375_v4  ;;  %v378_v6 = vld [vmem:[%s349_s22 + $0x8] sm:$0xff]  ;;  %v377_v8 = vld [vmem:[%s349_s22] sm:$0xff]  ;;  %s373_s20 = scalar_lea.vmem %s816_s8, %s770_s16 }
  0x10   : > { %672 = vmatprep.subr.mxu0 %v384_v2  ;;  %v380_v7 = vld [vmem:[%s355_s25 + $0x8] sm:$0xff]  ;;  %v379_v9 = vld [vmem:[%s355_s25] sm:$0xff] }
  0x11   : > { %673 = vmatpush3.msra.mxu0 %v384_v2  ;;  %v382_v10 = vadd.f32 %v380_v7, %v378_v6  ;;  %v381_v11 = vadd.f32 %v379_v9, %v377_v8  ;;  %v511_v24 = vld [vmem:[%s361_s9 + $0x8] sm:$0xff]  ;;  %v510_v29 = vld [vmem:[%s361_s9] sm:$0xff] }
  0x12   : > { %674 = vmatprep.subr.mxu0 %v383_v3  ;;  %v658_v31 = vld [vmem:[%s814_s6] ss:$0 sm:$0xff] }
  0x13   : > { %675 = vmatpush3.msra.mxu0 %v383_v3  ;;  %v659_v34 = vld [vmem:[%s815_s7] ss:$0 sm:$0xff] }
  0x14   : > { %677 = vmatmul.mubr.msk.f32.vlgmr.msra.gmra.mxu0 %vm387_vm0, %v376_v5 }
  0xd4   : > { %v678_v12 = vpop.f32.mrf.mxu0 }
  0xd5   : > { %v470_v14 = vadd.f32 %v678_v12, %v382_v10 }
  0xd6   : > { %v460_v15 = vpop.f32.mrf.mxu0 }
  0xd7   : > { %v479_v16 = vadd.f32 %v657_v13, %v470_v14  ;;  %v469_v17 = vadd.f32 %v460_v15, %v381_v11 }
  0xd9   : > { %v478_v18 = vadd.f32 %v657_v13, %v469_v17  ;;  %v481_v19 = vmul.f32 0.5, %v479_v16  ;;  %v496_v33 = vmul.f32 %v658_v31, %v479_v16 }
  0xdb   : > { %v480_v20 = vmul.f32 0.5, %v478_v18  ;;  %690 = vtanh.f32 %v481_v19  ;;  %v495_v32 = vmul.f32 %v658_v31, %v478_v18  ;;  %v505_v36 = vadd.f32 %v659_v34, %v496_v33 }
  0xdd   : > { %692 = vtanh.f32 %v480_v20  ;;  %v504_v35 = vadd.f32 %v659_v34, %v495_v32  ;;  %v507_v39 = vmax.f32 %v505_v36, 0.0 }
  0xdf   : > { %v506_v38 = vmax.f32 %v504_v35, 0.0  ;;  %v509_v43 = vadd.f32 %v507_v39, %v376_v5 }
  0xe1   : > { %v508_v42 = vadd.f32 %v506_v38, %v375_v4 }
  0xe8   : > { %v691_v21 = vpop.eup %690 }
  0xe9   : > { %v485_v22 = vadd.f32 1.0, %v691_v21 }
  0xea   : > { %v693_v23 = vpop.eup %692 }
  0xeb   : > { %v487_v25 = vmul.f32 0.5, %v485_v22  ;;  %v484_v26 = vadd.f32 1.0, %v693_v23 }
  0xed   : > { %526 = vrot.lane.b32.xlu1 %v487_v25, %s702_s10  ;;  %v513_v27 = vmul.f32 %v511_v24, %v487_v25  ;;  %v486_v28 = vmul.f32 0.5, %v484_v26 }
  0xef   : > { %518 = vrot.lane.b32.xlu0 %v513_v27, %s703_s11  ;;  %v512_v30 = vmul.f32 %v510_v29, %v486_v28 }
  0xf1   : > { %524 = vrot.lane.b32.xlu1 %v486_v28, %s702_s10 }
  0xf3   : > { %516 = vrot.lane.b32.xlu0 %v512_v30, %s703_s11 }
  0xf5   : > { %534 = vrot.lane.b32.xlu1 %v479_v16, %s704_s12 }
  0xf7   : > { %532 = vrot.lane.b32.xlu0 %v478_v18, %s704_s12 }
 0x15f   : > { %v527_v37 = vpop.permute.xlu1 %526 }
 0x161   : > { %v519_v40 = vpop.permute.xlu0 %518 }
 0x162   : > { %v539_v46 = vsel %vm387_vm0, %v509_v43, %v519_v40 }
 0x163   : > { %v525_v41 = vpop.permute.xlu1 %524  ;;  %v542_v50 = vsel %vm540_vm1, %v539_v46, %v527_v37 }
 0x165   : > { %v517_v44 = vpop.permute.xlu0 %516 }
 0x166   : > { %v538_v45 = vsel %vm387_vm0, %v508_v42, %v517_v44 }
 0x167   : > { %v535_v47 = vpop.permute.xlu1 %534  ;;  %v541_v48 = vsel %vm540_vm1, %v538_v45, %v525_v41 }
 0x168   : > { %v545_v52 = vsel %vm543_vm2, %v542_v50, %v535_v47 }
 0x169   : > { %v533_v49 = vpop.permute.xlu0 %532  ;;  %547 = vst [vmem:[%s373_s20 + $0x8] sm:$0xff] %v545_v52 }
 0x16a   : > { %v544_v51 = vsel %vm543_vm2, %v541_v48, %v533_v49 }
 0x16b   : > { %546 = vst [vmem:[%s373_s20] sm:$0xff] %v544_v51 }
 0x16c PF: > { %s18_s27 = sadd.s32 1, %s700_s27  }
 0x16d   : > { %p15_p4 = scmp.ge.s32.totalorder %s18_s27, 4  }
 0x16f   :  { %17 = sbr.rel (!%p15_p4) target bundleno = 1 (0x1), region = 91 }

// kernel: gmb_layer_forward.8
= control target key start
LH: loop header
LB: loop body
LE: loop exit
PB: predicated region body
PF: predicated region fallthrough
CT: control target
= control target key end

     0   :  { %s4549_s0 = inlined_call_operand.vmem [shape: f32[4,16,32], index: 0, kind: input, shape index: {}]   ;;  %s4550_s1 = inlined_call_operand.vmem [shape: f32[1,32], index: 1, kind: input, shape index: {}]   ;;  %s4551_s2 = inlined_call_operand.vmem [shape: f32[1,32], index: 2, kind: input, shape index: {}]   ;;  %s4552_s3 = inlined_call_operand.vmem [shape: f32[32,32], index: 3, kind: input, shape index: {}]   ;;  %s4553_s4 = inlined_call_operand.vmem [shape: f32[32,32], index: 4, kind: input, shape index: {}]   ;;  %s4554_s5 = inlined_call_operand.vmem [shape: f32[4,32], index: 5, kind: input, shape index: {}]   ;;  %s4555_s6 = inlined_call_operand.vmem [shape: f32[1,32], index: 6, kind: input, shape index: {}]   ;;  %s4556_s7 = inlined_call_operand.vmem [shape: f32[32,32], index: 7, kind: input, shape index: {}]   ;;  %s4557_s8 = inlined_call_operand.vmem [shape: f32[1,32], index: 8, kind: input, shape index: {}]   ;;  %s4558_s9 = inlined_call_operand.vmem [shape: f32[32,16], index: 9, kind: input, shape index: {}]   ;;  %s4559_s10 = inlined_call_operand.vmem [shape: f32[32,16], index: 10, kind: input, shape index: {}]   ;;  %s4560_s11 = inlined_call_operand.vmem [shape: f32[1,512], index: 11, kind: input, shape index: {}]   ;;  %s4561_s12 = inlined_call_operand.vmem [shape: f32[1,32], index: 12, kind: input, shape index: {}]   ;;  %s4562_s13 = inlined_call_operand.vmem [shape: f32[16,512], index: 13, kind: input, shape index: {}]   ;;  %s4563_s14 = inlined_call_operand.vmem [shape: f32[512,32], index: 14, kind: input, shape index: {}]   ;;  %s4564_s15 = inlined_call_operand.vmem [shape: f32[32,32], index: 15, kind: input, shape index: {}]   ;;  %s4565_s16 = inlined_call_operand.vmem [shape: f32[16,32], index: 16, kind: output, shape index: {}]  }
   0x1   :  { %4566 = sst [smem:[#allocation3_spill]] %s4549_s0 }
   0x2   :  { %s3666_s21 = smov 0   ;;  %s3668_s22 = smov 0  }
   0x3   :  { %s3670_s23 = smov 0  }
   0x4 LB: > { %s3103_s24 = sadd.s32 4294967295, %s3574_s23   ;;  %s3683_s25 = sadd.s32 1, %s3574_s23   ;;  %s3574_s23 = sphi %s3670_s23, %s4570_s23   ;;  %s3570_s22 = sphi %s3668_s22, %s4569_s22   ;;  %s3566_s21 = sphi %s3666_s21, %s4568_s21  }
   0x5   : > { %s30_s26 = ssub.s32 %s3574_s23, %s3683_s25  ;;  %s33_s27 = sadd.s32 1, %s3570_s22 }
   0x6   : > { %p31_p0 = scmp.eq.s32.totalorder %s30_s26, 0  ;;  %p40_p1 = scmp.ne.s32.totalorder %s3570_s22, %s3566_s21 }
   0x7   : > { %p41_p2 = scmp.eq.s32.totalorder %s3574_s23, 0  ;;  %p3106_p4 = scmp.ge.s32.totalorder %s3574_s23, 2 }
   0x8   : > { %s3692_s28 = scalar_select %p31_p0, %s3570_s22, %s33_s27  }
   0x9   : > { %p42_p3 = por %p41_p2, %p40_p1  ;;  %452 = sbr.rel (%p3106_p4) target bundleno = 26 (0x1a), region = 76 }
   0xe   : > { %455 = sbr.rel (!%p42_p3) target bundleno = 26 (0x1a), region = 80  ;;  %s457_s29 = sand.u32 (%p42_p3), 1, %s3570_s22  }
   0xf   : > { %s3108_s30 = sshll.u32 (%p42_p3), %s3574_s23, 3  ;;  %s3107_s0 = sshll.u32 (%p42_p3), %s457_s29, 5 }
  0x10   : > { %s4567_s19 = sld [smem:[#allocation3_spill]] (%p42_p3)  ;;  %s459_s26 = scalar_lea.vmem (%p42_p3), [#allocation2], %s3107_s0 }
  0x16   : > { %s461_s20 = scalar_lea.vmem %s4567_s19, %s3108_s30 }
  0x17   : > { %v496_v0 = vld [vmem:[%s461_s20] sm:$0xff]  ;;  %v498_v1 = vld [vmem:[%s461_s20 + $0x10] sm:$0xff] }
  0x18   : > { %v500_v2 = vld [vmem:[%s461_s20 + $0x20] sm:$0xff]  ;;  %497 = vst [vmem:[%s459_s26] sm:$0xff] %v496_v0  ;;  %499 = vst [vmem:[%s459_s26 + $0x8] sm:$0xff] %v498_v1  ;;  %v502_v3 = vld [vmem:[%s461_s20 + $0x30] sm:$0xff] }
  0x19   : > { %501 = vst [vmem:[%s459_s26 + $0x10] sm:$0xff] %v500_v2  ;;  %503 = vst [vmem:[%s459_s26 + $0x18] sm:$0xff] %v502_v3 }
  0x1a PF: > { %p3109_p5 = scmp.ge.s32.totalorder %s3574_s23, 1  ;;  %p508_p6 = scmp.lt.s32.totalorder %s3574_s23, 3 }
  0x1c   : > { %p509_p7 = pnand %p3109_p5, %p508_p6 }
  0x1d   : > { %s515_s27 = sand.u32 (!%p509_p7), 1, %s3566_s21   ;;  %s3578_s21 = smov (!%p509_p7), 64  }
  0x1e   : > { %512 = sbr.rel (%p509_p7) target bundleno = 2181 (0x885), region = 118  ;;  %s3110_s29 = sshll.u32 (!%p509_p7), %s515_s27, 5 }
  0x1f   : > { %s517_s30 = scalar_lea.vmem (!%p509_p7), [#allocation2], %s3110_s29  ;;  %s3579_s0 = smov (!%p509_p7), 32  }
  0x20   : > { %s3580_s17 = smov (!%p509_p7), 96   ;;  %p563_p8 = scmp.lt.s32.totalorder (!%p509_p7), %s3103_s24, 1 }
  0x23   : > { %vm596_vm0 = vcmask 261120   ;;  %v3112_v4 = vld [vmem:[%s517_s30 + $0x18] sm:$0xff]  ;;  %v3116_v5 = vld [vmem:[%s517_s30 + $0x10] sm:$0xff]  ;;  %v878_v6 = vld [vmem:[%s517_s30] sm:$0xff]  ;;  %v3576_v27 = vmov 0.0   ;;  %vm3577_vm1 = vmmov 0   ;;  %v967_v60 = vlaneseq }
  0x24   : > { %v597_v7 = vsel %vm596_vm0, %v3112_v4, 0.0  ;;  %v700_v8 = vsel %vm596_vm0, %v3116_v5, 0.0  ;;  %v879_v9 = vsel %vm596_vm0, %v878_v6, 0.0  ;;  %v3118_v24 = vld [vmem:[%s517_s30 + $0x8] sm:$0xff]  ;;  %3292 = vmatprep.subr.mxu0 %v3576_v27  ;;  %v572_v28 = vld [vmem:[%s4552_s3 + $0x18] sm:$0xff]  ;;  %3303 = vmatprep.subr.mxu1 %v3576_v27  ;;  %v571_v29 = vld [vmem:[%s4552_s3 + $0x10] sm:$0xff] }
  0x25   : > { %598 = vadd.xlane.f32.xlu0 %v597_v7  ;;  %701 = vadd.xlane.f32.xlu1 %v700_v8  ;;  %v790_v26 = vsel %vm596_vm0, %v3118_v24, 0.0  ;;  %v570_v30 = vld [vmem:[%s4552_s3 + $0x8] sm:$0xff]  ;;  %v569_v31 = vld [vmem:[%s4552_s3] sm:$0xff]  ;;  %v3782_v61 = vshrl.u32 %v967_v60, 7  ;;  %v3796_v3 = vld [vmem:[%s4558_s9 + $0x18] sm:$0xff]  ;;  %vm1216_vm2 = vcmask 130048  }
  0x26   : > { %3293 = vmatpush3.msra.mxu0 %v572_v28  ;;  %3304 = vmatpush3.msra.mxu1 %v572_v28  ;;  %v3113_v47 = vld [vmem:[%s4550_s1] ss:$0 sm:$0xff]  ;;  %vm1128_vm3 = vcmask 523264   ;;  %vm1130_vm4 = vcmask 785408   ;;  %s4572_s24 = smov (!%p563_p8, %s3103_s24), 1 }
  0x27   : > { %3294 = vmatprep.subr.mxu0 %v3576_v27  ;;  %3305 = vmatprep.subr.mxu1 %v3576_v27  ;;  %v3114_v49 = vld [vmem:[%s4551_s2] ss:$0 sm:$0xff]  ;;  %v1016_v63 = vsub.s32 0, %v3782_v61  ;;  %v1001_v0 = vsub.s32 1, %v3782_v61 }
  0x28   : > { %3295 = vmatpush3.msra.mxu0 %v571_v29  ;;  %3306 = vmatpush3.msra.mxu1 %v571_v29  ;;  %v573_v62 = vld [vmem:[%s4554_s5] sm:$0xf] }
  0x29   : > { %880 = vadd.xlane.f32.xlu1 %v879_v9  ;;  %3296 = vmatprep.subr.mxu0 %v3576_v27  ;;  %v1017_v1 = vrot.slane %v573_v62, %v1016_v63  ;;  %v1002_v2 = vrot.slane %v573_v62, %v1001_v0 }
  0x2a   : > { %3307 = vmatprep.subr.mxu1 %v3576_v27  ;;  %3297 = vmatpush3.msra.mxu0 %v570_v30 }
  0x2b   : > { %3308 = vmatpush3.msra.mxu1 %v570_v30  ;;  %3298 = vmatprep.subr.mxu0 %v3576_v27 }
  0x2c   : > { %3309 = vmatprep.subr.mxu1 %v3576_v27  ;;  %3299 = vmatpush3.msra.mxu0 %v569_v31 }
  0x2d   : > { %3300 = vmatprep.mubr.msk.f32.mxu0 %vm3577_vm1, %v3576_v27  ;;  %3310 = vmatpush3.msra.mxu1 %v569_v31 }
  0x2e   : > { %3311 = vmatprep.mubr.msk.f32.mxu1 %vm3577_vm1, %v3576_v27  ;;  %3325 = vmatprep.subr.mxu1 %v3576_v27 }
  0x2f   : > { %3314 = vmatprep.subr.mxu0 %v3576_v27 }
  0xae   : > { %v599_v10 = vpop.xlane.xlu0 %598  ;;  %v702_v11 = vpop.xlane.xlu1 %701 }
  0xaf   : > { %v601_v12 = vmul.f32 0.03125, %v599_v10  ;;  %v703_v13 = vmul.f32 0.03125, %v702_v11 }
  0xb1   : > { %v3706_v14 = vsub.f32 %v3112_v4, %v601_v12  ;;  %v3708_v15 = vsub.f32 %v3116_v5, %v703_v13  ;;  %v3803_v4 = vld [vmem:[%s4558_s9 + $0x10] sm:$0xff]  ;;  %v3810_v5 = vld [vmem:[%s4558_s9 + $0x8] sm:$0xff] }
  0xb2   : > { %v881_v16 = vpop.xlane.xlu1 %880 }
  0xb3   : > { %v603_v17 = vmul.f32 %v3706_v14, %v3706_v14  ;;  %v882_v18 = vmul.f32 0.03125, %v881_v16  ;;  %v705_v19 = vmul.f32 %v3708_v15, %v3708_v15  ;;  %v3839_v16 = vld [vmem:[%s4556_s7 + $0x8] sm:$0xff] }
  0xb5   : > { %v604_v20 = vsel %vm596_vm0, %v603_v17, 0.0  ;;  %v3715_v21 = vsub.f32 %v878_v6, %v882_v18  ;;  %v706_v22 = vsel %vm596_vm0, %v705_v19, 0.0  ;;  %v3817_v6 = vld [vmem:[%s4558_s9] sm:$0xff]  ;;  %v969_v18 = vsub.s32 3, %v3782_v61 }
  0xb6   : > { %605 = vadd.xlane.f32.xlu0 %v604_v20  ;;  %v3846_v17 = vld [vmem:[%s4556_s7] sm:$0xff]  ;;  %v988_v20 = vsub.s32 2, %v3782_v61 }
  0xb7   : > { %v884_v23 = vmul.f32 %v3715_v21, %v3715_v21  ;;  %v970_v19 = vrot.slane %v573_v62, %v969_v18 }
  0xb9   : > { %v885_v25 = vsel %vm596_vm0, %v884_v23, 0.0 }
  0xba   : > { %707 = vadd.xlane.f32.xlu0 %v706_v22  ;;  %886 = vadd.xlane.f32.xlu1 %v885_v25  ;;  %v3121_v22 = vld [vmem:[%s4555_s6] ss:$0 sm:$0xff] }
  0xbe   : > { %791 = vadd.xlane.f32.xlu0 %v790_v26 }
 0x13f   : > { %v606_v32 = vpop.xlane.xlu0 %605 }
 0x140   : > { %v607_v33 = vmul.f32 0.03125, %v606_v32 }
 0x142   : > { %v608_v34 = vadd.f32 1e-05, %v607_v33 }
 0x143   : > { %v708_v35 = vpop.xlane.xlu0 %707  ;;  %v887_v36 = vpop.xlane.xlu1 %886 }
 0x144   : > { %3486 = vrsqrt.f32 %v608_v34  ;;  %v709_v37 = vmul.f32 0.03125, %v708_v35  ;;  %v888_v38 = vmul.f32 0.03125, %v887_v36 }
 0x146   : > { %v710_v39 = vadd.f32 1e-05, %v709_v37  ;;  %v889_v40 = vadd.f32 1e-05, %v888_v38 }
 0x147   : > { %v792_v41 = vpop.xlane.xlu0 %791 }
 0x148   : > { %3488 = vrsqrt.f32 %v710_v39  ;;  %v793_v42 = vmul.f32 0.03125, %v792_v41 }
 0x149   : > { %3490 = vrsqrt.f32 %v889_v40 }
 0x14a   : > { %v3748_v43 = vsub.f32 %v3118_v24, %v793_v42 }
 0x14c   : > { %v795_v44 = vmul.f32 %v3748_v43, %v3748_v43 }
 0x14e   : > { %v796_v45 = vsel %vm596_vm0, %v795_v44, 0.0 }
 0x14f   : > { %797 = vadd.xlane.f32.xlu1 %v796_v45 }
 0x151   : > { %v3487_v46 = vpop.eup %3486 }
 0x152   : > { %v610_v48 = vmul.f32 %v3487_v46, %v3706_v14  ;;  %v3824_v14 = vld [vmem:[%s4556_s7 + $0x18] sm:$0xff] }
 0x154   : > { %v617_v50 = vmul.f32 %v3113_v47, %v610_v48  ;;  %v3873_v48 = vld [vmem:[%s4562_s13 + $0x28] sm:$0xff] }
 0x155   : > { %v3489_v51 = vpop.eup %3488 }
 0x156   : > { %v3491_v52 = vpop.eup %3490  ;;  %v624_v53 = vadd.f32 %v3114_v49, %v617_v50  ;;  %v712_v54 = vmul.f32 %v3489_v51, %v3708_v15  ;;  %v3830_v15 = vld [vmem:[%s4556_s7 + $0x10] sm:$0xff]  ;;  %v3883_v50 = vld [vmem:[%s4562_s13 + $0x20] sm:$0xff] }
 0x157   : > { %v891_v55 = vmul.f32 %v3491_v52, %v3715_v21  ;;  %v3890_v51 = vld [vmem:[%s4562_s13 + $0x30] sm:$0xff]  ;;  %v3895_v52 = vld [vmem:[%s4562_s13 + $0x8] sm:$0xff] }
 0x158   : > { %3301 = vmatmul.mubr.msk.f32.vlgmr.msra.gmra.mxu0 %vm596_vm0, %v624_v53  ;;  %v713_v56 = vmul.f32 %v3113_v47, %v712_v54  ;;  %v3900_v53 = vld [vmem:[%s4562_s13 + $0x18] sm:$0xff]  ;;  %v3907_v54 = vld [vmem:[%s4562_s13] sm:$0xff] }
 0x159   : > { %3315 = vmatpush3.msra.mxu0 %v572_v28  ;;  %3322 = vmatprep.mubr.msk.f32.mxu0 %vm3577_vm1, %v3576_v27  ;;  %v892_v58 = vmul.f32 %v3113_v47, %v891_v55  ;;  %v3912_v55 = vld [vmem:[%s4562_s13 + $0x10] sm:$0xff] }
 0x15a   : > { %v714_v57 = vadd.f32 %v3114_v49, %v713_v56  ;;  %3316 = vmatprep.subr.mxu0 %v3576_v27 }
 0x15b   : > { %3317 = vmatpush3.msra.mxu0 %v571_v29  ;;  %v3773_v59 = vadd.f32 %v3114_v49, %v892_v58 }
 0x15c   : > { %3312 = vmatmul.mubr.msk.f32.vlgmr.msra.gmra.mxu1 %vm596_vm0, %v714_v57  ;;  %3318 = vmatprep.subr.mxu0 %v3576_v27 }
 0x15d   : > { %3326 = vmatpush3.msra.mxu1 %v572_v28  ;;  %3333 = vmatprep.mubr.msk.f32.mxu1 %vm3577_vm1, %v3576_v27  ;;  %v989_v28 = vrot.slane %v573_v62, %v988_v20 }
 0x15e   : > { %3327 = vmatprep.subr.mxu1 %v3576_v27  ;;  %3319 = vmatpush3.msra.mxu0 %v570_v30 }
 0x15f   : > { %3328 = vmatpush3.msra.mxu1 %v571_v29  ;;  %3320 = vmatprep.subr.mxu0 %v3576_v27 }
 0x160   : > { %3329 = vmatprep.subr.mxu1 %v3576_v27  ;;  %3321 = vmatpush3.msra.mxu0 %v569_v31 }
 0x161   : > { %3330 = vmatpush3.msra.mxu1 %v570_v30  ;;  %3336 = vmatprep.subr.mxu0 %v3576_v27 }
 0x162   : > { %3331 = vmatprep.subr.mxu1 %v3576_v27 }
 0x163   : > { %3332 = vmatpush3.msra.mxu1 %v569_v31 }
 0x164   : > { %3334 = vmatmul.mubr.msk.f32.vlgmr.msra.gmra.mxu1 %vm596_vm0, %v3773_v59  ;;  %3347 = vmatprep.subr.mxu1 %v3576_v27 }
 0x165   : > { %3355 = vmatprep.mubr.msk.f32.mxu1 %vm3577_vm1, %v3576_v27  ;;  %3348 = vmatpush3.msra.mxu1 %v3796_v3 }
 0x166   : > { %3349 = vmatprep.subr.mxu1 %v3576_v27 }
 0x167   : > { %3350 = vmatpush3.msra.mxu1 %v3803_v4 }
 0x168   : > { %3351 = vmatprep.subr.mxu1 %v3576_v27 }
 0x169   : > { %3352 = vmatpush3.msra.mxu1 %v3810_v5 }
 0x16a   : > { %3353 = vmatprep.subr.mxu1 %v3576_v27 }
 0x16b   : > { %3354 = vmatpush3.msra.mxu1 %v3817_v6 }
 0x1d8   : > { %v798_v7 = vpop.xlane.xlu1 %797 }
 0x1d9   : > { %v799_v8 = vmul.f32 0.03125, %v798_v7 }
 0x1db   : > { %v800_v9 = vadd.f32 1e-05, %v799_v8 }
 0x1dd   : > { %3492 = vrsqrt.f32 %v800_v9 }
 0x1ea   : > { %v3493_v10 = vpop.eup %3492 }
 0x1eb   : > { %v802_v11 = vmul.f32 %v3493_v10, %v3748_v43 }
 0x1ed   : > { %v803_v12 = vmul.f32 %v3113_v47, %v802_v11  ;;  %v3928_v11 = vld [vmem:[%s4557_s8] ss:$0 sm:$0xff] }
 0x1ef   : > { %v804_v13 = vadd.f32 %v3114_v49, %v803_v12  ;;  %v3878_v49 = vld [vmem:[%s4562_s13 + $0x38] sm:$0xff] }
 0x1f0   : > { %1319 = vmatprep.subr.mxu1 %v3878_v49 }
 0x1f1   : > { %3323 = vmatmul.mubr.msk.f32.vlgmr.msra.gmra.mxu0 %vm596_vm0, %v804_v13 }
 0x1f2   : > { %3337 = vmatpush3.msra.mxu0 %v3824_v14  ;;  %3344 = vmatprep.mubr.msk.f32.mxu0 %vm3577_vm1, %v3576_v27 }
 0x1f3   : > { %3338 = vmatprep.subr.mxu0 %v3576_v27 }
 0x1f4   : > { %3339 = vmatpush3.msra.mxu0 %v3830_v15 }
 0x1f5   : > { %3340 = vmatprep.subr.mxu0 %v3576_v27 }
 0x1f6   : > { %3341 = vmatpush3.msra.mxu0 %v3839_v16 }
 0x1f7   : > { %3342 = vmatprep.subr.mxu0 %v3576_v27 }
 0x1f8   : > { %3343 = vmatpush3.msra.mxu0 %v3846_v17 }
 0x1f9   : > { %1248 = vmatprep.subr.mxu0 %v3873_v48 }
 0x218   : > { %v694_v21 = vpop.f32.mrf.mxu0 }
 0x219   : > { %v971_v23 = vmul.f32 %v970_v19, %v694_v21  ;;  %v1018_v24 = vmul.f32 %v1017_v1, %v694_v21  ;;  %v1003_v25 = vmul.f32 %v1002_v2, %v694_v21  ;;  %v990_v35 = vmul.f32 %v989_v28, %v694_v21 }
 0x21a   : > { %v3302_v26 = vpop.f32.mrf.mxu0 }
 0x21b   : > { %v978_v29 = vadd.f32 %v3121_v22, %v971_v23 }
 0x21c   : > { %v784_v30 = vpop.f32.mrf.mxu1 }
 0x21d   : > { %v979_v31 = vmul.f32 0.5, %v978_v29  ;;  %v984_v32 = vmul.f32 %v970_v19, %v784_v30  ;;  %v1020_v33 = vmul.f32 %v1002_v2, %v784_v30  ;;  %v1005_v2 = vmul.f32 %v989_v28, %v784_v30 }
 0x21e   : > { %v3313_v34 = vpop.f32.mrf.mxu1 }
 0x21f   : > { %3494 = vtanh.f32 %v979_v31  ;;  %v985_v36 = vadd.f32 %v3121_v22, %v984_v32 }
 0x221   : > { %v3860_v37 = vadd.f32 %v990_v35, %v985_v36 }
 0x223   : > { %v992_v9 = vmul.f32 0.5, %v3860_v37 }
 0x224   : > { %v963_v38 = vpop.f32.mrf.mxu1 }
 0x225   : > { %v1012_v39 = vmul.f32 %v970_v19, %v963_v38  ;;  %3496 = vtanh.f32 %v992_v9 }
 0x226   : > { %v3335_v40 = vpop.f32.mrf.mxu1 }
 0x227   : > { %v1013_v41 = vadd.f32 %v3121_v22, %v1012_v39 }
 0x229   : > { %v1019_v42 = vadd.f32 %v1018_v24, %v1013_v41 }
 0x22b   : > { %v1021_v43 = vadd.f32 %v1020_v33, %v1019_v42 }
 0x22c   : > { %v3495_v44 = vpop.eup %3494 }
 0x22d   : > { %v981_v45 = vadd.f32 1.0, %v3495_v44 }
 0x22f   : > { %v982_v46 = vmul.f32 0.5, %v981_v45 }
 0x231   : > { %v3862_v47 = vmul.f32 %v982_v46, %v978_v29 }
 0x232   : > { %v3497_v10 = vpop.eup %3496 }
 0x233   : > { %3345 = vmatmul.mubr.msk.f32.vlgmr.msra.gmra.mxu0 %vm596_vm0, %v3862_v47  ;;  %3356 = vmatmul.mubr.msk.f32.vlgmr.msra.gmra.mxu1 %vm596_vm0, %v3862_v47  ;;  %v994_v12 = vadd.f32 1.0, %v3497_v10 }
 0x234   : > { %1284 = vmatprep.mubr.f32.mxu0 %v3576_v27  ;;  %1355 = vmatprep.mubr.f32.mxu1 %v3576_v27 }
 0x235   : > { %1249 = vmatpush1.msra.mxu0 %v3883_v50  ;;  %1320 = vmatpush1.msra.mxu1 %v3890_v51 }
 0x236   : > { %1250 = vmatprep.subr.mxu0 %v3895_v52  ;;  %1321 = vmatprep.subr.mxu1 %v3900_v53 }
 0x237   : > { %1251 = vmatpush1.msra.mxu0 %v3907_v54  ;;  %1322 = vmatpush1.msra.mxu1 %v3912_v55 }
 0x238   : > { %3358 = vmatprep.subr.mxu0 %v3576_v27  ;;  %3369 = vmatprep.subr.mxu1 %v3576_v27 }
 0x2b1   : > { %v874_v56 = vpop.f32.mrf.mxu0 }
 0x2b2   : > { %v997_v57 = vmul.f32 %v970_v19, %v874_v56  ;;  %v1022_v58 = vmul.f32 %v989_v28, %v874_v56 }
 0x2b3   : > { %v3324_v60 = vpop.f32.mrf.mxu0 }
 0x2b4   : > { %v998_v62 = vadd.f32 %v3121_v22, %v997_v57  ;;  %v3920_v1 = vadd.f32 %v1022_v58, %v1021_v43 }
 0x2b6   : > { %v1004_v7 = vadd.f32 %v1003_v25, %v998_v62  ;;  %v995_v25 = vmul.f32 0.5, %v994_v12 }
 0x2b8   : > { %v3922_v8 = vadd.f32 %v1005_v2, %v1004_v7  ;;  %v3946_v29 = vmul.f32 %v995_v25, %v3860_v37 }
 0x2ba   : > { %v1007_v37 = vmul.f32 0.5, %v3922_v8 }
 0x2f3   : > { %v1104_v13 = vpop.f32.mrf.mxu0  ;;  %v1212_v19 = vpop.f32.mrf.mxu1 }
 0x2f4   : > { %v1105_v21 = vadd.f32 %v3928_v11, %v1104_v13  ;;  %3125 = vmatmul.mubr.msk.f32.vlgmr.msra.gmra.mxu0 %vm1216_vm2, %v1212_v19  ;;  %3126 = vmatmul.mubr.msk.f32.vlgmr.msra.gmra.mxu1 %vm1216_vm2, %v1212_v19  ;;  %v1024_v19 = vmul.f32 0.5, %v3920_v1 }
 0x2f5   : > { %3359 = vmatpush3.msra.mxu0 %v3824_v14  ;;  %3370 = vmatpush3.msra.mxu1 %v3796_v3  ;;  %v3346_v22 = vpop.f32.mrf.mxu0  ;;  %v3357_v23 = vpop.f32.mrf.mxu1 }
 0x2f6   : > { %v1109_v24 = vand.u32 2147483647, %v1105_v21  ;;  %3360 = vmatprep.subr.mxu0 %v3576_v27  ;;  %3371 = vmatprep.subr.mxu1 %v3576_v27  ;;  %v1108_v33 = vmax.f32 %v1105_v21, 0.0 }
 0x2f7   : > { %3361 = vmatpush3.msra.mxu0 %v3830_v15  ;;  %3372 = vmatpush3.msra.mxu1 %v3803_v4 }
 0x2f8   : > { %v1110_v26 = vsub.f32 0.0, %v1109_v24  ;;  %3362 = vmatprep.subr.mxu0 %v3576_v27  ;;  %3373 = vmatprep.subr.mxu1 %v3576_v27 }
 0x2f9   : > { %3363 = vmatpush3.msra.mxu0 %v3839_v16  ;;  %3374 = vmatpush3.msra.mxu1 %v3810_v5 }
 0x2fa   : > { %v1111_v28 = vmul.f32 1.442695, %v1110_v26  ;;  %3364 = vmatprep.subr.mxu0 %v3576_v27  ;;  %3375 = vmatprep.subr.mxu1 %v3576_v27 }
 0x2fb   : > { %3365 = vmatpush3.msra.mxu0 %v3846_v17  ;;  %3366 = vmatprep.mubr.msk.f32.mxu0 %vm3577_vm1, %v3576_v27 }
 0x2fc   : > { %3498 = vpow2.f32 %v1111_v28  ;;  %3376 = vmatpush3.msra.mxu1 %v3817_v6  ;;  %3377 = vmatprep.mubr.msk.f32.mxu1 %vm3577_vm1, %v3576_v27 }
 0x2fd   : > { %3367 = vmatmul.mubr.msk.f32.vlgmr.msra.gmra.mxu0 %vm596_vm0, %v3946_v29  ;;  %3378 = vmatmul.mubr.msk.f32.vlgmr.msra.gmra.mxu1 %vm596_vm0, %v3946_v29 }
 0x2fe   : > { %1617 = vmatprep.subr.mxu0 %v3873_v48  ;;  %1688 = vmatprep.subr.mxu1 %v3878_v49 }
 0x2ff   : > { %1618 = vmatpush1.msra.mxu0 %v3883_v50  ;;  %1689 = vmatpush1.msra.mxu1 %v3890_v51 }
 0x300   : > { %1619 = vmatprep.subr.mxu0 %v3895_v52  ;;  %1690 = vmatprep.subr.mxu1 %v3900_v53 }
 0x301   : > { %1620 = vmatpush1.msra.mxu0 %v3907_v54  ;;  %1691 = vmatpush1.msra.mxu1 %v3912_v55 }
 0x302   : > { %1653 = vmatprep.mubr.f32.mxu0 %v3576_v27  ;;  %1724 = vmatprep.mubr.f32.mxu1 %v3576_v27 }
 0x303   : > { %3380 = vmatprep.subr.mxu0 %v3576_v27  ;;  %3391 = vmatprep.subr.mxu1 %v3576_v27 }
 0x309   : > { %v3499_v30 = vpop.eup %3498 }
 0x30a   : > { %v1113_v31 = vadd.f32 1.0, %v3499_v30 }
 0x30c   : > { %3500 = vlog2.f32 %v1113_v31 }
 0x30d   : > { %3502 = vtanh.f32 %v1007_v37 }
 0x319   : > { %v3501_v32 = vpop.eup %3500 }
 0x31a   : > { %v1115_v34 = vmul.f32 0.6931472, %v3501_v32  ;;  %v3503_v40 = vpop.eup %3502 }
 0x31b   : > { %v1009_v43 = vadd.f32 1.0, %v3503_v40 }
 0x31c   : > { %v3970_v35 = vadd.f32 %v1115_v34, %v1108_v33 }
 0x31d   : > { %v1010_v58 = vmul.f32 0.5, %v1009_v43 }
 0x31e   : > { %1121 = vrot.lane.b32.xlu1 %v3970_v35, %s3578_s21  ;;  %1118 = vrot.lane.b32.xlu0 %v3970_v35, %s3579_s0  ;;  %v3978_v36 = vmul.f32 %v3970_v35, %v3862_v47 }
 0x31f   : > { %v4011_v2 = vmul.f32 %v1010_v58, %v3922_v8 }
 0x322   : > { %1124 = vrot.lane.b32.xlu1 %v3970_v35, %s3580_s17  ;;  %1134 = vrot.lane.b32.xlu0 %v3978_v36, %s3579_s0 }
 0x326   : > { %1137 = vrot.lane.b32.xlu1 %v3978_v36, %s3578_s21 }
 0x3b4   : > { %v3987_v38 = vpop.f32.mrf.mxu0  ;;  %v3989_v39 = vpop.f32.mrf.mxu1 }
 0x3b6   : > { %v3991_v41 = vpop.f32.mrf.mxu0  ;;  %v3993_v42 = vpop.f32.mrf.mxu1 }
 0x3bd   : > { %v1476_v44 = vpop.f32.mrf.mxu0  ;;  %v1582_v45 = vpop.f32.mrf.mxu1 }
 0x3be   : > { %v1477_v46 = vadd.f32 %v3928_v11, %v1476_v44  ;;  %3129 = vmatmul.mubr.msk.f32.vlgmr.msra.gmra.mxu0 %vm1216_vm2, %v1582_v45  ;;  %3130 = vmatmul.mubr.msk.f32.vlgmr.msra.gmra.mxu1 %vm1216_vm2, %v1582_v45  ;;  %v2454_v45 = vld [vmem:[%s4559_s10 + $0x18] sm:$0xff] }
 0x3bf   : > { %3381 = vmatpush3.msra.mxu0 %v3824_v14  ;;  %3392 = vmatpush3.msra.mxu1 %v3796_v3  ;;  %v3368_v47 = vpop.f32.mrf.mxu0  ;;  %v3379_v56 = vpop.f32.mrf.mxu1 }
 0x3c0   : > { %v1481_v57 = vand.u32 2147483647, %v1477_v46  ;;  %3382 = vmatprep.subr.mxu0 %v3576_v27  ;;  %3393 = vmatprep.subr.mxu1 %v3576_v27  ;;  %v1480_v10 = vmax.f32 %v1477_v46, 0.0 }
 0x3c1   : > { %3383 = vmatpush3.msra.mxu0 %v3830_v15  ;;  %3394 = vmatpush3.msra.mxu1 %v3803_v4 }
 0x3c2   : > { %v1482_v60 = vsub.f32 0.0, %v1481_v57  ;;  %3384 = vmatprep.subr.mxu0 %v3576_v27  ;;  %3395 = vmatprep.subr.mxu1 %v3576_v27  ;;  %v2453_v57 = vld [vmem:[%s4559_s10 + $0x10] sm:$0xff] }
 0x3c3   : > { %3385 = vmatpush3.msra.mxu0 %v3839_v16  ;;  %3396 = vmatpush3.msra.mxu1 %v3810_v5 }
 0x3c4   : > { %v1483_v62 = vmul.f32 1.442695, %v1482_v60  ;;  %3386 = vmatprep.subr.mxu0 %v3576_v27  ;;  %3397 = vmatprep.subr.mxu1 %v3576_v27 }
 0x3c5   : > { %3387 = vmatpush3.msra.mxu0 %v3846_v17  ;;  %3388 = vmatprep.mubr.msk.f32.mxu0 %vm3577_vm1, %v3576_v27 }
 0x3c6   : > { %3504 = vpow2.f32 %v1483_v62  ;;  %3398 = vmatpush3.msra.mxu1 %v3817_v6  ;;  %3399 = vmatprep.mubr.msk.f32.mxu1 %vm3577_vm1, %v3576_v27 }
 0x3c7   : > { %3389 = vmatmul.mubr.msk.f32.vlgmr.msra.gmra.mxu0 %vm596_vm0, %v4011_v2  ;;  %3400 = vmatmul.mubr.msk.f32.vlgmr.msra.gmra.mxu1 %vm596_vm0, %v4011_v2 }
 0x3c8   : > { %1965 = vmatprep.subr.mxu0 %v3873_v48  ;;  %2036 = vmatprep.subr.mxu1 %v3878_v49 }
 0x3c9   : > { %1966 = vmatpush1.msra.mxu0 %v3883_v50  ;;  %2037 = vmatpush1.msra.mxu1 %v3890_v51 }
 0x3ca   : > { %1967 = vmatprep.subr.mxu0 %v3895_v52  ;;  %2038 = vmatprep.subr.mxu1 %v3900_v53 }
 0x3cb   : > { %1968 = vmatpush1.msra.mxu0 %v3907_v54  ;;  %2039 = vmatpush1.msra.mxu1 %v3912_v55 }
 0x3cc   : > { %2001 = vmatprep.mubr.f32.mxu0 %v3576_v27  ;;  %2072 = vmatprep.mubr.f32.mxu1 %v3576_v27 }
 0x3cd   : > { %3402 = vmatprep.subr.mxu0 %v3576_v27  ;;  %3413 = vmatprep.subr.mxu1 %v3576_v27 }
 0x3d3   : > { %v3505_v7 = vpop.eup %3504 }
 0x3d4   : > { %v1485_v8 = vadd.f32 1.0, %v3505_v7 }
 0x3d6   : > { %3506 = vlog2.f32 %v1485_v8  ;;  %v2451_v8 = vld [vmem:[%s4559_s10] sm:$0xff] }
 0x3d7   : > { %3508 = vtanh.f32 %v1024_v19 }
 0x3e3   : > { %v3507_v9 = vpop.eup %3506 }
 0x3e4   : > { %v1487_v12 = vmul.f32 0.6931472, %v3507_v9  ;;  %v3509_v23 = vpop.eup %3508 }
 0x3e5   : > { %v1026_v26 = vadd.f32 1.0, %v3509_v23 }
 0x3e6   : > { %v4035_v13 = vadd.f32 %v1487_v12, %v1480_v10 }
 0x3e7   : > { %v1027_v37 = vmul.f32 0.5, %v1026_v26  ;;  %v2696_v26 = vld [vmem:[%s4563_s14 + $0x78] sm:$0xff] }
 0x3e8   : > { %1493 = vrot.lane.b32.xlu0 %v4035_v13, %s3578_s21  ;;  %1490 = vrot.lane.b32.xlu1 %v4035_v13, %s3579_s0 }
 0x3ec   : > { %1496 = vrot.lane.b32.xlu1 %v4035_v13, %s3580_s17 }
 0x47e   : > { %v4044_v21 = vpop.f32.mrf.mxu0  ;;  %v4046_v22 = vpop.f32.mrf.mxu1 }
 0x480   : > { %v4048_v24 = vpop.f32.mrf.mxu0  ;;  %v4050_v25 = vpop.f32.mrf.mxu1 }
 0x487   : > { %v1824_v28 = vpop.f32.mrf.mxu0  ;;  %v1930_v30 = vpop.f32.mrf.mxu1 }
 0x488   : > { %v1825_v31 = vadd.f32 %v3928_v11, %v1824_v28  ;;  %3133 = vmatmul.mubr.msk.f32.vlgmr.msra.gmra.mxu0 %vm1216_vm2, %v1930_v30  ;;  %3134 = vmatmul.mubr.msk.f32.vlgmr.msra.gmra.mxu1 %vm1216_vm2, %v1930_v30  ;;  %v2711_v28 = vld [vmem:[%s4563_s14 + $0xf0] sm:$0xff] }
 0x489   : > { %3403 = vmatpush3.msra.mxu0 %v3824_v14  ;;  %3414 = vmatpush3.msra.mxu1 %v3796_v3  ;;  %v3390_v32 = vpop.f32.mrf.mxu0  ;;  %v3401_v33 = vpop.f32.mrf.mxu1  ;;  %v4068_v14 = vmul.f32 %v1027_v37, %v3920_v1  ;;  %v2695_v30 = vld [vmem:[%s4563_s14 + $0x70] sm:$0xff]  ;;  %v2708_v37 = vld [vmem:[%s4563_s14 + $0xd8] sm:$0xff] }
 0x48a   : > { %v1829_v34 = vand.u32 2147483647, %v1825_v31  ;;  %3404 = vmatprep.subr.mxu0 %v3576_v27  ;;  %3415 = vmatprep.subr.mxu1 %v3576_v27  ;;  %v2694_v32 = vld [vmem:[%s4563_s14 + $0x68] sm:$0xff]  ;;  %v2709_v33 = vld [vmem:[%s4563_s14 + $0xe0] sm:$0xff] }
 0x48b   : > { %3405 = vmatpush3.msra.mxu0 %v3830_v15  ;;  %3416 = vmatpush3.msra.mxu1 %v3803_v4  ;;  %v1828_v15 = vmax.f32 %v1825_v31, 0.0  ;;  %v2710_v31 = vld [vmem:[%s4563_s14 + $0xe8] sm:$0xff] }
 0x48c   : > { %v1830_v40 = vsub.f32 0.0, %v1829_v34  ;;  %3406 = vmatprep.subr.mxu0 %v3576_v27  ;;  %3417 = vmatprep.subr.mxu1 %v3576_v27  ;;  %v2693_v34 = vld [vmem:[%s4563_s14 + $0x60] sm:$0xff] }
 0x48d   : > { %3407 = vmatpush3.msra.mxu0 %v3839_v16  ;;  %3418 = vmatpush3.msra.mxu1 %v3810_v5 }
 0x48e   : > { %v1831_v3 = vmul.f32 1.442695, %v1830_v40  ;;  %3408 = vmatprep.subr.mxu0 %v3576_v27  ;;  %3419 = vmatprep.subr.mxu1 %v3576_v27  ;;  %v2692_v40 = vld [vmem:[%s4563_s14 + $0x58] sm:$0xff] }
 0x48f   : > { %3409 = vmatpush3.msra.mxu0 %v3846_v17  ;;  %3410 = vmatprep.mubr.msk.f32.mxu0 %vm3577_vm1, %v3576_v27 }
 0x490   : > { %3510 = vpow2.f32 %v1831_v3  ;;  %3420 = vmatpush3.msra.mxu1 %v3817_v6  ;;  %3421 = vmatprep.mubr.msk.f32.mxu1 %vm3577_vm1, %v3576_v27  ;;  %v2707_v3 = vld [vmem:[%s4563_s14 + $0xd0] sm:$0xff] }
 0x491   : > { %3411 = vmatmul.mubr.msk.f32.vlgmr.msra.gmra.mxu0 %vm596_vm0, %v4068_v14  ;;  %3422 = vmatmul.mubr.msk.f32.vlgmr.msra.gmra.mxu1 %vm596_vm0, %v4068_v14 }
 0x492   : > { %2313 = vmatprep.subr.mxu0 %v3873_v48  ;;  %2384 = vmatprep.subr.mxu1 %v3878_v49 }
 0x493   : > { %2314 = vmatpush1.msra.mxu0 %v3883_v50  ;;  %2385 = vmatpush1.msra.mxu1 %v3890_v51 }
 0x494   : > { %2315 = vmatprep.subr.mxu0 %v3895_v52  ;;  %2386 = vmatprep.subr.mxu1 %v3900_v53 }
 0x495   : > { %2316 = vmatpush1.msra.mxu0 %v3907_v54  ;;  %2349 = vmatprep.mubr.f32.mxu0 %v3576_v27 }
 0x496   : > { %2387 = vmatpush1.msra.mxu1 %v3912_v55  ;;  %2420 = vmatprep.mubr.f32.mxu1 %v3576_v27 }
 0x497   : > { %3424 = vmatprep.subr.mxu0 %v3576_v27  ;;  %2556 = vmatprep.subr.mxu1 %v3873_v48 }
 0x49d   : > { %v3511_v4 = vpop.eup %3510 }
 0x49e   : > { %v1833_v5 = vadd.f32 1.0, %v3511_v4  ;;  %v2691_v4 = vld [vmem:[%s4563_s14 + $0x50] sm:$0xff] }
 0x4a0   : > { %3512 = vlog2.f32 %v1833_v5  ;;  %v2706_v5 = vld [vmem:[%s4563_s14 + $0xc8] sm:$0xff] }
 0x4ad   : > { %v3513_v6 = vpop.eup %3512 }
 0x4ae   : > { %v1835_v16 = vmul.f32 0.6931472, %v3513_v6  ;;  %v2690_v6 = vld [vmem:[%s4563_s14 + $0x48] sm:$0xff] }
 0x4b0   : > { %v4092_v17 = vadd.f32 %v1835_v16, %v1828_v15  ;;  %v2705_v15 = vld [vmem:[%s4563_s14 + $0xc0] sm:$0xff] }
 0x4b1   : > { %v2689_v16 = vld [vmem:[%s4563_s14 + $0x40] sm:$0xff] }
 0x4b2   : > { %1841 = vrot.lane.b32.xlu1 %v4092_v17, %s3578_s21  ;;  %1838 = vrot.lane.b32.xlu0 %v4092_v17, %s3579_s0  ;;  %v4155_v23 = vmul.f32 %v4092_v17, %v4011_v2  ;;  %v2712_v2 = vld [vmem:[%s4563_s14 + $0xf8] sm:$0xff] }
 0x4b6   : > { %1844 = vrot.lane.b32.xlu0 %v4092_v17, %s3580_s17 }
 0x548   : > { %v4100_v1 = vpop.f32.mrf.mxu0  ;;  %v4102_v48 = vpop.f32.mrf.mxu1 }
 0x54a   : > { %v4104_v43 = vpop.f32.mrf.mxu0  ;;  %v4106_v44 = vpop.f32.mrf.mxu1 }
 0x551   : > { %v2172_v46 = vpop.f32.mrf.mxu0  ;;  %v2278_v47 = vpop.f32.mrf.mxu1 }
 0x552   : > { %v2173_v56 = vadd.f32 %v3928_v11, %v2172_v46  ;;  %3137 = vmatmul.mubr.msk.f32.vlgmr.msra.gmra.mxu0 %vm1216_vm2, %v2278_v47  ;;  %3138 = vmatmul.mubr.msk.f32.vlgmr.msra.gmra.mxu1 %vm1216_vm2, %v2278_v47  ;;  %v2452_v11 = vld [vmem:[%s4559_s10 + $0x8] sm:$0xff]  ;;  %v2688_v46 = vld [vmem:[%s4563_s14 + $0x38] sm:$0xff]  ;;  %v2703_v47 = vld [vmem:[%s4563_s14 + $0xb0] sm:$0xff] }
 0x553   : > { %3425 = vmatpush3.msra.mxu0 %v2454_v45  ;;  %v3412_v58 = vpop.f32.mrf.mxu0  ;;  %v3423_v60 = vpop.f32.mrf.mxu1  ;;  %3432 = vmatprep.mubr.msk.f32.mxu0 %vm3577_vm1, %v3576_v27  ;;  %v2704_v45 = vld [vmem:[%s4563_s14 + $0xb8] sm:$0xff] }
 0x554   : > { %v2177_v62 = vand.u32 2147483647, %v2173_v56  ;;  %3426 = vmatprep.subr.mxu0 %v3576_v27  ;;  %2557 = vmatpush1.msra.mxu1 %v3883_v50  ;;  %v2176_v12 = vmax.f32 %v2173_v56, 0.0  ;;  %v2687_v56 = vld [vmem:[%s4563_s14 + $0x30] sm:$0xff]  ;;  %v2686_v58 = vld [vmem:[%s4563_s14 + $0x28] sm:$0xff]  ;;  %v2701_v60 = vld [vmem:[%s4563_s14 + $0xa0] sm:$0xff] }
 0x555   : > { %3427 = vmatpush3.msra.mxu0 %v2453_v57  ;;  %2558 = vmatprep.subr.mxu1 %v3895_v52  ;;  %v2702_v57 = vld [vmem:[%s4563_s14 + $0xa8] sm:$0xff] }
 0x556   : > { %v2178_v7 = vsub.f32 0.0, %v2177_v62  ;;  %3428 = vmatprep.subr.mxu0 %v3576_v27  ;;  %2559 = vmatpush1.msra.mxu1 %v3907_v54  ;;  %v2685_v62 = vld [vmem:[%s4563_s14 + $0x20] sm:$0xff] }
 0x557   : > { %3429 = vmatpush3.msra.mxu0 %v2452_v11  ;;  %2592 = vmatprep.mubr.f32.mxu1 %v3576_v27  ;;  %v2700_v11 = vld [vmem:[%s4563_s14 + $0x98] sm:$0xff] }
 0x558   : > { %v2179_v9 = vmul.f32 1.442695, %v2178_v7  ;;  %3430 = vmatprep.subr.mxu0 %v3576_v27  ;;  %2627 = vmatprep.subr.mxu1 %v3878_v49  ;;  %v4147_v49 = vmul.f32 %v4035_v13, %v3946_v29  ;;  %v2684_v7 = vld [vmem:[%s4563_s14 + $0x18] sm:$0xff] }
 0x559   : > { %3431 = vmatpush3.msra.mxu0 %v2451_v8  ;;  %v2699_v8 = vld [vmem:[%s4563_s14 + $0x90] sm:$0xff] }
 0x55a   : > { %3514 = vpow2.f32 %v2179_v9  ;;  %3433 = vmatmul.mubr.msk.f32.vlgmr.msra.gmra.mxu0 %vm596_vm0, %v4068_v14  ;;  %3212 = vmatprep.subr.mxu0 %v2712_v2  ;;  %v1122_v9 = vpop.permute.xlu1 %1121 }
 0x55b   : > { %3213 = vmatpush3.msra.mxu0 %v2696_v26 }
 0x55c   : > { %3214 = vmatprep.subr.mxu0 %v2711_v28 }
 0x55d   : > { %3215 = vmatpush3.msra.mxu0 %v2695_v30 }
 0x55e   : > { %3216 = vmatprep.subr.mxu0 %v2710_v31 }
 0x55f   : > { %3217 = vmatpush3.msra.mxu0 %v2694_v32 }
 0x560   : > { %3218 = vmatprep.subr.mxu0 %v2709_v33 }
 0x561   : > { %3219 = vmatpush3.msra.mxu0 %v2693_v34 }
 0x562   : > { %3220 = vmatprep.subr.mxu0 %v2708_v37 }
 0x563   : > { %3221 = vmatpush3.msra.mxu0 %v2692_v40 }
 0x564   : > { %3222 = vmatprep.subr.mxu0 %v2707_v3 }
 0x565   : > { %3223 = vmatpush3.msra.mxu0 %v2691_v4 }
 0x566   : > { %3224 = vmatprep.subr.mxu0 %v2706_v5 }
 0x567   : > { %v3515_v50 = vpop.eup %3514  ;;  %3225 = vmatpush3.msra.mxu0 %v2690_v6 }
 0x568   : > { %v2181_v52 = vadd.f32 1.0, %v3515_v50  ;;  %3226 = vmatprep.subr.mxu0 %v2705_v15  ;;  %v1119_v50 = vpop.permute.xlu0 %1118 }
 0x569   : > { %3227 = vmatpush3.msra.mxu0 %v2689_v16  ;;  %v1127_v2 = vsel %vm596_vm0, %v3970_v35, %v1119_v50 }
 0x56a   : > { %3516 = vlog2.f32 %v2181_v52  ;;  %3228 = vmatprep.subr.mxu0 %v2704_v45  ;;  %v1125_v52 = vpop.permute.xlu1 %1124  ;;  %v1129_v31 = vsel %vm1128_vm3, %v1127_v2, %v1122_v9 }
 0x56b   : > { %3229 = vmatpush3.msra.mxu0 %v2688_v46  ;;  %v4268_v32 = vsel %vm1130_vm4, %v1129_v31, %v1125_v52 }
 0x56c   : > { %3230 = vmatprep.subr.mxu0 %v2703_v47 }
 0x56d   : > { %3231 = vmatpush3.msra.mxu0 %v2687_v56 }
 0x56e   : > { %3232 = vmatprep.subr.mxu0 %v2702_v57 }
 0x56f   : > { %3233 = vmatpush3.msra.mxu0 %v2686_v58 }
 0x570   : > { %3234 = vmatprep.subr.mxu0 %v2701_v60 }
 0x571   : > { %3235 = vmatpush3.msra.mxu0 %v2685_v62 }
 0x572   : > { %3236 = vmatprep.subr.mxu0 %v2700_v11 }
 0x573   : > { %3237 = vmatpush3.msra.mxu0 %v2684_v7 }
 0x574   : > { %3238 = vmatprep.subr.mxu0 %v2699_v8 }
 0x577   : > { %v3517_v10 = vpop.eup %3516 }
 0x578   : > { %v2183_v19 = vmul.f32 0.6931472, %v3517_v10  ;;  %v1135_v10 = vpop.permute.xlu0 %1134 }
 0x579   : > { %v1143_v52 = vsel %vm596_vm0, %v3978_v36, %v1135_v10 }
 0x57a   : > { %v4135_v54 = vadd.f32 %v2183_v19, %v2176_v12  ;;  %v1138_v12 = vpop.permute.xlu1 %1137  ;;  %v4259_v19 = vld [vmem:[%s4560_s11] sm:$0xf] }
 0x57b   : > { %v1366_v30 = vrot.slane %v4259_v19, %v1016_v63  ;;  %v1370_v34 = vrot.slane %v4259_v19, %v1001_v0 }
 0x57c   : > { %2189 = vrot.lane.b32.xlu0 %v4135_v54, %s3578_s21  ;;  %2186 = vrot.lane.b32.xlu1 %v4135_v54, %s3579_s0  ;;  %v4167_v29 = vmul.f32 %v4135_v54, %v4068_v14  ;;  %v1494_v26 = vpop.permute.xlu0 %1493 }
 0x57d   : > { %v1383_v35 = vmul.f32 %v1366_v30, %v4268_v32  ;;  %v1384_v3 = vmul.f32 %v1370_v34, %v4268_v32 }
 0x57e   : > { %v1491_v28 = vpop.permute.xlu1 %1490 }
 0x57f   : > { %v1499_v40 = vsel %vm596_vm0, %v4035_v13, %v1491_v28  ;;  %v1387_v4 = vmul.f32 1.442695, %v1383_v35  ;;  %v1389_v16 = vmul.f32 1.442695, %v1384_v3 }
 0x580   : > { %1140 = vrot.lane.b32.xlu0 %v3978_v36, %s3580_s17  ;;  %2192 = vrot.lane.b32.xlu1 %v4135_v54, %s3580_s17  ;;  %v1839_v33 = vpop.permute.xlu0 %1838  ;;  %v1500_v6 = vsel %vm1128_vm3, %v1499_v40, %v1494_v26  ;;  %v1144_v26 = vsel %vm1128_vm3, %v1143_v52, %v1138_v12 }
 0x581   : > { %3518 = vpow2.f32 %v1387_v4  ;;  %v1847_v0 = vsel %vm596_vm0, %v4092_v17, %v1839_v33 }
 0x582   : > { %v1497_v37 = vpop.permute.xlu1 %1496  ;;  %3520 = vpow2.f32 %v1389_v16 }
 0x583   : > { %v4279_v15 = vsel %vm1130_vm4, %v1500_v6, %v1497_v37 }
 0x584   : > { %1507 = vrot.lane.b32.xlu0 %v4147_v49, %s3578_s21  ;;  %1504 = vrot.lane.b32.xlu1 %v4147_v49, %s3579_s0  ;;  %v1845_v5 = vpop.permute.xlu0 %1844  ;;  %v1731_v47 = vmul.f32 %v4279_v15, %v1366_v30  ;;  %v1732_v13 = vmul.f32 %v4279_v15, %v1370_v34 }
 0x586   : > { %v1842_v63 = vpop.permute.xlu1 %1841  ;;  %v1735_v60 = vmul.f32 1.442695, %v1731_v47  ;;  %v1737_v7 = vmul.f32 1.442695, %v1732_v13 }
 0x587   : > { %v1848_v56 = vsel %vm1128_vm3, %v1847_v0, %v1842_v63 }
 0x588   : > { %1852 = vrot.lane.b32.xlu0 %v4155_v23, %s3579_s0  ;;  %1510 = vrot.lane.b32.xlu1 %v4147_v49, %s3580_s17  ;;  %v4287_v57 = vsel %vm1130_vm4, %v1848_v56, %v1845_v5  ;;  %3522 = vpow2.f32 %v1735_v60 }
 0x589   : > { %v2079_v17 = vmul.f32 %v4287_v57, %v1366_v30  ;;  %v2080_v9 = vmul.f32 %v4287_v57, %v1370_v34  ;;  %3524 = vpow2.f32 %v1737_v7 }
 0x58b   : > { %v2083_v28 = vmul.f32 1.442695, %v2079_v17  ;;  %v2085_v35 = vmul.f32 1.442695, %v2080_v9 }
 0x58c   : > { %1858 = vrot.lane.b32.xlu0 %v4155_v23, %s3580_s17  ;;  %1855 = vrot.lane.b32.xlu1 %v4155_v23, %s3578_s21 }
 0x58d   : > { %3526 = vpow2.f32 %v2083_v28 }
 0x58e   : > { %v3519_v33 = vpop.eup %3518  ;;  %3528 = vpow2.f32 %v2085_v35 }
 0x58f   : > { %v3521_v12 = vpop.eup %3520  ;;  %v1395_v4 = vmul.f32 0.0, %v3519_v33 }
 0x590   : > { %2203 = vrot.lane.b32.xlu0 %v4167_v29, %s3578_s21  ;;  %2200 = vrot.lane.b32.xlu1 %v4167_v29, %s3579_s0  ;;  %s3111_s0 = sshll.u32 %s4572_s24, 3 }
 0x591   : > { %s566_s20 = scalar_lea.vmem %s4565_s16, %s3111_s0 }
 0x594   : > { %2206 = vrot.lane.b32.xlu1 %v4167_v29, %s3580_s17 }
 0x595   : > { %v3523_v47 = vpop.eup %3522 }
 0x5ee   : > { %v2190_v45 = vpop.permute.xlu0 %2189  ;;  %v2187_v46 = vpop.permute.xlu1 %2186 }
 0x5ef   : > { %v2195_v11 = vsel %vm596_vm0, %v4135_v54, %v2187_v46 }
 0x5f0   : > { %v2196_v50 = vsel %vm1128_vm3, %v2195_v11, %v2190_v45 }
 0x5f2   : > { %v2193_v58 = vpop.permute.xlu1 %2192  ;;  %v1141_v62 = vpop.permute.xlu0 %1140 }
 0x5f3   : > { %v4297_v2 = vsel %vm1130_vm4, %v2196_v50, %v2193_v58  ;;  %v4301_v31 = vsel %vm1130_vm4, %v1144_v26, %v1141_v62  ;;  %v3525_v62 = vpop.eup %3524 }
 0x5f4   : > { %v2427_v37 = vmul.f32 %v4297_v2, %v1366_v30  ;;  %v1399_v36 = vmul.f32 %v3987_v38, %v4301_v31  ;;  %v2428_v10 = vmul.f32 %v4297_v2, %v1370_v34  ;;  %v1400_v63 = vmul.f32 %v3991_v41, %v4301_v31  ;;  %v3527_v9 = vpop.eup %3526 }
 0x5f5   : > { %v3529_v52 = vpop.eup %3528 }
 0x5f6   : > { %v1505_v8 = vpop.permute.xlu1 %1504  ;;  %v1508_v54 = vpop.permute.xlu0 %1507  ;;  %v2431_v5 = vmul.f32 1.442695, %v2427_v37  ;;  %v1403_v0 = vadd.f32 %v1399_v36, %v1395_v4  ;;  %v2433_v45 = vmul.f32 1.442695, %v2428_v10 }
 0x5f7   : > { %v1513_v40 = vsel %vm596_vm0, %v4147_v49, %v1505_v8  ;;  %v1396_v49 = vmul.f32 0.0, %v3521_v12 }
 0x5f8   : > { %v1514_v30 = vsel %vm1128_vm3, %v1513_v40, %v1508_v54  ;;  %3530 = vpow2.f32 %v2431_v5  ;;  %v1743_v13 = vmul.f32 %v3523_v47, %v1403_v0  ;;  %v2744_v0 = vld [vmem:[%s4563_s14 + $0x1f8] sm:$0xff] }
 0x5f9   : > { %v1404_v38 = vadd.f32 %v1400_v63, %v1396_v49  ;;  %3532 = vpow2.f32 %v2433_v45  ;;  %v2728_v45 = vld [vmem:[%s4563_s14 + $0x178] sm:$0xff] }
 0x5fa   : > { %v1511_v3 = vpop.permute.xlu1 %1510  ;;  %v1853_v6 = vpop.permute.xlu0 %1852  ;;  %v2740_v47 = vld [vmem:[%s4563_s14 + $0x1d8] sm:$0xff] }
 0x5fb   : > { %v4313_v16 = vsel %vm1130_vm4, %v1514_v30, %v1511_v3  ;;  %v1861_v41 = vsel %vm596_vm0, %v4155_v23, %v1853_v6  ;;  %v1744_v11 = vmul.f32 %v3525_v62, %v1404_v38  ;;  %v2741_v38 = vld [vmem:[%s4563_s14 + $0x1e0] sm:$0xff] }
 0x5fc   : > { %v1747_v34 = vmul.f32 %v4044_v21, %v4313_v16  ;;  %v1748_v56 = vmul.f32 %v4048_v24, %v4313_v16  ;;  %v2737_v62 = vld [vmem:[%s4563_s14 + $0x1c0] sm:$0xff] }
 0x5fe   : > { %v1856_v46 = vpop.permute.xlu1 %1855  ;;  %v1859_v58 = vpop.permute.xlu0 %1858  ;;  %v1751_v7 = vadd.f32 %v1747_v34, %v1743_v13  ;;  %v1752_v8 = vadd.f32 %v1748_v56, %v1744_v11  ;;  %v2725_v34 = vld [vmem:[%s4563_s14 + $0x160] sm:$0xff]  ;;  %v2739_v13 = vld [vmem:[%s4563_s14 + $0x1d0] sm:$0xff] }
 0x5ff   : > { %v1862_v60 = vsel %vm1128_vm3, %v1861_v41, %v1856_v46  ;;  %v2743_v46 = vld [vmem:[%s4563_s14 + $0x1f0] sm:$0xff]  ;;  %v2724_v41 = vld [vmem:[%s4563_s14 + $0x158] sm:$0xff]  ;;  %v2721_v11 = vld [vmem:[%s4563_s14 + $0x140] sm:$0xff] }
 0x600   : > { %v4323_v17 = vsel %vm1130_vm4, %v1862_v60, %v1859_v58  ;;  %v2091_v50 = vmul.f32 %v3527_v9, %v1751_v7  ;;  %v2092_v26 = vmul.f32 %v3529_v52, %v1752_v8  ;;  %v2723_v56 = vld [vmem:[%s4563_s14 + $0x150] sm:$0xff]  ;;  %v2738_v58 = vld [vmem:[%s4563_s14 + $0x1c8] sm:$0xff]  ;;  %v2736_v7 = vld [vmem:[%s4563_s14 + $0x1b8] sm:$0xff] }
 0x601   : > { %v2095_v23 = vmul.f32 %v4100_v1, %v4323_v17  ;;  %v2096_v24 = vmul.f32 %v4104_v43, %v4323_v17  ;;  %v2722_v60 = vld [vmem:[%s4563_s14 + $0x148] sm:$0xff]  ;;  %v2720_v8 = vld [vmem:[%s4563_s14 + $0x138] sm:$0xff]  ;;  %v2719_v9 = vld [vmem:[%s4563_s14 + $0x130] sm:$0xff] }
 0x602   : > { %v2201_v21 = vpop.permute.xlu1 %2200  ;;  %v2204_v28 = vpop.permute.xlu0 %2203  ;;  %v2683_v52 = vld [vmem:[%s4563_s14 + $0x10] sm:$0xff] }
 0x603   : > { %v2209_v54 = vsel %vm596_vm0, %v4167_v29, %v2201_v21  ;;  %v2099_v35 = vadd.f32 %v2095_v23, %v2091_v50  ;;  %v2100_v3 = vadd.f32 %v2096_v24, %v2092_v26  ;;  %v2735_v21 = vld [vmem:[%s4563_s14 + $0x1b0] sm:$0xff]  ;;  %v2734_v23 = vld [vmem:[%s4563_s14 + $0x1a8] sm:$0xff]  ;;  %v2733_v24 = vld [vmem:[%s4563_s14 + $0x1a0] sm:$0xff]  ;;  %3239 = vmatpush3.msra.mxu0 %v2683_v52  ;;  %v2098_v52 = vmul.f32 %v4106_v44, %v4323_v17 }
 0x604   : > { %v2210_v40 = vsel %vm1128_vm3, %v2209_v54, %v2204_v28  ;;  %v2718_v50 = vld [vmem:[%s4563_s14 + $0x128] sm:$0xff]  ;;  %v2717_v28 = vld [vmem:[%s4563_s14 + $0x120] sm:$0xff] }
 0x605   : > { %v3531_v37 = vpop.eup %3530  ;;  %v2698_v26 = vld [vmem:[%s4563_s14 + $0x88] sm:$0xff] }
 0x606   : > { %v2207_v33 = vpop.permute.xlu1 %2206  ;;  %v3533_v36 = vpop.eup %3532  ;;  %v2439_v4 = vmul.f32 %v3531_v37, %v2099_v35  ;;  %3240 = vmatprep.subr.mxu0 %v2698_v26  ;;  %v2682_v54 = vld [vmem:[%s4563_s14 + $0x8] sm:$0xff]  ;;  %v2697_v35 = vld [vmem:[%s4563_s14 + $0x80] sm:$0xff]  ;;  %v2716_v37 = vld [vmem:[%s4563_s14 + $0x118] sm:$0xff] }
 0x607   : > { %v4333_v10 = vsel %vm1130_vm4, %v2210_v40, %v2207_v33  ;;  %v2440_v29 = vmul.f32 %v3533_v36, %v2100_v3  ;;  %v2732_v33 = vld [vmem:[%s4563_s14 + $0x198] sm:$0xff]  ;;  %3241 = vmatpush3.msra.mxu0 %v2682_v54  ;;  %v2681_v40 = vld [vmem:[%s4563_s14] sm:$0xff]  ;;  %v2731_v3 = vld [vmem:[%s4563_s14 + $0x190] sm:$0xff] }
 0x608   : > { %3242 = vmatprep.subr.mxu0 %v2697_v35  ;;  %v2715_v36 = vld [vmem:[%s4563_s14 + $0x110] sm:$0xff] }
 0x609   : > { %3243 = vmatpush3.msra.mxu0 %v2681_v40 }
 0x60a   : > { %3435 = vmatprep.subr.mxu0 %v3576_v27 }
 0x612   : > { %v2351_v1 = vpop.f32.mrf.mxu0 }
 0x613   : > { %v2443_v12 = vmul.f32 %v2351_v1, %v4333_v10  ;;  %v2730_v1 = vld [vmem:[%s4563_s14 + $0x188] sm:$0xff] }
 0x614   : > { %v2353_v43 = vpop.f32.mrf.mxu0 }
 0x615   : > { %v2444_v63 = vmul.f32 %v2353_v43, %v4333_v10  ;;  %v4337_v5 = vadd.f32 %v2443_v12, %v2439_v4  ;;  %v2714_v12 = vld [vmem:[%s4563_s14 + $0x108] sm:$0xff]  ;;  %v2729_v4 = vld [vmem:[%s4563_s14 + $0x180] sm:$0xff] }
 0x616   : > { %v2713_v43 = vld [vmem:[%s4563_s14 + $0x100] sm:$0xff] }
 0x617   : > { %v4339_v6 = vadd.f32 %v2444_v63, %v2440_v29  ;;  %v1378_v63 = vrot.slane %v4259_v19, %v969_v18  ;;  %v1374_v29 = vrot.slane %v4259_v19, %v988_v20 }
 0x619   : > { %v2082_v18 = vmul.f32 %v4287_v57, %v1378_v63  ;;  %v2081_v61 = vmul.f32 %v4287_v57, %v1374_v29 }
 0x61a   : > { %v2521_v30 = vpop.f32.mrf.mxu0 }
 0x61b   : > { %3140 = vmatmul.mubr.msk.f32.vlgmr.msra.gmra.mxu1 %vm1216_vm2, %v2521_v30  ;;  %v2089_v20 = vmul.f32 1.442695, %v2082_v18  ;;  %v2087_v19 = vmul.f32 1.442695, %v2081_v61 }
 0x61c   : > { %v3434_v49 = vpop.f32.mrf.mxu0  ;;  %2628 = vmatpush1.msra.mxu1 %v3890_v51  ;;  %2663 = vmatprep.mubr.f32.mxu1 %v3576_v27  ;;  %v2727_v51 = vld [vmem:[%s4563_s14 + $0x170] sm:$0xff] }
 0x61d   : > { %2629 = vmatprep.subr.mxu1 %v3900_v53  ;;  %v2742_v53 = vld [vmem:[%s4563_s14 + $0x1e8] sm:$0xff]  ;;  %v1385_v49 = vmul.f32 %v1374_v29, %v4268_v32 }
 0x61e   : > { %2630 = vmatpush1.msra.mxu1 %v3912_v55  ;;  %v2726_v55 = vld [vmem:[%s4563_s14 + $0x168] sm:$0xff] }
 0x61f   : > { %3141 = vmatmul.mubr.msk.f32.vlgmr.msra.gmra.mxu1 %vm1216_vm2, %v2521_v30  ;;  %3247 = vmatprep.subr.mxu1 %v2744_v0  ;;  %v1386_v30 = vmul.f32 %v1378_v63, %v4268_v32  ;;  %v2430_v32 = vmul.f32 %v4297_v2, %v1378_v63 }
 0x620   : > { %3248 = vmatpush3.msra.mxu1 %v2728_v45  ;;  %v1391_v45 = vmul.f32 1.442695, %v1385_v49  ;;  %v2969_v49 = vld [vmem:[%s4564_s15 + $0x18] sm:$0xff] }
 0x621   : > { %3249 = vmatprep.subr.mxu1 %v2743_v46  ;;  %v1393_v0 = vmul.f32 1.442695, %v1386_v30  ;;  %v1734_v46 = vmul.f32 %v4279_v15, %v1378_v63  ;;  %v2437_v57 = vmul.f32 1.442695, %v2430_v32  ;;  %v2886_v30 = vld [vmem:[%s4553_s4] sm:$0xff] }
 0x622   : > { %3250 = vmatpush3.msra.mxu1 %v2727_v51  ;;  %v1733_v51 = vmul.f32 %v4279_v15, %v1374_v29  ;;  %v1402_v15 = vmul.f32 %v3993_v42, %v4301_v31 }
 0x623   : > { %3251 = vmatprep.subr.mxu1 %v2742_v53  ;;  %3534 = vpow2.f32 %v1393_v0  ;;  %v1741_v53 = vmul.f32 1.442695, %v1734_v46  ;;  %v2968_v0 = vld [vmem:[%s4564_s15 + $0x10] sm:$0xff] }
 0x624   : > { %3252 = vmatpush3.msra.mxu1 %v2726_v55  ;;  %3536 = vpow2.f32 %v1391_v45  ;;  %v1739_v55 = vmul.f32 1.442695, %v1733_v51  ;;  %v2967_v45 = vld [vmem:[%s4564_s15 + $0x8] sm:$0xff] }
 0x625   : > { %3253 = vmatprep.subr.mxu1 %v2741_v38  ;;  %3538 = vpow2.f32 %v1741_v53 }
 0x626   : > { %3254 = vmatpush3.msra.mxu1 %v2725_v34  ;;  %3540 = vpow2.f32 %v1739_v55  ;;  %v2429_v34 = vmul.f32 %v4297_v2, %v1374_v29 }
 0x627   : > { %3255 = vmatprep.subr.mxu1 %v2740_v47  ;;  %3542 = vpow2.f32 %v2089_v20 }
 0x628   : > { %3256 = vmatpush3.msra.mxu1 %v2724_v41  ;;  %3544 = vpow2.f32 %v2087_v19  ;;  %v1401_v41 = vmul.f32 %v3989_v39, %v4301_v31 }
 0x629   : > { %3257 = vmatprep.subr.mxu1 %v2739_v13  ;;  %3546 = vpow2.f32 %v2437_v57 }
 0x62a   : > { %3258 = vmatpush3.msra.mxu1 %v2723_v56 }
 0x62b   : > { %3259 = vmatprep.subr.mxu1 %v2738_v58  ;;  %v2435_v58 = vmul.f32 1.442695, %v2429_v34  ;;  %v3142_v34 = vld [vmem:[%s4561_s12] ss:$0 sm:$0xff] }
 0x62c   : > { %3260 = vmatpush3.msra.mxu1 %v2722_v60 }
 0x62d   : > { %3261 = vmatprep.subr.mxu1 %v2737_v62  ;;  %3548 = vpow2.f32 %v2435_v58 }
 0x62e   : > { %3262 = vmatpush3.msra.mxu1 %v2721_v11  ;;  %v1750_v11 = vmul.f32 %v4050_v25, %v4313_v16  ;;  %v2097_v25 = vmul.f32 %v4102_v48, %v4323_v17  ;;  %v2889_v48 = vld [vmem:[%s4553_s4 + $0x18] sm:$0xff] }
 0x62f   : > { %3263 = vmatprep.subr.mxu1 %v2736_v7  ;;  %v1749_v7 = vmul.f32 %v4046_v22, %v4313_v16 }
 0x630   : > { %3264 = vmatpush3.msra.mxu1 %v2720_v8  ;;  %v3535_v38 = vpop.eup %3534 }
 0x631   : > { %3265 = vmatprep.subr.mxu1 %v2735_v21  ;;  %v3537_v47 = vpop.eup %3536  ;;  %v1398_v13 = vmul.f32 0.0, %v3535_v38 }
 0x632   : > { %3266 = vmatpush3.msra.mxu1 %v2719_v9  ;;  %v1397_v56 = vmul.f32 0.0, %v3537_v47  ;;  %v3539_v2 = vpop.eup %3538 }
 0x633   : > { %3267 = vmatprep.subr.mxu1 %v2734_v23  ;;  %v1406_v60 = vadd.f32 %v1402_v15, %v1398_v13  ;;  %v3541_v42 = vpop.eup %3540  ;;  %v2422_v23 = vpop.f32.mrf.mxu1  ;;  %v2676_v15 = vmul.f32 %v3142_v34, %v4068_v14 }
 0x634   : > { %3268 = vmatpush3.msra.mxu1 %v2718_v50  ;;  %v1405_v62 = vadd.f32 %v1401_v41, %v1397_v56  ;;  %v3543_v31 = vpop.eup %3542  ;;  %v2445_v40 = vmul.f32 %v2422_v23, %v4333_v10 }
 0x635   : > { %3269 = vmatprep.subr.mxu1 %v2733_v24  ;;  %v1746_v8 = vmul.f32 %v3539_v2, %v1406_v60  ;;  %v3545_v50 = vpop.eup %3544 }
 0x636   : > { %3270 = vmatpush3.msra.mxu1 %v2717_v28  ;;  %v1745_v21 = vmul.f32 %v3541_v42, %v1405_v62  ;;  %v2424_v28 = vpop.f32.mrf.mxu1 }
 0x637   : > { %3271 = vmatprep.subr.mxu1 %v2732_v33  ;;  %v1754_v9 = vadd.f32 %v1750_v11, %v1746_v8  ;;  %v3547_v33 = vpop.eup %3546 }
 0x638   : > { %3272 = vmatpush3.msra.mxu1 %v2716_v37  ;;  %v1753_v39 = vadd.f32 %v1749_v7, %v1745_v21  ;;  %v2446_v37 = vmul.f32 %v2424_v28, %v4333_v10  ;;  %v2888_v10 = vld [vmem:[%s4553_s4 + $0x10] sm:$0xff] }
 0x639   : > { %3273 = vmatprep.subr.mxu1 %v2731_v3  ;;  %v2094_v24 = vmul.f32 %v3543_v31, %v1754_v9 }
 0x63a   : > { %3274 = vmatpush3.msra.mxu1 %v2715_v36  ;;  %v2093_v26 = vmul.f32 %v3545_v50, %v1753_v39  ;;  %v3549_v35 = vpop.eup %3548 }
 0x63b   : > { %3275 = vmatprep.subr.mxu1 %v2730_v1  ;;  %v2102_v54 = vadd.f32 %v2098_v52, %v2094_v24 }
 0x63c   : > { %3276 = vmatpush3.msra.mxu1 %v2714_v12  ;;  %v2101_v16 = vadd.f32 %v2097_v25, %v2093_v26 }
 0x63d   : > { %3277 = vmatprep.subr.mxu1 %v2729_v4  ;;  %v2442_v1 = vmul.f32 %v3547_v33, %v2102_v54 }
 0x63e   : > { %3278 = vmatpush3.msra.mxu1 %v2713_v43  ;;  %v2441_v12 = vmul.f32 %v3549_v35, %v2101_v16 }
 0x63f   : > { %3446 = vmatprep.subr.mxu1 %v3576_v27  ;;  %v2450_v17 = vadd.f32 %v2446_v37, %v2442_v1 }
 0x640   : > { %v2449_v43 = vadd.f32 %v2445_v40, %v2441_v12 }
 0x6db   : > { %v2594_v22 = vpop.f32.mrf.mxu1 }
 0x6dc   : > { %v2677_v44 = vmul.f32 %v2594_v22, %v4337_v5 }
 0x6dd   : > { %v2596_v3 = vpop.f32.mrf.mxu1 }
 0x6de   : > { %v2678_v36 = vmul.f32 %v2596_v3, %v4339_v6  ;;  %v2887_v6 = vld [vmem:[%s4553_s4 + $0x8] sm:$0xff] }
 0x6df   : > { %v2665_v4 = vpop.f32.mrf.mxu1 }
 0x6e0   : > { %2809 = vmatprep.mubr.f32.mxu0 %v2678_v36  ;;  %v2679_v5 = vmul.f32 %v2665_v4, %v2449_v43 }
 0x6e1   : > { %v2667_v63 = vpop.f32.mrf.mxu1  ;;  %2810 = vmatmul.mubr.f32.vlgmr.msra.gmra.mxu0 %v2677_v44 }
 0x6e2   : > { %v2680_v29 = vmul.f32 %v2667_v63, %v2450_v17  ;;  %3436 = vmatpush3.msra.mxu0 %v2889_v48  ;;  %3443 = vmatprep.mubr.msk.f32.mxu0 %vm3577_vm1, %v3576_v27 }
 0x6e3   : > { %3437 = vmatprep.subr.mxu0 %v3576_v27 }
 0x6e4   : > { %3438 = vmatpush3.msra.mxu0 %v2888_v10  ;;  %2879 = vmatprep.mubr.f32.mxu1 %v2680_v29 }
 0x6e5   : > { %3439 = vmatprep.subr.mxu0 %v3576_v27  ;;  %2880 = vmatmul.mubr.f32.vlgmr.msra.gmra.mxu1 %v2679_v5 }
 0x6e6   : > { %3440 = vmatpush3.msra.mxu0 %v2887_v6  ;;  %3454 = vmatprep.mubr.msk.f32.mxu1 %vm3577_vm1, %v3576_v27 }
 0x6e7   : > { %3441 = vmatprep.subr.mxu0 %v3576_v27  ;;  %3447 = vmatpush3.msra.mxu1 %v2969_v49 }
 0x6e8   : > { %3442 = vmatpush3.msra.mxu0 %v2886_v30  ;;  %3448 = vmatprep.subr.mxu1 %v3576_v27 }
 0x6e9   : > { %3444 = vmatmul.mubr.msk.f32.vlgmr.msra.gmra.mxu0 %vm596_vm0, %v3773_v59  ;;  %3449 = vmatpush3.msra.mxu1 %v2968_v0  ;;  %v2966_v59 = vld [vmem:[%s4564_s15] sm:$0xff] }
 0x6ea   : > { %3450 = vmatprep.subr.mxu1 %v3576_v27 }
 0x6eb   : > { %3451 = vmatpush3.msra.mxu1 %v2967_v45 }
 0x6ec   : > { %3452 = vmatprep.subr.mxu1 %v3576_v27 }
 0x6ed   : > { %3453 = vmatpush3.msra.mxu1 %v2966_v59 }
 0x7a1   : > { %v3244_v46 = vpop.f32.mrf.mxu0 }
 0x7a3   : > { %v3245_v51 = vpop.f32.mrf.mxu0 }
 0x7a4   : > { %v3246_v32 = vadd.f32 %v3245_v51, %v3244_v46 }
 0x7a5   : > { %v3279_v61 = vpop.f32.mrf.mxu1 }
 0x7a7   : > { %v3280_v20 = vpop.f32.mrf.mxu1 }
 0x7a8   : > { %v3281_v19 = vadd.f32 %v3280_v20, %v3279_v61 }
 0x7a9   : > { %v2956_v53 = vpop.f32.mrf.mxu0 }
 0x7aa   : > { %v2960_v55 = vmul.f32 0.5, %v2956_v53  ;;  %v2882_v47 = vadd.f32 %v3281_v19, %v3246_v32 }
 0x7ab   : > { %v3445_v18 = vpop.f32.mrf.mxu0 }
 0x7ac   : > { %3550 = vtanh.f32 %v2960_v55  ;;  %v2885_v13 = vadd.f32 %v2882_v47, %v2676_v15 }
 0x7b9   : > { %v3551_v38 = vpop.eup %3550 }
 0x7ba   : > { %v2962_v27 = vadd.f32 1.0, %v3551_v38 }
 0x7bc   : > { %v2963_v41 = vmul.f32 0.5, %v2962_v27 }
 0x7be   : > { %v2964_v57 = vmul.f32 %v2963_v41, %v2956_v53 }
 0x7c0   : > { %v2965_v56 = vmul.f32 %v2964_v57, %v2885_v13 }
 0x7c2   : > { %3455 = vmatmul.mubr.msk.f32.vlgmr.msra.gmra.mxu1 %vm596_vm0, %v2965_v56 }
 0x882   : > { %v3039_v58 = vpop.f32.mrf.mxu1 }
 0x883   : > { %3043 = vst.msk [vmem:[%s566_s20] sm:$0xff] %vm596_vm0, %v3039_v58 }
 0x884   : > { %v3456_v60 = vpop.f32.mrf.mxu1 }
 0x885 PF: > { %p23_p9 = scmp.ge.s32.totalorder %s3683_s25, 4   ;;  %s4568_s21 = smov %s3570_s22 }
 0x886   : > { %s4569_s22 = smov %s3692_s28  ;;  %s4570_s23 = smov %s3683_s25 }
 0x887   :  { %25 = sbr.rel (!%p23_p9) target bundleno = 4 (0x4), region = 160 }

// kernel: gmb_layer_forward.9
= control target key start
LH: loop header
LB: loop body
LE: loop exit
PB: predicated region body
PF: predicated region fallthrough
CT: control target
= control target key end

     0   :  { %s1944_s0 = inlined_call_operand.vmem [shape: f32[16,32], index: 0, kind: input, shape index: {}]   ;;  %s1945_s1 = inlined_call_operand.vmem [shape: f32[16,32], index: 1, kind: input, shape index: {}]   ;;  %s1946_s2 = inlined_call_operand.vmem [shape: f32[16,32], index: 2, kind: input, shape index: {}]   ;;  %s1947_s3 = inlined_call_operand.vmem [shape: f32[16,32], index: 3, kind: input, shape index: {}]   ;;  %s1948_s4 = inlined_call_operand.vmem [shape: f32[16,32], index: 4, kind: input, shape index: {}]   ;;  %s1949_s5 = inlined_call_operand.vmem [shape: f32[16,32], index: 5, kind: input, shape index: {}]   ;;  %s1950_s6 = inlined_call_operand.vmem [shape: f32[1,32], index: 6, kind: input, shape index: {}]   ;;  %s1951_s7 = inlined_call_operand.vmem [shape: f32[1,32], index: 7, kind: input, shape index: {}]   ;;  %s1952_s8 = inlined_call_operand.vmem [shape: f32[1,32], index: 8, kind: input, shape index: {}]   ;;  %s1953_s9 = inlined_call_operand.vmem [shape: f32[1,32], index: 9, kind: input, shape index: {}]   ;;  %s1954_s10 = inlined_call_operand.vmem [shape: f32[1,32], index: 10, kind: input, shape index: {}]   ;;  %s1955_s11 = inlined_call_operand.vmem [shape: f32[1,32], index: 11, kind: input, shape index: {}]   ;;  %s1956_s12 = inlined_call_operand.vmem [shape: f32[32,32], index: 12, kind: input, shape index: {}]   ;;  %s1957_s13 = inlined_call_operand.vmem [shape: f32[1,32], index: 13, kind: input, shape index: {}]   ;;  %s1958_s14 = inlined_call_operand.vmem [shape: f32[32,32], index: 14, kind: input, shape index: {}]   ;;  %s1959_s15 = inlined_call_operand.vmem [shape: f32[1,32], index: 15, kind: input, shape index: {}]   ;;  %s1960_s16 = inlined_call_operand.vmem [shape: f32[32,32], index: 16, kind: input, shape index: {}]   ;;  %s1961_s17 = inlined_call_operand.vmem [shape: f32[1,32], index: 17, kind: input, shape index: {}]   ;;  %s1962_s18 = inlined_call_operand.vmem [shape: f32[32,32], index: 18, kind: input, shape index: {}]   ;;  %s1963_s19 = inlined_call_operand.vmem [shape: f32[1,32], index: 19, kind: input, shape index: {}]   ;;  %s1964_s20 = inlined_call_operand.vmem [shape: f32[1,32], index: 20, kind: input, shape index: {}]   ;;  %s1965_s21 = inlined_call_operand.vmem [shape: f32[1,32], index: 21, kind: input, shape index: {}]   ;;  %s1966_s22 = inlined_call_operand.hbm [shape: f32[16,32], index: 22, kind: output, shape index: {}]  }
   0x1   :  { %1974 = sst [smem:[#allocation11_spill]] %s1944_s0 }
   0x2   :  { %1975 = sst [smem:[#allocation12_spill]] %s1945_s1 }
   0x3   :  { %1976 = sst [smem:[#allocation13_spill]] %s1946_s2 }
   0x4   :  { %1977 = sst [smem:[#allocation14_spill]] %s1947_s3 }
   0x5   :  { %1978 = sst [smem:[#allocation15_spill]] %s1948_s4 }
   0x6   :  { %1979 = sst [smem:[#allocation16_spill]] %s1949_s5 }
   0x7   :  { %1980 = sst [smem:[#allocation17_spill]] %s1950_s6 }
   0x8   :  { %1981 = sst [smem:[#allocation18_spill]] %s1951_s7 }
   0x9   :  { %1982 = sst [smem:[#allocation19_spill]] %s1964_s20 }
   0xa   :  { %1983 = sst [smem:[#allocation20_spill]] %s1965_s21 }
   0xb   :  { %1984 = sst [smem:[#allocation21_spill]] %s1966_s22 }
   0xc   :  { %27 = vsyncpa [#allocation3], 0 }
   0xd   :  { %29 = vsyncpa [#allocation3 + $0x1], 0  ;;  %s1705_s3 = smov 0   ;;  %s1707_s28 = smov 0  }
   0xe   :  { %s1709_s29 = smov 0   ;;  %s1711_s30 = smov 0  }
   0xf LB: > { %1985 = sst [smem:[#allocation5_spill]] %s1573_s3  ;;  %s1726_s4 = sadd.s32 4294967295, %s1585_s30   ;;  %s1585_s30 = sphi %s1711_s30, %s2007_s30   ;;  %s1581_s29 = sphi %s1709_s29, %s2009_s29   ;;  %s1577_s28 = sphi %s1707_s28, %s2011_s28   ;;  %s1573_s3 = sphi %s1705_s3, %s2010_s3  }
  0x10   : > { %1986 = sst [smem:[#allocation6_spill]] %s1581_s29  ;;  %s1375_s0 = sadd.s32 4294967294, %s1585_s30  }
  0x11   : > { %1987 = sst [smem:[#allocation7_spill]] %s1585_s30  ;;  %s1730_s23 = sadd.s32 1, %s1585_s30  }
  0x12   : > { %1988 = sst [smem:[#allocation8_spill]] %s1730_s23  ;;  %s534_s1 = sadd.s32 1, %s1581_s29 }
  0x13   : > { %s531_s5 = ssub.s32 %s1585_s30, %s1730_s23  ;;  %p544_p0 = scmp.ne.s32.totalorder %s1581_s29, %s1577_s28 }
  0x14   : > { %p532_p1 = scmp.eq.s32.totalorder %s531_s5, 0  ;;  %p545_p2 = scmp.eq.s32.totalorder %s1726_s4, 1 }
  0x15   : > { %p550_p3 = scmp.ne.s32.totalorder %s1577_s28, %s1573_s3  ;;  %p551_p4 = scmp.eq.s32.totalorder %s1375_s0, 1 }
  0x16   : > { %s1741_s24 = scalar_select %p532_p1, %s1581_s29, %s534_s1  }
  0x17   : > { %p1743_p5 = por %p545_p2, %p544_p0  ;;  %p1747_p6 = por %p551_p4, %p550_p3 }
  0x18   : > { %1989 = sst [smem:[#allocation9_spill]] %s1741_s24  ;;  %p1378_p7 = scmp.ge.s32.totalorder %s1585_s30, 1 }
  0x19   : > { %s1991_s25 = scalar_select %p1747_p6, 1, 0 }
  0x1a   : > { %p659_p8 = scmp.lt.s32.totalorder %s1585_s30, 3 }
  0x1b   : > { %1992 = sst [smem:[#allocation10_spill]] %s1991_s25 }
  0x1c   : > { %p660_p9 = pnand %p1378_p7, %p659_p8 }
  0x1d   : > { %p740_p10 = scmp.lt.s32.totalorder (!%p660_p9), %s1726_s4, 1  ;;  %s1993_s1 = sld [smem:[#allocation15_spill]] (!%p660_p9) }
  0x1e   : > { %663 = sbr.rel (%p660_p9) target bundleno = 1121 (0x461), region = 108  ;;  %s1994_s23 = sld [smem:[#allocation14_spill]] (!%p660_p9) }
  0x1f   : > { %s1996_s24 = sld [smem:[#allocation12_spill]] (!%p660_p9) }
  0x20   : > { %s1997_s30 = sld [smem:[#allocation17_spill]] (!%p660_p9) }
  0x21   : > { %s1998_s7 = sld [smem:[#allocation18_spill]] (!%p660_p9) }
  0x22   : > { %s1999_s0 = sld [smem:[#allocation11_spill]] (!%p660_p9) }
  0x23   : > { %s741_s26 = scalar_select %p740_p10, %s1726_s4, 1  ;;  %vm793_vm0 = vcmask 261120   ;;  %v855_v22 = vld [vmem:[%s1956_s12 + $0x18] sm:$0xff]  ;;  %v1587_v23 = vmov 0.0   ;;  %v854_v24 = vld [vmem:[%s1956_s12 + $0x10] sm:$0xff]  ;;  %vm1588_vm1 = vmmov 0  }
  0x24   : > { %1426 = vmatprep.subr.mxu0 %v1587_v23  ;;  %1434 = vmatprep.mubr.msk.f32.mxu0 %vm1588_vm1, %v1587_v23  ;;  %v853_v26 = vld [vmem:[%s1956_s12 + $0x8] sm:$0xff]  ;;  %v852_v27 = vld [vmem:[%s1956_s12] sm:$0xff]  ;;  %v948_v42 = vld [vmem:[%s1958_s14 + $0x18] sm:$0xff]  ;;  %s2001_s27 = sld [smem:[#allocation19_spill]] }
  0x25   : > { %s1755_s2 = sshll.u32 %s741_s26, 3  ;;  %1427 = vmatpush3.msra.mxu0 %v855_v22  ;;  %1437 = vmatprep.subr.mxu1 %v1587_v23  ;;  %v1390_v33 = vld [vmem:[%s1954_s10] ss:$0 sm:$0xff]  ;;  %v947_v43 = vld [vmem:[%s1958_s14 + $0x10] sm:$0xff]  ;;  %v946_v45 = vld [vmem:[%s1958_s14 + $0x8] sm:$0xff]  ;;  %s2003_s22 = sld [smem:[#allocation21_spill]] }
  0x26   : > { %s759_s5 = scalar_lea.vmem %s1993_s1, %s1755_s2  ;;  %s755_s26 = scalar_lea.vmem %s1994_s23, %s1755_s2  ;;  %v1386_v14 = vld [vmem:[%s1997_s30] ss:$0 sm:$0xff]  ;;  %1428 = vmatprep.subr.mxu0 %v1587_v23  ;;  %1445 = vmatprep.mubr.msk.f32.mxu1 %vm1588_vm1, %v1587_v23  ;;  %v1043_v53 = vld [vmem:[%s1960_s16 + $0x18] sm:$0xff]  ;;  %v1042_v54 = vld [vmem:[%s1960_s16 + $0x10] sm:$0xff] }
  0x27   : > { %v1761_v0 = vld [vmem:[%s759_s5] sm:$0xff]  ;;  %s1995_s1 = sld [smem:[#allocation13_spill]]  ;;  %1429 = vmatpush3.msra.mxu0 %v854_v24  ;;  %1438 = vmatpush3.msra.mxu1 %v948_v42  ;;  %v1041_v57 = vld [vmem:[%s1960_s16 + $0x8] sm:$0xff] }
  0x28   : > { %v825_v1 = vsel %vm793_vm0, %v1761_v0, 0.0  ;;  %v767_v2 = vld [vmem:[%s755_s26] sm:$0xff]  ;;  %s747_s26 = scalar_lea.vmem %s1996_s24, %s1755_s2  ;;  %1430 = vmatprep.subr.mxu0 %v1587_v23  ;;  %1439 = vmatprep.subr.mxu1 %v1587_v23 }
  0x29   : > { %826 = vadd.xlane.f32.xlu0 %v825_v1  ;;  %v768_v3 = vadd.f32 1e-06, %v767_v2  ;;  %v765_v12 = vld [vmem:[%s747_s26] sm:$0xff]  ;;  %1431 = vmatpush3.msra.mxu0 %v853_v26  ;;  %s1589_s26 = smov [#allocation2]  }
  0x2a   : > { %v1387_v16 = vld [vmem:[%s1998_s7] ss:$0 sm:$0xff]  ;;  %1432 = vmatprep.subr.mxu0 %v1587_v23  ;;  %1440 = vmatpush3.msra.mxu1 %v947_v43 }
  0x2b   : > { %1511 = vrcp.f32 %v768_v3  ;;  %1433 = vmatpush3.msra.mxu0 %v852_v27  ;;  %v1391_v36 = vld [vmem:[%s1955_s11] ss:$0 sm:$0xff]  ;;  %1441 = vmatprep.subr.mxu1 %v1587_v23 }
  0x2c   : > { %1448 = vmatprep.subr.mxu0 %v1587_v23  ;;  %v945_v47 = vld [vmem:[%s1958_s14] sm:$0xff]  ;;  %1442 = vmatpush3.msra.mxu1 %v946_v45 }
  0x2d   : > { %s751_s5 = scalar_lea.vmem %s1995_s1, %s1755_s2  ;;  %s743_s1 = scalar_lea.vmem %s1999_s0, %s1755_s2  ;;  %1443 = vmatprep.subr.mxu1 %v1587_v23  ;;  %v1040_v58 = vld [vmem:[%s1960_s16] sm:$0xff] }
  0x2e   : > { %v766_v10 = vld [vmem:[%s751_s5] sm:$0xff]  ;;  %s2000_s5 = sld [smem:[#allocation16_spill]]  ;;  %1444 = vmatpush3.msra.mxu1 %v945_v47 }
  0x2f   : > { %v764_v18 = vld [vmem:[%s743_s1] sm:$0xff]  ;;  %1459 = vmatprep.subr.mxu1 %v1587_v23 }
  0x30   : > { %v789_v20 = vadd.f32 %v764_v18, %v764_v18  ;;  %v1392_v60 = vld [vmem:[%s1957_s13] ss:$0 sm:$0xff] }
  0x31   : > { %v1394_v27 = vld [vmem:[%s1959_s15] ss:$0 sm:$0xff] }
  0x34   : > { %s763_s29 = scalar_lea.vmem %s2000_s5, %s1755_s2  ;;  %s737_s2 = sand.u32 1, %s1577_s28  }
  0x35   : > { %v1030_v44 = vld [vmem:[%s763_s29] sm:$0xff]  ;;  %s1379_s23 = sshll.u32 %s737_s2, 3  ;;  %s2002_s5 = sld [smem:[#allocation20_spill]] }
  0x36   : > { %v1032_v46 = vmul.f32 0.044715, %v1030_v44  ;;  %v1031_v55 = vmul.f32 0.5, %v1030_v44  ;;  %s1403_s29 = sshll.u32 %s1726_s4, 7  ;;  %s739_s3 = scalar_lea.vmem [#allocation2], %s1379_s23 }
  0x37   : > { %s1256_s30 = sshll.u32 %s739_s3, 4  ;;  %s1254_s25 = scalar_lea.hbm %s2003_s22, %s1403_s29  ;;  %s1257_s30 = int_to_ptr.vmem [resolvable:$true] %s1256_s30 }
  0x38   : > { %v1512_v9 = vpop.eup %1511  ;;  %v1033_v48 = vmul.f32 %v1032_v46, %v1030_v44  ;;  %s1243_s7 = scalar_lea.sflag [#allocation3], %s737_s2  ;;  %s1525_s24 = scalar_lea.vmem %s1257_s30, 128 }
  0x39   : > { %v770_v11 = vmul.f32 %v1512_v9, %v766_v10  ;;  %v1127_v10 = vld [vmem:[%s1962_s18 + $0x18] sm:$0xff]  ;;  %p1526_p11 = scmp.ne.s32.totalorder %s1257_s30, %s1525_s24 }
  0x3a   : > { %v1034_v49 = vmul.f32 %v1033_v48, %v1030_v44 }
  0x3b   : > { %v771_v13 = vadd.f32 %v770_v11, %v765_v12  ;;  %v1126_v11 = vld [vmem:[%s1962_s18 + $0x10] sm:$0xff]  ;;  %v1125_v12 = vld [vmem:[%s1962_s18 + $0x8] sm:$0xff]  ;;  %p1527_p12 = pnand %p1526_p11, %p1743_p5 }
  0x3c   : > { %v1035_v50 = vadd.f32 %v1034_v49, %v1030_v44 }
  0x3d   : > { %v779_v15 = vmul.f32 %v1386_v14, %v771_v13  ;;  %v1124_v13 = vld [vmem:[%s1962_s18] sm:$0xff]  ;;  %p1528_p13 = pneg %p1527_p12 }
  0x3e   : > { %v1036_v51 = vmul.f32 0.7978846, %v1035_v50 }
  0x3f   : > { %v787_v17 = vadd.f32 %v1387_v16, %v779_v15 }
  0x41   : > { %v788_v19 = vmax.f32 %v787_v17, 0.0 }
  0x43   : > { %v790_v21 = vadd.f32 %v789_v20, %v788_v19 }
  0x45   : > { %v794_v25 = vsel %vm793_vm0, %v790_v21, 0.0 }
  0x46   : > { %795 = vadd.xlane.f32.xlu1 %v794_v25 }
  0xb2   : > { %v827_v4 = vpop.xlane.xlu0 %826 }
  0xb3   : > { %v828_v5 = vmul.f32 0.03125, %v827_v4 }
  0xb5   : > { %v829_v6 = vsub.f32 %v1761_v0, %v828_v5 }
  0xb7   : > { %v830_v7 = vmul.f32 %v829_v6, %v829_v6 }
  0xb9   : > { %v831_v8 = vsel %vm793_vm0, %v830_v7, 0.0 }
  0xba   : > { %832 = vadd.xlane.f32.xlu0 %v831_v8 }
  0xcf   : > { %v796_v31 = vpop.xlane.xlu1 %795 }
  0xd0   : > { %v798_v34 = vmul.f32 0.03125, %v796_v31  ;;  %v1388_v31 = vld [vmem:[%s1952_s8] ss:$0 sm:$0xff] }
  0xd2   : > { %v1818_v37 = vsub.f32 %v790_v21, %v798_v34  ;;  %v1398_v21 = vld [vmem:[%s1963_s19] ss:$0 sm:$0xff] }
  0xd4   : > { %v800_v39 = vmul.f32 %v1818_v37, %v1818_v37 }
  0xd6   : > { %v801_v41 = vsel %vm793_vm0, %v800_v39, 0.0 }
  0xd7   : > { %802 = vadd.xlane.f32.xlu1 %v801_v41 }
 0x143   : > { %v833_v28 = vpop.xlane.xlu0 %832 }
 0x144   : > { %v834_v29 = vmul.f32 0.03125, %v833_v28  ;;  %v1396_v28 = vld [vmem:[%s1961_s17] ss:$0 sm:$0xff] }
 0x146   : > { %v835_v30 = vadd.f32 1e-05, %v834_v29 }
 0x148   : > { %1513 = vrsqrt.f32 %v835_v30 }
 0x149   : > { %1515 = vtanh.f32 %v1036_v51 }
 0x155   : > { %v1514_v32 = vpop.eup %1513 }
 0x156   : > { %v837_v35 = vmul.f32 %v1514_v32, %v829_v6  ;;  %v1516_v52 = vpop.eup %1515 }
 0x157   : > { %v1038_v56 = vadd.f32 1.0, %v1516_v52  ;;  %v1400_v52 = vld [vmem:[%s2001_s27] ss:$0 sm:$0xff]  ;;  %s1529_s27 = sshll.u32 %s1589_s26, 4  ;;  %s1530_s27 = int_to_ptr.vmem [resolvable:$false] %s1529_s27 }
 0x158   : > { %v844_v38 = vmul.f32 %v1390_v33, %v837_v35  ;;  %s1531_s4 = scalar_lea.vmem %s1530_s27, 256  ;;  %p1532_p0 = scmp.lt.s32.totalorder %s1257_s30, %s1530_s27 }
 0x159   : > { %v1039_v59 = vmul.f32 %v1038_v56, %v1031_v55  ;;  %p1533_p1 = scmp.lt.s32.totalorder %s1531_s4, %s1525_s24 }
 0x15a   : > { %v851_v40 = vadd.f32 %v1391_v36, %v844_v38  ;;  %v1389_v38 = vld [vmem:[%s1953_s9] ss:$0 sm:$0xff] }
 0x15b   : > { %p1534_p2 = por %p1533_p1, %p1532_p0 }
 0x15c   : > { %1435 = vmatmul.mubr.msk.f32.vlgmr.msra.gmra.mxu0 %vm793_vm0, %v851_v40 }
 0x15d   : > { %1456 = vmatprep.mubr.msk.f32.mxu0 %vm1588_vm1, %v1587_v23  ;;  %1449 = vmatpush3.msra.mxu0 %v1043_v53  ;;  %p1535_p3 = pnand %p1534_p2, %p1528_p13 }
 0x15e   : > { %1450 = vmatprep.subr.mxu0 %v1587_v23 }
 0x15f   : > { %1451 = vmatpush3.msra.mxu0 %v1042_v54  ;;  %v1401_v54 = vld [vmem:[%s2002_s5] ss:$0 sm:$0xff] }
 0x160   : > { %1452 = vmatprep.subr.mxu0 %v1587_v23  ;;  %v803_v16 = vpop.xlane.xlu1 %802 }
 0x161   : > { %1453 = vmatpush3.msra.mxu0 %v1041_v57  ;;  %v804_v18 = vmul.f32 0.03125, %v803_v16 }
 0x162   : > { %1454 = vmatprep.subr.mxu0 %v1587_v23 }
 0x163   : > { %1455 = vmatpush3.msra.mxu0 %v1040_v58  ;;  %v805_v20 = vadd.f32 1e-05, %v804_v18 }
 0x164   : > { %1457 = vmatmul.mubr.msk.f32.vlgmr.msra.gmra.mxu0 %vm793_vm0, %v1039_v59 }
 0x21c   : > { %v932_v61 = vpop.f32.mrf.mxu0 }
 0x21d   : > { %v933_v62 = vadd.f32 %v1392_v60, %v932_v61 }
 0x21e   : > { %v1436_v63 = vpop.f32.mrf.mxu0 }
 0x21f   : > { %v937_v1 = vmul.f32 0.044715, %v933_v62  ;;  %v936_v7 = vmul.f32 0.5, %v933_v62 }
 0x221   : > { %v938_v2 = vmul.f32 %v937_v1, %v933_v62 }
 0x223   : > { %v939_v3 = vmul.f32 %v938_v2, %v933_v62 }
 0x224   : > { %v1120_v14 = vpop.f32.mrf.mxu0 }
 0x225   : > { %v940_v4 = vadd.f32 %v939_v3, %v933_v62  ;;  %v1121_v33 = vadd.f32 %v1396_v28, %v1120_v14 }
 0x226   : > { %v1458_v15 = vpop.f32.mrf.mxu0 }
 0x227   : > { %v941_v5 = vmul.f32 0.7978846, %v940_v4 }
 0x229   : > { %1517 = vtanh.f32 %v941_v5 }
 0x22a   : > { %1519 = vrsqrt.f32 %v805_v20 }
 0x236   : > { %v1518_v6 = vpop.eup %1517 }
 0x237   : > { %v943_v8 = vadd.f32 1.0, %v1518_v6 }
 0x239   : > { %v944_v9 = vmul.f32 %v943_v8, %v936_v7 }
 0x23b   : > { %1446 = vmatmul.mubr.msk.f32.vlgmr.msra.gmra.mxu1 %vm793_vm0, %v944_v9 }
 0x23c   : > { %1460 = vmatpush3.msra.mxu1 %v1127_v10  ;;  %1467 = vmatprep.mubr.msk.f32.mxu1 %vm1588_vm1, %v1587_v23 }
 0x23d   : > { %1461 = vmatprep.subr.mxu1 %v1587_v23 }
 0x23e   : > { %1462 = vmatpush3.msra.mxu1 %v1126_v11 }
 0x23f   : > { %1463 = vmatprep.subr.mxu1 %v1587_v23 }
 0x240   : > { %1464 = vmatpush3.msra.mxu1 %v1125_v12 }
 0x241   : > { %1465 = vmatprep.subr.mxu1 %v1587_v23  ;;  %v1520_v23 = vpop.eup %1519 }
 0x242   : > { %1466 = vmatpush3.msra.mxu1 %v1124_v13  ;;  %v807_v29 = vmul.f32 %v1520_v23, %v1818_v37 }
 0x243   : > { %1468 = vmatmul.mubr.msk.f32.vlgmr.msra.gmra.mxu1 %vm793_vm0, %v1039_v59 }
 0x244   : > { %v814_v36 = vmul.f32 %v1388_v31, %v807_v29 }
 0x246   : > { %v821_v41 = vadd.f32 %v1389_v38, %v814_v36 }
 0x2fb   : > { %v1025_v17 = vpop.f32.mrf.mxu1 }
 0x2fc   : > { %v1026_v32 = vadd.f32 %v1394_v27, %v1025_v17 }
 0x2fd   : > { %v1447_v19 = vpop.f32.mrf.mxu1 }
 0x2fe   : > { %v1029_v39 = vadd.f32 %v1026_v32, %v1761_v0 }
 0x303   : > { %v1201_v22 = vpop.f32.mrf.mxu1 }
 0x304   : > { %v1202_v24 = vadd.f32 %v1398_v21, %v1201_v22 }
 0x305   : > { %v1469_v25 = vpop.f32.mrf.mxu1 }
 0x306   : > { %v1205_v26 = vmul.f32 0.5, %v1202_v24 }
 0x308   : > { %1521 = vtanh.f32 %v1205_v26 }
 0x315   : > { %v1522_v30 = vpop.eup %1521 }
 0x316   : > { %v1207_v34 = vadd.f32 1.0, %v1522_v30 }
 0x318   : > { %v1208_v35 = vmul.f32 0.5, %v1207_v34 }
 0x31a   : > { %v1209_v40 = vmul.f32 %v1208_v35, %v1121_v33 }
 0x31c   : > { %v1210_v37 = vadd.f32 %v1209_v40, %v1029_v39 }
 0x31e   : > { %v1211_v42 = vadd.f32 %v1210_v37, %v821_v41 }
 0x320   : > { %v1214_v43 = vsel %vm793_vm0, %v1211_v42, 0.0 }
 0x321   : > { %1215 = vadd.xlane.f32.xlu0 %v1214_v43 }
 0x3aa   : > { %v1216_v44 = vpop.xlane.xlu0 %1215 }
 0x3ab   : > { %v1217_v45 = vmul.f32 0.03125, %v1216_v44 }
 0x3ad   : > { %v1218_v46 = vsub.f32 %v1211_v42, %v1217_v45 }
 0x3af   : > { %v1219_v47 = vmul.f32 %v1218_v46, %v1218_v46 }
 0x3b1   : > { %v1220_v48 = vsel %vm793_vm0, %v1219_v47, 0.0 }
 0x3b2   : > { %1221 = vadd.xlane.f32.xlu1 %v1220_v48 }
 0x43b   : > { %v1222_v49 = vpop.xlane.xlu1 %1221 }
 0x43c   : > { %v1223_v50 = vmul.f32 0.03125, %v1222_v49 }
 0x43e   : > { %v1224_v51 = vadd.f32 1e-05, %v1223_v50 }
 0x440   : > { %1523 = vrsqrt.f32 %v1224_v51 }
 0x44d   : > { %v1524_v0 = vpop.eup %1523 }
 0x44e   : > { %v1226_v53 = vmul.f32 %v1524_v0, %v1218_v46 }
 0x450   : > { %v1233_v55 = vmul.f32 %v1400_v52, %v1226_v53 }
 0x452   : > { %v1240_v56 = vadd.f32 %v1401_v54, %v1233_v55 }
 0x454   : > { %1241 = vst.msk [vmem:[%s739_s3] sm:$0xff] %vm793_vm0, %v1240_v56 }
 0x455   : > { %1538 = shalt.err (!%p1535_p3)
}
 0x456   : > { %s1539_s23 = scalar_lea.hbm %s1254_s25, 128  ;;  %s1543_s1 = scalar_lea.hbm %s2003_s22, 256 }
 0x457   : > { %p1540_p4 = scmp.ne.s32.totalorder %s1254_s25, %s1539_s23  ;;  %p1544_p9 = scmp.lt.s32.totalorder %s1254_s25, %s2003_s22 }
 0x458   : > { %p1545_p10 = scmp.lt.s32.totalorder %s1543_s1, %s1539_s23 }
 0x459   : > { %p1541_p7 = pnand %p1540_p4, %p1743_p5 }
 0x45a   : > { %p1546_p11 = por %p1545_p10, %p1544_p9 }
 0x45b   : > { %p1542_p8 = pneg %p1541_p7 }
 0x45d   : > { %p1547_p12 = pnand %p1546_p11, %p1542_p8 }
 0x45f   : > { %1550 = shalt.err (!%p1547_p12)
}
 0x460   : > { %1470 = dma.vmem_to_hbm [thread:$0]  (%p1743_p5), %s1257_s30, 128, %s1254_s25, %s1243_s7  }
 0x461 PF: > { %s2004_s3 = sld [smem:[#allocation7_spill]] }
 0x462   : > { %s2005_s20 = sld [smem:[#allocation5_spill]] }
 0x467   : > { %p1476_p13 = scmp.ge.s32.totalorder %s2004_s3, 2 }
 0x468   : > { %s1268_s24 = sand.u32 1, %s2005_s20  }
 0x469   : > { %p1473_p0 = pnand %p1476_p13, %p1747_p6  ;;  %s1269_s26 = scalar_lea.sflag [#allocation3], %s1268_s24 }
 0x46b   : > { %p1474_p1 = pneg %p1473_p0 }
 0x46d   : > { %1568 = dma.done.wait (%p1474_p1), %s1269_s26, 128  }
 0x46e   : > { %1570 = vsyncadd (%p1474_p1), %s1269_s26, 4294967168  ;;  %s2007_s30 = sld [smem:[#allocation8_spill]]  ;;  %s2010_s3 = smov %s1577_s28 }
 0x46f   : > { %s2008_s27 = sld [smem:[#allocation6_spill]] }
 0x470   : > { %s2009_s29 = sld [smem:[#allocation9_spill]] }
 0x474   : > { %p32_p2 = scmp.ge.s32.totalorder %s2007_s30, 4  }
 0x475   : > { %s2011_s28 = smov %s2008_s27 }
 0x476   :  { %34 = sbr.rel (!%p32_p2) target bundleno = 15 (0xf), region = 158 }
 0x47b   :  { %1274 = vsyncpa [#allocation3], 1 }
 0x47c   :  { %1276 = vsyncpa [#allocation3 + $0x1], 1 }

</bundles_post_ra>
